<compile_context>
chip_gen: v5e
topology: v5e:2x2
jax: 0.10.0
libtpu: 0.0.40
codegen_flags: <defaults>
</compile_context>

<pallas_src>
import jax
import jax.numpy as jnp
from jax import lax
from jax.experimental import pallas as pl
from jax.experimental.pallas import tpu as pltpu


# ----------------------------- Fused Pallas kernel --------------------------

def _bottleneck_kernel(x_nhwc_ref, x_res_ref,
                       w1_ref, b1_ref, w2_ref, b2_ref, w3_ref, b3_ref,
                       o_ref, pad_ref, col_ref):
    # x_nhwc_ref : (1, H, W, Cin)      bf16   (conv1 input, channel-last)
    # x_res_ref  : (1, Cin, H*W)       f32    (residual, original NCHW layout)
    # w1_ref     : (Cin, Cmid)         bf16   (BN1 scale pre-folded)
    # w2_ref     : (9*Cmid, Cmid)      bf16   (BN2 scale pre-folded, im2col order)
    # w3_ref     : (Cout, Cmid)        bf16   (BN3 scale pre-folded, transposed)
    # b*_ref     : f32 biases
    # o_ref      : (1, Cout, H*W)      f32    (NCHW output, lane-dense)
    # pad_ref    : (H+2, W+2, Cmid)    f32 VMEM scratch (zero-padded h1)
    # col_ref    : (H, W, 9*Cmid)      f32 VMEM scratch (im2col matrix)
    _, H, W, _ = x_nhwc_ref.shape
    Cmid = w1_ref.shape[1]

    # ---- stage 1: 1x1 conv (scale folded) + bias + ReLU  -> (H, W, Cmid)
    y1 = lax.dot_general(x_nhwc_ref[0], w1_ref[...],
                         dimension_numbers=(((2,), (0,)), ((), ())),
                         preferred_element_type=jnp.float32)
    h1 = jnp.maximum(y1 + b1_ref[...], 0.0)

    # ---- stage 2: 3x3 conv as a single K = 9*Cmid matmul (in-VMEM im2col)
    pad_ref[...] = jnp.zeros_like(pad_ref)
    pad_ref[1:H + 1, 1:W + 1, :] = h1
    xp = pad_ref[...]                                     # (H+2, W+2, Cmid)
    for kh in range(3):
        for kw in range(3):
            kk = kh * 3 + kw
            col_ref[:, :, kk * Cmid:(kk + 1) * Cmid] = xp[kh:kh + H, kw:kw + W, :]
    y2 = lax.dot_general(col_ref[...].astype(jnp.bfloat16), w2_ref[...],
                         dimension_numbers=(((2,), (0,)), ((), ())),
                         preferred_element_type=jnp.float32)      # (H, W, Cmid)
    h2 = jnp.maximum(y2 + b2_ref[...], 0.0)

    # ---- stage 3: 1x1 conv computed transposed (channel-first) + residual
    h2f = h2.reshape(H * W, Cmid).astype(jnp.bfloat16)            # leading-dim merge
    y3 = lax.dot_general(w3_ref[...], h2f,                        # (Cout,Cmid) @ (M,Cmid)^T
                         dimension_numbers=(((1,), (1,)), ((), ())),
                         preferred_element_type=jnp.float32)      # (Cout, H*W)
    out = y3 + b3_ref[...] + x_res_ref[0]
    o_ref[0] = jnp.maximum(out, 0.0).astype(o_ref.dtype)          # lane-dense NCHW store


# ----------------------------- Parameter prep --------------------------------

def _fold_bn(gamma, beta, mean, var, eps=1e-5):
    scale = gamma / jnp.sqrt(var + eps)
    bias = beta - mean * scale
    return scale.astype(jnp.float32), bias.astype(jnp.float32)


def prepare_params(params):
    """One-time prep: fold eval-mode BN scales into conv weights, cast MXU
    operands to bf16, keep biases f32, pre-transpose conv3 for the A@B^T dot."""
    s1, b1 = _fold_bn(*params["bn1"])
    s2, b2 = _fold_bn(*params["bn2"])
    s3, b3 = _fold_bn(*params["bn3"])
    w1 = params["conv1"]                    # (Cin, Cmid)
    w2 = params["conv2"]                    # (3, 3, Cmid, Cmid)  HWIO
    w3 = params["conv3"]                    # (Cmid, Cout)
    Cmid = w1.shape[1]
    Cout = w3.shape[1]
    return {
        "w1": (w1 * s1[None, :]).astype(jnp.bfloat16),
        "b1": b1.reshape(1, Cmid),
        "w2": (w2 * s2[None, None, None, :]).reshape(9 * Cmid, Cmid).astype(jnp.bfloat16),
        "b2": b2.reshape(1, Cmid),
        "w3": (w3.T * s3[:, None]).astype(jnp.bfloat16),          # (Cout, Cmid)
        "b3": b3.reshape(Cout, 1),
    }


# ----------------------------- Wrapper ---------------------------------------

def bottleneck_forward(x_nchw, prep, arch=0):
    """Fused Pallas Bottleneck forward (arch=0, stride=1, no downsample)."""
    assert arch == 0  # TODO(synk): grouped-conv choices (arch > 0) not implemented.
    N, Cin, H, W = x_nchw.shape
    Cmid = prep["w1"].shape[1]
    Cout = prep["w3"].shape[0]
    assert Cin == Cout, "no-downsample residual requires inplanes == planes*expansion"

    x_nhwc = jnp.transpose(x_nchw, (0, 2, 3, 1)).astype(jnp.bfloat16)  # conv1 input
    x_res = x_nchw.reshape(N, Cin, H * W).astype(jnp.float32)          # residual (free reshape)

    grid_spec = pltpu.PrefetchScalarGridSpec(
        num_scalar_prefetch=0,
        grid=(N,),
        in_specs=[
            pl.BlockSpec((1, H, W, Cin), lambda n: (n, 0, 0, 0)),
            pl.BlockSpec((1, Cin, H * W), lambda n: (n, 0, 0)),
            pl.BlockSpec((Cin, Cmid), lambda n: (0, 0)),
            pl.BlockSpec((1, Cmid), lambda n: (0, 0)),
            pl.BlockSpec((9 * Cmid, Cmid), lambda n: (0, 0)),
            pl.BlockSpec((1, Cmid), lambda n: (0, 0)),
            pl.BlockSpec((Cout, Cmid), lambda n: (0, 0)),
            pl.BlockSpec((Cout, 1), lambda n: (0, 0)),
        ],
        out_specs=pl.BlockSpec((1, Cout, H * W), lambda n: (n, 0, 0)),
        scratch_shapes=[
            pltpu.VMEM((H + 2, W + 2, Cmid), jnp.float32),   # zero-padded h1
            pltpu.VMEM((H, W, 9 * Cmid), jnp.float32),       # im2col matrix
        ],
    )
    out_flat = pl.pallas_call(
        _bottleneck_kernel,
        out_shape=jax.ShapeDtypeStruct((N, Cout, H * W), jnp.float32),
        grid_spec=grid_spec,
        compiler_params=pltpu.CompilerParams(dimension_semantics=("parallel",)),
    )(x_nhwc, x_res, prep["w1"], prep["b1"], prep["w2"], prep["b2"],
      prep["w3"], prep["b3"])

    return out_flat.reshape(N, Cout, H, W)   # free reshape: output already NCHW


# ----------------------------- References (plain JAX) ------------------------

def bottleneck_reference_f32(x_nchw, params):
    """Pure f32 reference."""
    x = jnp.transpose(x_nchw, (0, 2, 3, 1))
    s1, b1 = _fold_bn(*params["bn1"])
    s2, b2 = _fold_bn(*params["bn2"])
    s3, b3 = _fold_bn(*params["bn3"])
    dn = ("NHWC", "HWIO", "NHWC")
    out = lax.conv_general_dilated(x, params["conv1"][None, None], (1, 1), "VALID",
                                   dimension_numbers=dn)
    out = jnp.maximum(out * s1 + b1, 0.0)
    out = lax.conv_general_dilated(out, params["conv2"], (1, 1), ((1, 1), (1, 1)),
                                   dimension_numbers=dn)
    out = jnp.maximum(out * s2 + b2, 0.0)
    out = lax.conv_general_dilated(out, params["conv3"][None, None], (1, 1), "VALID",
                                   dimension_numbers=dn)
    out = jnp.maximum(out * s3 + b3 + x, 0.0)
    return jnp.transpose(out, (0, 3, 1, 2))


def bottleneck_reference_mixed(x_nchw, prep):
    """Reference applying the kernel's exact precision policy
    (bf16 conv operands with BN scale pre-folded, f32 accumulation/epilogues)."""
    Cin = x_nchw.shape[1]
    Cmid = prep["w1"].shape[1]
    Cout = prep["w3"].shape[0]
    dn = ("NHWC", "HWIO", "NHWC")
    x = jnp.transpose(x_nchw, (0, 2, 3, 1)).astype(jnp.float32)
    w1 = prep["w1"].reshape(1, 1, Cin, Cmid)
    w2 = prep["w2"].reshape(3, 3, Cmid, Cmid)
    w3 = jnp.transpose(prep["w3"], (1, 0)).reshape(1, 1, Cmid, Cout)
    h = lax.conv_general_dilated(x.astype(jnp.bfloat16), w1, (1, 1), "VALID",
                                 dimension_numbers=dn, preferred_element_type=jnp.float32)
    h = jnp.maximum(h + prep["b1"].reshape(Cmid), 0.0).astype(jnp.bfloat16)
    h = lax.conv_general_dilated(h, w2, (1, 1), ((1, 1), (1, 1)),
                                 dimension_numbers=dn, preferred_element_type=jnp.float32)
    h = jnp.maximum(h + prep["b2"].reshape(Cmid), 0.0).astype(jnp.bfloat16)
    h = lax.conv_general_dilated(h, w3, (1, 1), "VALID",
                                 dimension_numbers=dn, preferred_element_type=jnp.float32)
    out = jnp.maximum(h + prep["b3"].reshape(Cout) + x, 0.0)
    return jnp.transpose(out, (0, 3, 1, 2))


# ----------------------------- Main -------------------------------------------

if __name__ == "__main__":
    # Bottleneck(inplanes=16, planes=4, base_width=16, groups=1):
    #   width = 4, out = planes*expansion = 16 == inplanes -> no downsample needed.
    inplanes, planes, base_width, groups, expansion = 16, 4, 16, 1, 4
    width = int(planes * (base_width / 16.0)) * groups     # 4
    out_planes = planes * expansion                         # 16
    N, H, W = 2, 16, 16

    key = jax.random.PRNGKey(0)
    ks = jax.random.split(key, 8)

    def bn_params(kk, c):
        k0, k1, k2, k3 = jax.random.split(kk, 4)
        gamma = 1.0 + 0.1 * jax.random.normal(k0, (c,), jnp.float32)
        beta = 0.05 * jax.random.normal(k1, (c,), jnp.float32)
        mean = 0.01 * jax.random.normal(k2, (c,), jnp.float32)
        var = 1.0 + 0.1 * jnp.abs(jax.random.normal(k3, (c,), jnp.float32))
        return gamma, beta, mean, var

    params = {
        # conv1: torch (width, inplanes, 1, 1)   -> stored (inplanes, width)
        "conv1": jax.random.normal(ks[0], (inplanes, width), jnp.float32) * (2.0 / inplanes) ** 0.5,
        # choice[0] 3x3: torch (width, width, 3, 3) -> stored HWIO (3, 3, width, width)
        "conv2": jax.random.normal(ks[1], (3, 3, width, width), jnp.float32) * (2.0 / (9 * width)) ** 0.5,
        # conv3: torch (out_planes, width, 1, 1) -> stored (width, out_planes)
        "conv3": jax.random.normal(ks[2], (width, out_planes), jnp.float32) * (2.0 / width) ** 0.5,
        "bn1": bn_params(ks[3], width),
        "bn2": bn_params(ks[4], width),
        "bn3": bn_params(ks[5], out_planes),
    }
    x = jax.random.normal(ks[6], (N, inplanes, H, W), jnp.float32)

    prep = prepare_params(params)
    out = jax.block_until_ready(bottleneck_forward(x, prep, arch=0))
    assert out.shape == (N, out_planes, H, W), out.shape

    # Same-precision-policy reference: should match tightly.
    ref_mixed = jax.block_until_ready(bottleneck_reference_mixed(x, prep))
    assert jnp.allclose(out, ref_mixed, atol=2e-2, rtol=2e-2), \
        float(jnp.max(jnp.abs(out - ref_mixed)))
    # Full-f32 reference: loose budget accounts for bf16 MXU operands.
    ref_f32 = jax.block_until_ready(bottleneck_reference_f32(x, params))
    assert jnp.allclose(out, ref_f32, atol=1e-1, rtol=1e-1), \
        float(jnp.max(jnp.abs(out - ref_f32)))

    print("KERNEL_OK")
</pallas_src>

<mosaic_0001>
module attributes {stable_mosaic.version = 11 : i64} {
  func.func @_bottleneck_kernel(%arg0: i32, %arg1: memref<1x16x16x16xbf16, #tpu.memory_space<vmem>>, %arg2: memref<1x16x256xf32, #tpu.memory_space<vmem>>, %arg3: memref<16x4xbf16, #tpu.memory_space<vmem>>, %arg4: memref<1x4xf32, #tpu.memory_space<vmem>>, %arg5: memref<36x4xbf16, #tpu.memory_space<vmem>>, %arg6: memref<1x4xf32, #tpu.memory_space<vmem>>, %arg7: memref<16x4xbf16, #tpu.memory_space<vmem>>, %arg8: memref<16x1xf32, #tpu.memory_space<vmem>>, %arg9: memref<1x16x256xf32, #tpu.memory_space<vmem>>, %arg10: memref<18x18x4xf32, #tpu.memory_space<vmem>>, %arg11: memref<16x16x36xf32, #tpu.memory_space<vmem>>) attributes {dimension_semantics = [#tpu.dimension_semantics<parallel>], iteration_bounds = array<i64: 2>, scalar_prefetch = 0 : i64, scratch_operands = 2 : i64, tpu.core_type = #tpu.core_type<tc>, window_params = [{transform_indices = @transform_0, window_bounds = array<i64: 1, 16, 16, 16>}, {transform_indices = @transform_1, window_bounds = array<i64: 1, 16, 256>}, {pipeline_mode = #tpu.pipeline_mode<synchronous>, transform_indices = @transform_2, window_bounds = array<i64: 16, 4>}, {pipeline_mode = #tpu.pipeline_mode<synchronous>, transform_indices = @transform_3, window_bounds = array<i64: 1, 4>}, {pipeline_mode = #tpu.pipeline_mode<synchronous>, transform_indices = @transform_4, window_bounds = array<i64: 36, 4>}, {pipeline_mode = #tpu.pipeline_mode<synchronous>, transform_indices = @transform_5, window_bounds = array<i64: 1, 4>}, {pipeline_mode = #tpu.pipeline_mode<synchronous>, transform_indices = @transform_6, window_bounds = array<i64: 16, 4>}, {pipeline_mode = #tpu.pipeline_mode<synchronous>, transform_indices = @transform_7, window_bounds = array<i64: 16, 1>}, {transform_indices = @transform_8, window_bounds = array<i64: 1, 16, 256>}]} {
    %c0 = arith.constant 0 : index
    %c0_0 = arith.constant 0 : index
    %c0_1 = arith.constant 0 : index
    %c0_2 = arith.constant 0 : index
    %0 = vector.load %arg1[%c0, %c0_0, %c0_1, %c0_2] : memref<1x16x16x16xbf16, #tpu.memory_space<vmem>>, vector<1x16x16x16xbf16>
    %1 = vector.shape_cast %0 : vector<1x16x16x16xbf16> to vector<16x16x16xbf16>
    %c0_3 = arith.constant 0 : index
    %c0_4 = arith.constant 0 : index
    %2 = vector.load %arg3[%c0_3, %c0_4] : memref<16x4xbf16, #tpu.memory_space<vmem>>, vector<16x4xbf16>
    %cst = arith.constant dense<0.000000e+00> : vector<16x16x4xf32>
    %3 = tpu.matmul %1, %2, %cst {dimension_numbers = #tpu.dot_dimension_numbers<[2], [0], [0, 1], [1], [0, 0, 0, 1, 1, 1], [], []>} : vector<16x16x16xbf16>, vector<16x4xbf16>, vector<16x16x4xf32> -> vector<16x16x4xf32>
    %c0_5 = arith.constant 0 : index
    %c0_6 = arith.constant 0 : index
    %4 = vector.load %arg4[%c0_5, %c0_6] : memref<1x4xf32, #tpu.memory_space<vmem>>, vector<1x4xf32>
    %5 = vector.shape_cast %4 : vector<1x4xf32> to vector<1x1x4xf32>
    %6 = vector.broadcast %5 : vector<1x1x4xf32> to vector<16x16x4xf32>
    %7 = arith.addf %3, %6 : vector<16x16x4xf32>
    %cst_7 = arith.constant 0.000000e+00 : f32
    %8 = vector.broadcast %cst_7 : f32 to vector<16x16x4xf32>
    %9 = arith.maximumf %7, %8 : vector<16x16x4xf32>
    %cst_8 = arith.constant 0.000000e+00 : f32
    %10 = vector.broadcast %cst_8 : f32 to vector<18x18x4xf32>
    %c0_9 = arith.constant 0 : index
    %c0_10 = arith.constant 0 : index
    %c0_11 = arith.constant 0 : index
    %11 = vector.load %arg10[%c0_9, %c0_10, %c0_11] : memref<18x18x4xf32, #tpu.memory_space<vmem>>, vector<18x18x4xf32>
    tpu.vector_store %arg10[%c0_9, %c0_10, %c0_11], %10 {strides = array<i32>} : memref<18x18x4xf32, #tpu.memory_space<vmem>>, vector<18x18x4xf32>,
    %c1 = arith.constant 1 : index
    %c1_12 = arith.constant 1 : index
    %c0_13 = arith.constant 0 : index
    %12 = vector.load %arg10[%c1, %c1_12, %c0_13] : memref<18x18x4xf32, #tpu.memory_space<vmem>>, vector<16x16x4xf32>
    tpu.vector_store %arg10[%c1, %c1_12, %c0_13], %9 {strides = array<i32>} : memref<18x18x4xf32, #tpu.memory_space<vmem>>, vector<16x16x4xf32>,
    %c0_14 = arith.constant 0 : index
    %c0_15 = arith.constant 0 : index
    %c0_16 = arith.constant 0 : index
    %13 = vector.load %arg10[%c0_14, %c0_15, %c0_16] : memref<18x18x4xf32, #tpu.memory_space<vmem>>, vector<18x18x4xf32>
    %14 = vector.extract_strided_slice %13 {offsets = [0, 0, 0], sizes = [16, 16, 4], strides = [1, 1, 1]} : vector<18x18x4xf32> to vector<16x16x4xf32>
    %c0_17 = arith.constant 0 : index
    %c0_18 = arith.constant 0 : index
    %c0_19 = arith.constant 0 : index
    %15 = vector.load %arg11[%c0_17, %c0_18, %c0_19] : memref<16x16x36xf32, #tpu.memory_space<vmem>>, vector<16x16x4xf32>
    tpu.vector_store %arg11[%c0_17, %c0_18, %c0_19], %14 {strides = array<i32>} : memref<16x16x36xf32, #tpu.memory_space<vmem>>, vector<16x16x4xf32>,
    %16 = vector.extract_strided_slice %13 {offsets = [0, 1, 0], sizes = [16, 16, 4], strides = [1, 1, 1]} : vector<18x18x4xf32> to vector<16x16x4xf32>
    %c0_20 = arith.constant 0 : index
    %c0_21 = arith.constant 0 : index
    %c4 = arith.constant 4 : index
    %17 = vector.load %arg11[%c0_20, %c0_21, %c4] : memref<16x16x36xf32, #tpu.memory_space<vmem>>, vector<16x16x4xf32>
    tpu.vector_store %arg11[%c0_20, %c0_21, %c4], %16 {strides = array<i32>} : memref<16x16x36xf32, #tpu.memory_space<vmem>>, vector<16x16x4xf32>,
    %18 = vector.extract_strided_slice %13 {offsets = [0, 2, 0], sizes = [16, 16, 4], strides = [1, 1, 1]} : vector<18x18x4xf32> to vector<16x16x4xf32>
    %c0_22 = arith.constant 0 : index
    %c0_23 = arith.constant 0 : index
    %c8 = arith.constant 8 : index
    %19 = vector.load %arg11[%c0_22, %c0_23, %c8] : memref<16x16x36xf32, #tpu.memory_space<vmem>>, vector<16x16x4xf32>
    tpu.vector_store %arg11[%c0_22, %c0_23, %c8], %18 {strides = array<i32>} : memref<16x16x36xf32, #tpu.memory_space<vmem>>, vector<16x16x4xf32>,
    %20 = vector.extract_strided_slice %13 {offsets = [1, 0, 0], sizes = [16, 16, 4], strides = [1, 1, 1]} : vector<18x18x4xf32> to vector<16x16x4xf32>
    %c0_24 = arith.constant 0 : index
    %c0_25 = arith.constant 0 : index
    %c12 = arith.constant 12 : index
    %21 = vector.load %arg11[%c0_24, %c0_25, %c12] : memref<16x16x36xf32, #tpu.memory_space<vmem>>, vector<16x16x4xf32>
    tpu.vector_store %arg11[%c0_24, %c0_25, %c12], %20 {strides = array<i32>} : memref<16x16x36xf32, #tpu.memory_space<vmem>>, vector<16x16x4xf32>,
    %22 = vector.extract_strided_slice %13 {offsets = [1, 1, 0], sizes = [16, 16, 4], strides = [1, 1, 1]} : vector<18x18x4xf32> to vector<16x16x4xf32>
    %c0_26 = arith.constant 0 : index
    %c0_27 = arith.constant 0 : index
    %c16 = arith.constant 16 : index
    %23 = vector.load %arg11[%c0_26, %c0_27, %c16] : memref<16x16x36xf32, #tpu.memory_space<vmem>>, vector<16x16x4xf32>
    tpu.vector_store %arg11[%c0_26, %c0_27, %c16], %22 {strides = array<i32>} : memref<16x16x36xf32, #tpu.memory_space<vmem>>, vector<16x16x4xf32>,
    %24 = vector.extract_strided_slice %13 {offsets = [1, 2, 0], sizes = [16, 16, 4], strides = [1, 1, 1]} : vector<18x18x4xf32> to vector<16x16x4xf32>
    %c0_28 = arith.constant 0 : index
    %c0_29 = arith.constant 0 : index
    %c20 = arith.constant 20 : index
    %25 = vector.load %arg11[%c0_28, %c0_29, %c20] : memref<16x16x36xf32, #tpu.memory_space<vmem>>, vector<16x16x4xf32>
    tpu.vector_store %arg11[%c0_28, %c0_29, %c20], %24 {strides = array<i32>} : memref<16x16x36xf32, #tpu.memory_space<vmem>>, vector<16x16x4xf32>,
    %26 = vector.extract_strided_slice %13 {offsets = [2, 0, 0], sizes = [16, 16, 4], strides = [1, 1, 1]} : vector<18x18x4xf32> to vector<16x16x4xf32>
    %c0_30 = arith.constant 0 : index
    %c0_31 = arith.constant 0 : index
    %c24 = arith.constant 24 : index
    %27 = vector.load %arg11[%c0_30, %c0_31, %c24] : memref<16x16x36xf32, #tpu.memory_space<vmem>>, vector<16x16x4xf32>
    tpu.vector_store %arg11[%c0_30, %c0_31, %c24], %26 {strides = array<i32>} : memref<16x16x36xf32, #tpu.memory_space<vmem>>, vector<16x16x4xf32>,
    %28 = vector.extract_strided_slice %13 {offsets = [2, 1, 0], sizes = [16, 16, 4], strides = [1, 1, 1]} : vector<18x18x4xf32> to vector<16x16x4xf32>
    %c0_32 = arith.constant 0 : index
    %c0_33 = arith.constant 0 : index
    %c28 = arith.constant 28 : index
    %29 = vector.load %arg11[%c0_32, %c0_33, %c28] : memref<16x16x36xf32, #tpu.memory_space<vmem>>, vector<16x16x4xf32>
    tpu.vector_store %arg11[%c0_32, %c0_33, %c28], %28 {strides = array<i32>} : memref<16x16x36xf32, #tpu.memory_space<vmem>>, vector<16x16x4xf32>,
    %30 = vector.extract_strided_slice %13 {offsets = [2, 2, 0], sizes = [16, 16, 4], strides = [1, 1, 1]} : vector<18x18x4xf32> to vector<16x16x4xf32>
    %c0_34 = arith.constant 0 : index
    %c0_35 = arith.constant 0 : index
    %c32 = arith.constant 32 : index
    %31 = vector.load %arg11[%c0_34, %c0_35, %c32] : memref<16x16x36xf32, #tpu.memory_space<vmem>>, vector<16x16x4xf32>
    tpu.vector_store %arg11[%c0_34, %c0_35, %c32], %30 {strides = array<i32>} : memref<16x16x36xf32, #tpu.memory_space<vmem>>, vector<16x16x4xf32>,
    %c0_36 = arith.constant 0 : index
    %c0_37 = arith.constant 0 : index
    %c0_38 = arith.constant 0 : index
    %32 = vector.load %arg11[%c0_36, %c0_37, %c0_38] : memref<16x16x36xf32, #tpu.memory_space<vmem>>, vector<16x16x36xf32>
    %33 = arith.truncf %32 : vector<16x16x36xf32> to vector<16x16x36xbf16>
    %c0_39 = arith.constant 0 : index
    %c0_40 = arith.constant 0 : index
    %34 = vector.load %arg5[%c0_39, %c0_40] : memref<36x4xbf16, #tpu.memory_space<vmem>>, vector<36x4xbf16>
    %cst_41 = arith.constant dense<0.000000e+00> : vector<16x16x4xf32>
    %35 = tpu.matmul %33, %34, %cst_41 {dimension_numbers = #tpu.dot_dimension_numbers<[2], [0], [0, 1], [1], [0, 0, 0, 1, 1, 1], [], []>} : vector<16x16x36xbf16>, vector<36x4xbf16>, vector<16x16x4xf32> -> vector<16x16x4xf32>
    %c0_42 = arith.constant 0 : index
    %c0_43 = arith.constant 0 : index
    %36 = vector.load %arg6[%c0_42, %c0_43] : memref<1x4xf32, #tpu.memory_space<vmem>>, vector<1x4xf32>
    %37 = vector.shape_cast %36 : vector<1x4xf32> to vector<1x1x4xf32>
    %38 = vector.broadcast %37 : vector<1x1x4xf32> to vector<16x16x4xf32>
    %39 = arith.addf %35, %38 : vector<16x16x4xf32>
    %cst_44 = arith.constant 0.000000e+00 : f32
    %40 = vector.broadcast %cst_44 : f32 to vector<16x16x4xf32>
    %41 = arith.maximumf %39, %40 : vector<16x16x4xf32>
    %42 = vector.shape_cast %41 : vector<16x16x4xf32> to vector<256x4xf32>
    %43 = arith.truncf %42 : vector<256x4xf32> to vector<256x4xbf16>
    %c0_45 = arith.constant 0 : index
    %c0_46 = arith.constant 0 : index
    %44 = vector.load %arg7[%c0_45, %c0_46] : memref<16x4xbf16, #tpu.memory_space<vmem>>, vector<16x4xbf16>
    %cst_47 = arith.constant dense<0.000000e+00> : vector<16x256xf32>
    %45 = tpu.matmul %44, %43, %cst_47 {dimension_numbers = #tpu.dot_dimension_numbers<[1], [1], [0], [0], [0, 0, 1, 0], [], []>} : vector<16x4xbf16>, vector<256x4xbf16>, vector<16x256xf32> -> vector<16x256xf32>
    %c0_48 = arith.constant 0 : index
    %c0_49 = arith.constant 0 : index
    %46 = vector.load %arg8[%c0_48, %c0_49] : memref<16x1xf32, #tpu.memory_space<vmem>>, vector<16x1xf32>
    %47 = vector.broadcast %46 : vector<16x1xf32> to vector<16x256xf32>
    %48 = arith.addf %45, %47 : vector<16x256xf32>
    %c0_50 = arith.constant 0 : index
    %c0_51 = arith.constant 0 : index
    %c0_52 = arith.constant 0 : index
    %49 = vector.load %arg2[%c0_50, %c0_51, %c0_52] : memref<1x16x256xf32, #tpu.memory_space<vmem>>, vector<1x16x256xf32>
    %50 = vector.shape_cast %49 : vector<1x16x256xf32> to vector<16x256xf32>
    %51 = arith.addf %48, %50 : vector<16x256xf32>
    %cst_53 = arith.constant 0.000000e+00 : f32
    %52 = vector.broadcast %cst_53 : f32 to vector<16x256xf32>
    %53 = arith.maximumf %51, %52 : vector<16x256xf32>
    %c0_54 = arith.constant 0 : index
    %c0_55 = arith.constant 0 : index
    %c0_56 = arith.constant 0 : index
    %54 = vector.load %arg9[%c0_54, %c0_55, %c0_56] : memref<1x16x256xf32, #tpu.memory_space<vmem>>, vector<1x16x256xf32>
    %55 = vector.shape_cast %54 : vector<1x16x256xf32> to vector<16x256xf32>
    %56 = vector.shape_cast %53 : vector<16x256xf32> to vector<1x16x256xf32>
    tpu.vector_store %arg9[%c0_54, %c0_55, %c0_56], %56 {strides = array<i32>} : memref<1x16x256xf32, #tpu.memory_space<vmem>>, vector<1x16x256xf32>,
    return
  }
  func.func @transform_0(%arg0: i32) -> (i32, i32, i32, i32) {
    %c0_i32 = arith.constant 0 : i32
    %c0_i32_0 = arith.constant 0 : i32
    %c0_i32_1 = arith.constant 0 : i32
    %c0_i32_2 = arith.constant 0 : i32
    return %arg0, %c0_i32, %c0_i32_0, %c0_i32_1 : i32, i32, i32, i32
  }
  func.func @transform_1(%arg0: i32) -> (i32, i32, i32) {
    %c0_i32 = arith.constant 0 : i32
    %c0_i32_0 = arith.constant 0 : i32
    %c0_i32_1 = arith.constant 0 : i32
    return %arg0, %c0_i32, %c0_i32_0 : i32, i32, i32
  }
  func.func @transform_2(%arg0: i32) -> (i32, i32) {
    %c0_i32 = arith.constant 0 : i32
    %c0_i32_0 = arith.constant 0 : i32
    %c0_i32_1 = arith.constant 0 : i32
    return %c0_i32, %c0_i32_0 : i32, i32
  }
  func.func @transform_3(%arg0: i32) -> (i32, i32) {
    %c0_i32 = arith.constant 0 : i32
    %c0_i32_0 = arith.constant 0 : i32
    %c0_i32_1 = arith.constant 0 : i32
    return %c0_i32, %c0_i32_0 : i32, i32
  }
  func.func @transform_4(%arg0: i32) -> (i32, i32) {
    %c0_i32 = arith.constant 0 : i32
    %c0_i32_0 = arith.constant 0 : i32
    %c0_i32_1 = arith.constant 0 : i32
    return %c0_i32, %c0_i32_0 : i32, i32
  }
  func.func @transform_5(%arg0: i32) -> (i32, i32) {
    %c0_i32 = arith.constant 0 : i32
    %c0_i32_0 = arith.constant 0 : i32
    %c0_i32_1 = arith.constant 0 : i32
    return %c0_i32, %c0_i32_0 : i32, i32
  }
  func.func @transform_6(%arg0: i32) -> (i32, i32) {
    %c0_i32 = arith.constant 0 : i32
    %c0_i32_0 = arith.constant 0 : i32
    %c0_i32_1 = arith.constant 0 : i32
    return %c0_i32, %c0_i32_0 : i32, i32
  }
  func.func @transform_7(%arg0: i32) -> (i32, i32) {
    %c0_i32 = arith.constant 0 : i32
    %c0_i32_0 = arith.constant 0 : i32
    %c0_i32_1 = arith.constant 0 : i32
    return %c0_i32, %c0_i32_0 : i32, i32
  }
  func.func @transform_8(%arg0: i32) -> (i32, i32, i32) {
    %c0_i32 = arith.constant 0 : i32
    %c0_i32_0 = arith.constant 0 : i32
    %c0_i32_1 = arith.constant 0 : i32
    return %arg0, %c0_i32, %c0_i32_0 : i32, i32, i32
  }
}

</mosaic_0001>

<bundles_post_ra>
// kernel: tpu_custom_call.1
= control target key start
LH: loop header
LB: loop body
LE: loop exit
PB: predicated region body
PF: predicated region fallthrough
CT: control target
= control target key end

     0   :  { %s5021_s0 = inlined_call_operand.hbm [shape: bf16[2,16,16,16], index: 0, kind: input, shape index: {}]   ;;  %s5022_s1 = inlined_call_operand.hbm [shape: f32[2,16,256], index: 1, kind: input, shape index: {}]   ;;  %s5023_s2 = inlined_call_operand.vmem [shape: bf16[16,4], index: 2, kind: input, shape index: {}]   ;;  %s5024_s3 = inlined_call_operand.vmem [shape: f32[1,4], index: 3, kind: input, shape index: {}]   ;;  %s5025_s4 = inlined_call_operand.vmem [shape: bf16[36,4], index: 4, kind: input, shape index: {}]   ;;  %s5026_s5 = inlined_call_operand.vmem [shape: f32[1,4], index: 5, kind: input, shape index: {}]   ;;  %s5027_s6 = inlined_call_operand.vmem [shape: bf16[16,4], index: 6, kind: input, shape index: {}]   ;;  %s5028_s7 = inlined_call_operand.vmem [shape: f32[16,1], index: 7, kind: input, shape index: {}]   ;;  %s5029_s8 = inlined_call_operand.hbm [shape: f32[2,16,256], index: 8, kind: output, shape index: {}]  }
   0x1   :  { %5035 = sst [smem:[#allocation18_spill]] %s5021_s0 }
   0x2   :  { %13 = vsyncpa [#allocation5], 0 }
   0x3   :  { %15 = vsyncpa [#allocation5 + $0x1], 0 }
   0x4   :  { %16 = vsyncpa [#allocation8], 0 }
   0x5   :  { %18 = vsyncpa [#allocation8 + $0x1], 0 }
   0x6   :  { %19 = vsyncpa [#allocation6], 0 }
   0x7   :  { %21 = vsyncpa [#allocation6 + $0x1], 0  ;;  %s3346_s27 = smov 0   ;;  %s3348_s28 = smov 0  }
   0x8   :  { %s3350_s29 = smov 0   ;;  %s3352_s30 = smov 0  }
   0x9 LB: > { %5036 = sst [smem:[#allocation13_spill]] %s3272_s27  ;;  %s3367_s9 = sadd.s32 4294967295, %s3284_s30   ;;  %s3284_s30 = sphi %s3352_s30, %s5051_s30   ;;  %s3280_s29 = sphi %s3350_s29, %s5053_s29   ;;  %s3276_s28 = sphi %s3348_s28, %s5055_s28   ;;  %s3272_s27 = sphi %s3346_s27, %s5054_s27  }
   0xa   : > { %5037 = sst [smem:[#allocation14_spill]] %s3280_s29  ;;  %s2904_s10 = sadd.s32 4294967294, %s3284_s30  }
   0xb   : > { %s3371_s11 = sadd.s32 1, %s3284_s30   ;;  %s34_s12 = sadd.s32 1, %s3280_s29 }
   0xc   : > { %5038 = sst [smem:[#allocation15_spill]] %s3371_s11  ;;  %s31_s13 = ssub.s32 %s3284_s30, %s3371_s11 }
   0xd   : > { %p41_p0 = scmp.ne.s32.totalorder %s3280_s29, %s3276_s28  ;;  %p32_p1 = scmp.eq.s32.totalorder %s31_s13, 0 }
   0xe   : > { %p42_p2 = scmp.eq.s32.totalorder %s3284_s30, 0  ;;  %p47_p3 = scmp.ne.s32.totalorder %s3276_s28, %s3272_s27 }
   0xf   : > { %p48_p4 = scmp.eq.s32.totalorder %s3367_s9, 0  ;;  %p223_p7 = scmp.eq.s32.totalorder %s3367_s9, 1 }
  0x10   : > { %s3383_s14 = scalar_select %p32_p1, %s3280_s29, %s34_s12  }
  0x11   : > { %p3385_p5 = por %p42_p2, %p41_p0  ;;  %p3389_p6 = por %p48_p4, %p47_p3 }
  0x12   : > { %5039 = sst [smem:[#allocation16_spill]] %s3383_s14  ;;  %p229_p8 = scmp.eq.s32.totalorder %s2904_s10, 1 }
  0x13   : > { %p3080_p10 = scmp.lt.s32.totalorder %s3284_s30, 2  ;;  %p3396_p11 = por %p223_p7, %p41_p0 }
  0x14   : > { %p3400_p12 = por %p229_p8, %p47_p3  ;;  %s3405_s19 = sand.u32 1, %s3280_s29  }
  0x15   : > { %s3036_s20 = sshll.u32 %s3284_s30, 7  ;;  %s2907_s21 = sshll.u32 %s3405_s19, 7 }
  0x16   : > { %s5043_s18 = scalar_select %p3400_p12, 1, 0 }
  0x17   : > { %s5045_s0 = sld [smem:[#allocation18_spill]]  ;;  %s271_s26 = scalar_lea.vmem [#allocation4], %s2907_s21 }
  0x18   : > { %5044 = sst [smem:[#allocation17_spill]] %s5043_s18  ;;  %s279_s10 = sshll.u32 %s271_s26, 4  ;;  %s280_s10 = int_to_ptr.vmem [resolvable:$true] %s279_s10 }
  0x19   : > { %p3414_p13 = pnand %p3080_p10, %p3385_p5  ;;  %p2913_p0 = scmp.ge.s32.totalorder %s3284_s30, 1 }
  0x1a   : > { %p309_p1 = scmp.lt.s32.totalorder %s3284_s30, 3  ;;  %s268_s13 = scalar_lea.sflag [#allocation5], %s3405_s19 }
  0x1b   : > { %p3158_p3 = pneg %p3414_p13 }
  0x1d   : > { %s276_s24 = scalar_lea.hbm %s5045_s0, %s3036_s20  ;;  %s3161_s21 = scalar_lea.hbm %s5045_s0, 256 }
  0x1e   : > { %s277_s25 = sshll.u32 %s276_s24, 4  ;;  %s278_s25 = int_to_ptr.hbm [resolvable:$true] %s277_s25 }
  0x1f   : > { %s3154_s14 = sshra.s32 %s278_s25, 4  ;;  %s3155_s14 = int_to_ptr.hbm [resolvable:$true] %s3154_s14 }
  0x20   : > { %s3156_s29 = scalar_lea.hbm %s3155_s14, 128  ;;  %p3162_p5 = scmp.lt.s32.totalorder %s3155_s14, %s5045_s0 }
  0x21   : > { %p3157_p2 = scmp.ne.s32.totalorder %s3155_s14, %s3156_s29  ;;  %p3163_p8 = scmp.lt.s32.totalorder %s3161_s21, %s3156_s29 }
  0x23   : > { %p3159_p4 = pnand %p3158_p3, %p3157_p2  ;;  %p3164_p10 = por %p3163_p8, %p3162_p5 }
  0x25   : > { %p3160_p7 = pneg %p3159_p4 }
  0x27   : > { %p3165_p9 = pnand %p3164_p10, %p3160_p7 }
  0x29   : > { %3168 = shalt.err (!%p3165_p9)
}
  0x2a   : > { %s3286_s24 = smov 64   ;;  %s3287_s26 = smov 4  }
  0x2b   : > { %3072 = dma.hbm_to_vmem [thread:$0]  (!%p3414_p13), %s278_s25, 2048, %s280_s10, %s268_s13, %s3286_s24, %s3286_s24, %s3287_s26  }
  0x2c   : > { %p3438_p2 = pnand %p2913_p0, %p309_p1  ;;  %s2910_s29 = sshll.u32 %s3405_s19, 5 }
  0x2d   : > { %s3037_s14 = sshll.u32 %s3284_s30, 5  ;;  %s293_s0 = scalar_lea.vmem [#allocation7], %s2910_s29 }
  0x2e   : > { %s298_s22 = scalar_lea.hbm %s5022_s1, %s3037_s14  ;;  %s301_s11 = sshll.u32 %s293_s0, 4  ;;  %s302_s11 = int_to_ptr.vmem [resolvable:$true] %s301_s11 }
  0x2f   : > { %s299_s23 = sshll.u32 %s298_s22, 4  ;;  %s290_s18 = scalar_lea.sflag [#allocation8], %s3405_s19  ;;  %s300_s23 = int_to_ptr.hbm [resolvable:$true] %s299_s23 }
  0x30   : > { %s3184_s27 = sshra.s32 %s300_s23, 4  ;;  %s3191_s24 = scalar_lea.hbm %s5022_s1, 64  ;;  %s3185_s27 = int_to_ptr.hbm [resolvable:$true] %s3184_s27 }
  0x31   : > { %s3186_s25 = scalar_lea.hbm %s3185_s27, 32  ;;  %p3192_p4 = scmp.lt.s32.totalorder %s3185_s27, %s5022_s1 }
  0x32   : > { %p3187_p9 = scmp.ne.s32.totalorder %s3185_s27, %s3186_s25  ;;  %p3193_p7 = scmp.lt.s32.totalorder %s3191_s24, %s3186_s25 }
  0x34   : > { %p3189_p0 = pnand %p3187_p9, %p3158_p3  ;;  %p3194_p5 = por %p3193_p7, %p3192_p4 }
  0x36   : > { %p3190_p1 = pneg %p3189_p0 }
  0x38   : > { %p3195_p8 = pnand %p3194_p5, %p3190_p1 }
  0x3a   : > { %3198 = shalt.err (!%p3195_p8)
}
  0x3b   : > { %s3288_s0 = smov 256   ;;  %s3289_s19 = smov 16  }
  0x3c   : > { %3075 = dma.hbm_to_vmem [thread:$0]  (!%p3414_p13), %s300_s23, 512, %s302_s11, %s290_s18, %s3288_s0, %s3288_s0, %s3289_s19  }
  0x3d   : > { %313 = sbr.rel (%p3438_p2) target bundleno = 1560 (0x618), region = 52  ;;  %s3462_s29 = sand.u32 (!%p3438_p2), 1, %s3276_s28  }
  0x3e   : > { %s2914_s20 = sshll.u32 (!%p3438_p2), %s3462_s29, 7  ;;  %s316_s27 = scalar_lea.sflag (!%p3438_p2), [#allocation5], %s3462_s29 }
  0x3f   : > { %s3466_s21 = scalar_lea.vmem (!%p3438_p2), [#allocation4], %s2914_s20 }
  0x42   : > { %3259 = dma.done.wait (%p3389_p6), %s316_s27, 2048  }
  0x43   : > { %3261 = vsyncadd (%p3389_p6), %s316_s27, 4294965248  ;;  %s2915_s11 = sshll.u32 %s3462_s29, 5  ;;  %s326_s18 = scalar_lea.sflag [#allocation8], %s3462_s29 }
  0x44   : > { %s3476_s12 = scalar_lea.vmem [#allocation7], %s2915_s11 }
  0x45   : > { %3263 = dma.done.wait (%p3389_p6), %s326_s18, 512  }
  0x46   : > { %3265 = vsyncadd (%p3389_p6), %s326_s18, 4294966784  ;;  %v3054_v0 = vld [vmem:[%s5023_s2] sm:$0xff]  ;;  %v3038_v1 = vld [vmem:[%s3466_s21] sm:$0xff]  ;;  %vm493_vm0 = vcmask 130048   ;;  %vm663_vm1 = vcmask 31744   ;;  %v3290_v5 = vmov 0.0  }
  0x47   : > { %v3047_v2 = vld [vmem:[%s3466_s21 + $0x48] sm:$0xff]  ;;  %549 = vmatpush.bf16.msra.mxu0 %v3054_v0  ;;  %3059 = vmatpush.bf16.msra.mxu3 %v3054_v0  ;;  %v3048_v4 = vld [vmem:[%s3466_s21 + $0x50] sm:$0xff]  ;;  %664 = vst.msk [vmem:[#allocation2] sm:$0xff] %vm663_vm1, %v3290_v5  ;;  %s3291_s16 = smov 4   ;;  %v3049_v8 = vld [vmem:[%s3466_s21 + $0x58] sm:$0xff]  ;;  %s3292_s23 = smov 8  }
  0x48   : > { %v3039_v3 = vld [vmem:[%s3466_s21 + $0x8] sm:$0xff]  ;;  %665 = vst.msk [vmem:[#allocation2 + $0x8] sm:$0xff] %vm663_vm1, %v3290_v5  ;;  %v3040_v7 = vld [vmem:[%s3466_s21 + $0x10] sm:$0xff]  ;;  %v3041_v10 = vld [vmem:[%s3466_s21 + $0x18] sm:$0xff]  ;;  %vm666_vm2 = vcmask 25600   ;;  %s3293_s13 = smov 12  }
  0x49   : > { %668 = vst.msk [vmem:[#allocation2 + $0x18] sm:$0xff] %vm663_vm1, %v3290_v5  ;;  %v3050_v11 = vld [vmem:[%s3466_s21 + $0x60] sm:$0xff]  ;;  %v3051_v14 = vld [vmem:[%s3466_s21 + $0x68] sm:$0xff]  ;;  %v3624_v15 = vld [vmem:[%s5024_s3] ss:$0 sm:$0xff]  ;;  %vm1030_vm3 = vcmask 64545  }
  0x4a   : > { %2985 = vmatmul.msk.bf16.vlgmr.msra.gmra.mxu0 %vm493_vm0, %v3038_v1  ;;  %2994 = vmatmul.msk.bf16.vlgmr.msra.gmra.mxu3 %vm493_vm0, %v3047_v2  ;;  %669 = vst.msk [vmem:[#allocation2 + $0x20] sm:$0xff] %vm663_vm1, %v3290_v5  ;;  %v3042_v13 = vld [vmem:[%s3466_s21 + $0x20] sm:$0xff]  ;;  %v3043_v20 = vld [vmem:[%s3466_s21 + $0x28] sm:$0xff]  ;;  %v3052_v28 = vld [vmem:[%s3466_s21 + $0x70] sm:$0xff]  ;;  %vm1034_vm4 = vcmask 57376   ;;  %vm1032_vm5 = vcmask 64544  }
  0x4b   : > { %671 = vst.msk [vmem:[#allocation2 + $0x30] sm:$0xff] %vm663_vm1, %v3290_v5  ;;  %v3044_v53 = vld [vmem:[%s3466_s21 + $0x30] sm:$0xff]  ;;  %v3045_v1 = vld [vmem:[%s3466_s21 + $0x38] sm:$0xff]  ;;  %vm1229_vm6 = vcmask 91200   ;;  %vm1227_vm7 = vcmask 97344   ;;  %vm1225_vm8 = vcmask 97346  }
  0x4c   : > { %672 = vst.msk [vmem:[#allocation2 + $0x38] sm:$0xff] %vm663_vm1, %v3290_v5  ;;  %vm1374_vm9 = vcmask 130144   ;;  %s3294_s24 = smov 16   ;;  %vm1552_vm10 = vcmask 162945   ;;  %vm1554_vm11 = vcmask 162944   ;;  %vm1556_vm12 = vcmask 155776  }
  0x4d   : > { %674 = vst.msk [vmem:[#allocation2 + $0x48] sm:$0xff] %vm663_vm1, %v3290_v5  ;;  %s3295_s26 = smov 20   ;;  %s3296_s14 = smov 28   ;;  %vm1747_vm13 = vcmask 195746   ;;  %vm1749_vm14 = vcmask 195744   ;;  %vm1751_vm15 = vcmask 189600  }
  0x4e   : > { %v752_v6 = vld [vmem:[#allocation2] sm:$0xff]  ;;  %675 = vst.msk [vmem:[#allocation2 + $0x50] sm:$0xff] %vm663_vm1, %v3290_v5  ;;  %s3297_s0 = smov 24   ;;  %s3298_s19 = smov 32  }
  0x4f   : > { %886 = vrot.lane.b32.xlu0 %v752_v6, %s3291_s16  ;;  %806 = vst.msk [vmem:[#allocation3] sm:$0xff] %vm663_vm1, %v752_v6  ;;  %v753_v9 = vld [vmem:[#allocation2 + $0x8] sm:$0xff]  ;;  %s3058_s20 = sshll.u32 %s3367_s9, 5  ;;  %s2793_s9 = scalar_lea.sflag [#allocation6], %s3462_s29 }
  0x50   : > { %677 = vst.msk [vmem:[#allocation2 + $0x60] sm:$0xff] %vm663_vm1, %v3290_v5  ;;  %s2804_s18 = scalar_lea.hbm %s5029_s8, %s3058_s20 }
  0x51   : > { %678 = vst.msk [vmem:[#allocation2 + $0x68] sm:$0xff] %vm663_vm1, %v3290_v5  ;;  %s2807_s15 = sshll.u32 %s2804_s18, 4  ;;  %s2808_s15 = int_to_ptr.hbm [resolvable:$true] %s2807_s15 }
  0x52   : > { %680 = vst.msk [vmem:[#allocation2 + $0x78] sm:$0xff] %vm663_vm1, %v3290_v5  ;;  %s3228_s22 = sshra.s32 %s2808_s15, 4  ;;  %s3229_s22 = int_to_ptr.hbm [resolvable:$true] %s3228_s22 }
  0x53   : > { %681 = vst.msk [vmem:[#allocation2 + $0x80] sm:$0xff] %vm663_vm1, %v3290_v5  ;;  %p3235_p10 = scmp.lt.s32.totalorder %s3229_s22, %s5029_s8 }
  0x54   : > { %683 = vst.msk [vmem:[#allocation2 + $0x90] sm:$0xff] %vm663_vm1, %v3290_v5 }
  0x55   : > { %684 = vst.msk [vmem:[#allocation2 + $0x98] sm:$0xff] %vm663_vm1, %v3290_v5 }
  0x56   : > { %686 = vst.msk [vmem:[#allocation2 + $0xa8] sm:$0xff] %vm663_vm1, %v3290_v5 }
  0x57   : > { %687 = vst.msk [vmem:[#allocation2 + $0xb0] sm:$0xff] %vm663_vm1, %v3290_v5  ;;  %888 = vrot.lane.b32.xlu0 %v753_v9, %s3291_s16 }
  0x58   : > { %689 = vst.msk [vmem:[#allocation2 + $0xc0] sm:$0xff] %vm663_vm1, %v3290_v5 }
  0x59   : > { %690 = vst.msk [vmem:[#allocation2 + $0xc8] sm:$0xff] %vm663_vm1, %v3290_v5 }
  0x5a   : > { %2986 = vmatmul.msk.bf16.gmra.mxu0 %vm493_vm0, %v3039_v3  ;;  %2995 = vmatmul.msk.bf16.gmra.mxu3 %vm493_vm0, %v3048_v4  ;;  %692 = vst.msk [vmem:[#allocation2 + $0xd8] sm:$0xff] %vm663_vm1, %v3290_v5 }
  0x5b   : > { %693 = vst.msk [vmem:[#allocation2 + $0xe0] sm:$0xff] %vm663_vm1, %v3290_v5 }
  0x5c   : > { %695 = vst.msk [vmem:[#allocation2 + $0xf0] sm:$0xff] %vm663_vm1, %v3290_v5 }
  0x5d   : > { %696 = vst.msk [vmem:[#allocation2 + $0xf8] sm:$0xff] %vm663_vm1, %v3290_v5 }
  0x5e   : > { %698 = vst.msk [vmem:[#allocation2 + $0x108] sm:$0xff] %vm663_vm1, %v3290_v5 }
  0x5f   : > { %699 = vst.msk [vmem:[#allocation2 + $0x110] sm:$0xff] %vm663_vm1, %v3290_v5  ;;  %1081 = vrot.lane.b32.xlu0 %v752_v6, %s3292_s23 }
  0x60   : > { %701 = vst.msk [vmem:[#allocation2 + $0x120] sm:$0xff] %vm663_vm1, %v3290_v5 }
  0x61   : > { %702 = vst.msk [vmem:[#allocation2 + $0x128] sm:$0xff] %vm663_vm1, %v3290_v5 }
  0x62   : > { %704 = vst.msk [vmem:[#allocation2 + $0x138] sm:$0xff] %vm663_vm1, %v3290_v5 }
  0x63   : > { %705 = vst.msk [vmem:[#allocation2 + $0x140] sm:$0xff] %vm663_vm1, %v3290_v5 }
  0x64   : > { %707 = vst.msk [vmem:[#allocation2 + $0x150] sm:$0xff] %vm663_vm1, %v3290_v5 }
  0x65   : > { %708 = vst.msk [vmem:[#allocation2 + $0x158] sm:$0xff] %vm663_vm1, %v3290_v5 }
  0x66   : > { %710 = vst.msk [vmem:[#allocation2 + $0x168] sm:$0xff] %vm663_vm1, %v3290_v5 }
  0x67   : > { %711 = vst.msk [vmem:[#allocation2 + $0x170] sm:$0xff] %vm663_vm1, %v3290_v5 }
  0x68   : > { %713 = vst.msk [vmem:[#allocation2 + $0x180] sm:$0xff] %vm663_vm1, %v3290_v5 }
  0x69   : > { %714 = vst.msk [vmem:[#allocation2 + $0x188] sm:$0xff] %vm663_vm1, %v3290_v5 }
  0x6a   : > { %2987 = vmatmul.msk.bf16.gmra.mxu0 %vm493_vm0, %v3040_v7  ;;  %2996 = vmatmul.msk.bf16.gmra.mxu3 %vm493_vm0, %v3049_v8  ;;  %716 = vst.msk [vmem:[#allocation2 + $0x198] sm:$0xff] %vm663_vm1, %v3290_v5 }
  0x6b   : > { %717 = vst.msk [vmem:[#allocation2 + $0x1a0] sm:$0xff] %vm663_vm1, %v3290_v5 }
  0x6c   : > { %667 = vst.msk [vmem:[#allocation2 + $0x10] sm:$0x3] %vm666_vm2, %v3290_v5 }
  0x6d   : > { %670 = vst.msk [vmem:[#allocation2 + $0x28] sm:$0x3] %vm666_vm2, %v3290_v5 }
  0x6e   : > { %673 = vst.msk [vmem:[#allocation2 + $0x40] sm:$0x3] %vm666_vm2, %v3290_v5 }
  0x6f   : > { %676 = vst.msk [vmem:[#allocation2 + $0x58] sm:$0x3] %vm666_vm2, %v3290_v5 }
  0x70   : > { %679 = vst.msk [vmem:[#allocation2 + $0x70] sm:$0x3] %vm666_vm2, %v3290_v5 }
  0x71   : > { %682 = vst.msk [vmem:[#allocation2 + $0x88] sm:$0x3] %vm666_vm2, %v3290_v5 }
  0x72   : > { %685 = vst.msk [vmem:[#allocation2 + $0xa0] sm:$0x3] %vm666_vm2, %v3290_v5 }
  0x73   : > { %v754_v12 = vld [vmem:[#allocation2 + $0x10] sm:$0x3]  ;;  %688 = vst.msk [vmem:[#allocation2 + $0xb8] sm:$0x3] %vm666_vm2, %v3290_v5 }
  0x74   : > { %890 = vrot.lane.b32.xlu1 %v754_v12, %s3291_s16  ;;  %691 = vst.msk [vmem:[#allocation2 + $0xd0] sm:$0x3] %vm666_vm2, %v3290_v5  ;;  %1085 = vrot.lane.b32.xlu2 %v754_v12, %s3292_s23 }
  0x75   : > { %694 = vst.msk [vmem:[#allocation2 + $0xe8] sm:$0x3] %vm666_vm2, %v3290_v5 }
  0x76   : > { %697 = vst.msk [vmem:[#allocation2 + $0x100] sm:$0x3] %vm666_vm2, %v3290_v5 }
  0x77   : > { %700 = vst.msk [vmem:[#allocation2 + $0x118] sm:$0x3] %vm666_vm2, %v3290_v5 }
  0x78   : > { %703 = vst.msk [vmem:[#allocation2 + $0x130] sm:$0x3] %vm666_vm2, %v3290_v5 }
  0x79   : > { %706 = vst.msk [vmem:[#allocation2 + $0x148] sm:$0x3] %vm666_vm2, %v3290_v5 }
  0x7a   : > { %2988 = vmatmul.msk.bf16.gmra.mxu0 %vm493_vm0, %v3041_v10  ;;  %2997 = vmatmul.msk.bf16.gmra.mxu3 %vm493_vm0, %v3050_v11  ;;  %709 = vst.msk [vmem:[#allocation2 + $0x160] sm:$0x3] %vm666_vm2, %v3290_v5 }
  0x7b   : > { %712 = vst.msk [vmem:[#allocation2 + $0x178] sm:$0x3] %vm666_vm2, %v3290_v5 }
  0x7c   : > { %715 = vst.msk [vmem:[#allocation2 + $0x190] sm:$0x3] %vm666_vm2, %v3290_v5  ;;  %1083 = vrot.lane.b32.xlu1 %v753_v9, %s3292_s23 }
  0x7d   : > { %718 = vst.msk [vmem:[#allocation2 + $0x1a8] sm:$0x3] %vm666_vm2, %v3290_v5  ;;  %vm1896_vm2 = vcmask 228544  }
  0x7e   : > { %807 = vst.msk [vmem:[#allocation3 + $0x8] sm:$0xff] %vm663_vm1, %v753_v9 }
  0x8a   : > { %2989 = vmatmul.msk.bf16.gmra.mxu0 %vm493_vm0, %v3042_v13  ;;  %2998 = vmatmul.msk.bf16.gmra.mxu3 %vm493_vm0, %v3051_v14  ;;  %v3046_v14 = vld [vmem:[%s3466_s21 + $0x40] sm:$0xff] }
  0x9a   : > { %2990 = vmatmul.msk.bf16.gmra.mxu0 %vm493_vm0, %v3043_v20  ;;  %2999 = vmatmul.msk.bf16.gmra.mxu3 %vm493_vm0, %v3052_v28 }
  0xaa   : > { %2991 = vmatmul.msk.bf16.gmra.mxu0 %vm493_vm0, %v3044_v53 }
  0xba   : > { %2992 = vmatmul.msk.bf16.gmra.mxu0 %vm493_vm0, %v3045_v1 }
  0xc1   : > { %v887_v10 = vpop.permute.xlu0 %886 }
  0xc2   : > { %1031 = vst.msk [vmem:[#allocation3 - $0x1] sm:$0xfe] %vm1030_vm3, %v887_v10 }
  0xc7   : > { %v551_v16 = vpop.f32.mrf.mxu0 }
  0xc8   : > { %v552_v17 = vadd.f32 %v3624_v15, %v551_v16 }
  0xca   : > { %v631_v18 = vmax.f32 %v552_v17, 0.0  ;;  %2993 = vmatmul.msk.bf16.gmra.mxu0 %vm493_vm0, %v3046_v14  ;;  %v889_v17 = vpop.permute.xlu0 %888 }
  0xcb   : > { %1033 = vst.msk [vmem:[#allocation3 + $0x7] sm:$0xff] %vm1032_vm5, %v889_v17 }
  0xcc   : > { %720 = vst.msk [vmem:[#allocation2 + $0x19] sm:$0xff] %vm663_vm1, %v631_v18 }
  0xcd   : > { %v596_v19 = vpop.f32.mrf.mxu3 }
  0xce   : > { %v597_v21 = vadd.f32 %v3624_v15, %v596_v19  ;;  %v1086_v18 = vpop.permute.xlu2 %1085 }
  0xcf   : > { %v553_v22 = vpop.f32.mrf.mxu0 }
  0xd0   : > { %v554_v23 = vadd.f32 %v3624_v15, %v553_v22  ;;  %v649_v24 = vmax.f32 %v597_v21, 0.0 }
  0xd2   : > { %v632_v25 = vmax.f32 %v554_v23, 0.0  ;;  %738 = vst.msk [vmem:[#allocation2 + $0xf1] sm:$0xff] %vm663_vm1, %v649_v24  ;;  %v1082_v22 = vpop.permute.xlu0 %1081 }
  0xd3   : > { %v3633_v26 = vld [vmem:[#allocation2 + $0x18] sm:$0xff]  ;;  %1226 = vst.msk [vmem:[#allocation3 - $0x2] sm:$0xfc] %vm1225_vm8, %v1082_v22 }
  0xd4   : > { %721 = vst.msk [vmem:[#allocation2 + $0x21] sm:$0xff] %vm663_vm1, %v632_v25  ;;  %1087 = vrot.lane.b32.xlu0 %v3633_v26, %s3292_s23  ;;  %892 = vrot.lane.b32.xlu1 %v3633_v26, %s3291_s16 }
  0xd5   : > { %808 = vst.msk [vmem:[#allocation3 + $0x10] sm:$0xff] %vm663_vm1, %v3633_v26  ;;  %v598_v27 = vpop.f32.mrf.mxu3 }
  0xd6   : > { %v599_v29 = vadd.f32 %v3624_v15, %v598_v27 }
  0xd7   : > { %v556_v30 = vpop.f32.mrf.mxu0 }
  0xd8   : > { %v650_v31 = vmax.f32 %v599_v29, 0.0  ;;  %v557_v32 = vadd.f32 %v3624_v15, %v556_v30 }
  0xd9   : > { %v3646_v33 = vld [vmem:[#allocation2 + $0xf0] sm:$0xff] }
  0xda   : > { %739 = vst.msk [vmem:[#allocation2 + $0xf9] sm:$0xff] %vm663_vm1, %v650_v31  ;;  %v633_v34 = vmax.f32 %v557_v32, 0.0 }
  0xdb   : > { %v3649_v35 = vld [vmem:[#allocation2 + $0x20] sm:$0xff]  ;;  %826 = vst.msk [vmem:[#allocation3 + $0xa0] sm:$0xff] %vm663_vm1, %v3646_v33  ;;  %v3668_v43 = vld [vmem:[#allocation2 + $0x28] sm:$0x3] }
  0xdc   : > { %894 = vrot.lane.b32.xlu2 %v3649_v35, %s3291_s16  ;;  %809 = vst.msk [vmem:[#allocation3 + $0x18] sm:$0xff] %vm663_vm1, %v3649_v35  ;;  %1278 = vrot.lane.b32.xlu0 %v3633_v26, %s3293_s13 }
  0xdd   : > { %1089 = vrot.lane.b32.xlu1 %v3649_v35, %s3292_s23  ;;  %722 = vst.msk [vmem:[#allocation2 + $0x31] sm:$0xff] %vm663_vm1, %v633_v34  ;;  %v601_v36 = vpop.f32.mrf.mxu3 }
  0xde   : > { %v602_v37 = vadd.f32 %v3624_v15, %v601_v36 }
  0xdf   : > { %v558_v38 = vpop.f32.mrf.mxu0 }
  0xe0   : > { %v559_v39 = vadd.f32 %v3624_v15, %v558_v38  ;;  %v651_v40 = vmax.f32 %v602_v37, 0.0 }
  0xe1   : > { %v3664_v41 = vld [vmem:[#allocation2 + $0xf8] sm:$0xff]  ;;  %v784_v58 = vld [vmem:[#allocation2 + $0x100] sm:$0x3] }
  0xe2   : > { %v634_v42 = vmax.f32 %v559_v39, 0.0  ;;  %827 = vst.msk [vmem:[#allocation3 + $0xa8] sm:$0xff] %vm663_vm1, %v3664_v41 }
  0xe3   : > { %740 = vst.msk [vmem:[#allocation2 + $0x109] sm:$0xff] %vm663_vm1, %v651_v40 }
  0xe4   : > { %896 = vrot.lane.b32.xlu2 %v3668_v43, %s3291_s16  ;;  %946 = vrot.lane.b32.xlu0 %v3646_v33, %s3291_s16  ;;  %723 = vst.msk [vmem:[#allocation2 + $0x39] sm:$0xff] %vm663_vm1, %v634_v42  ;;  %v3676_v44 = vld [vmem:[#allocation2 + $0x30] sm:$0xff] }
  0xe5   : > { %1280 = vrot.lane.b32.xlu1 %v3649_v35, %s3293_s13  ;;  %810 = vst.msk [vmem:[#allocation3 + $0x20] sm:$0xff] %vm663_vm1, %v3676_v44  ;;  %v603_v45 = vpop.f32.mrf.mxu3 }
  0xe6   : > { %v604_v46 = vadd.f32 %v3624_v15, %v603_v45  ;;  %v891_v16 = vpop.permute.xlu1 %890 }
  0xe7   : > { %v561_v47 = vpop.f32.mrf.mxu0  ;;  %1035 = vst.msk [vmem:[#allocation3 + $0xf] sm:$0x1] %vm1034_vm4, %v891_v16 }
  0xe8   : > { %v652_v48 = vmax.f32 %v604_v46, 0.0  ;;  %v562_v49 = vadd.f32 %v3624_v15, %v561_v47  ;;  %1230 = vst.msk [vmem:[#allocation3 + $0xe] sm:$0x3] %vm1229_vm6, %v1086_v18 }
  0xea   : > { %741 = vst.msk [vmem:[#allocation2 + $0x111] sm:$0xff] %vm663_vm1, %v652_v48  ;;  %v3685_v50 = vld [vmem:[#allocation2 + $0x108] sm:$0xff]  ;;  %v635_v51 = vmax.f32 %v562_v49, 0.0 }
  0xeb   : > { %v3687_v52 = vld [vmem:[#allocation2 + $0x38] sm:$0xff]  ;;  %828 = vst.msk [vmem:[#allocation3 + $0xb0] sm:$0xff] %vm663_vm1, %v3685_v50  ;;  %v3740_v7 = vld [vmem:[#allocation2 + $0x40] sm:$0x3] }
  0xec   : > { %1091 = vrot.lane.b32.xlu2 %v3668_v43, %s3292_s23  ;;  %1141 = vrot.lane.b32.xlu0 %v3646_v33, %s3292_s23  ;;  %811 = vst.msk [vmem:[#allocation3 + $0x28] sm:$0xff] %vm663_vm1, %v3687_v52 }
  0xed   : > { %948 = vrot.lane.b32.xlu1 %v3664_v41, %s3291_s16  ;;  %724 = vst.msk [vmem:[#allocation2 + $0x49] sm:$0xff] %vm663_vm1, %v635_v51  ;;  %v606_v59 = vpop.f32.mrf.mxu3 }
  0xee   : > { %v607_v60 = vadd.f32 %v3624_v15, %v606_v59  ;;  %v1084_v21 = vpop.permute.xlu1 %1083 }
  0xef   : > { %v563_v54 = vpop.f32.mrf.mxu0  ;;  %1228 = vst.msk [vmem:[#allocation3 + $0x6] sm:$0xff] %vm1227_vm7, %v1084_v21 }
  0xf0   : > { %v564_v55 = vadd.f32 %v3624_v15, %v563_v54  ;;  %v653_v61 = vmax.f32 %v607_v60, 0.0 }
  0xf1   : > { %v3703_v56 = vld [vmem:[#allocation2 + $0x110] sm:$0xff]  ;;  %v3770_v19 = vld [vmem:[#allocation2 + $0x118] sm:$0x3] }
  0xf2   : > { %829 = vst.msk [vmem:[#allocation3 + $0xb8] sm:$0xff] %vm663_vm1, %v3703_v56  ;;  %v636_v57 = vmax.f32 %v564_v55, 0.0 }
  0xf3   : > { %742 = vst.msk [vmem:[#allocation2 + $0x121] sm:$0xff] %vm663_vm1, %v653_v61 }
  0xf4   : > { %950 = vrot.lane.b32.xlu2 %v784_v58, %s3291_s16  ;;  %898 = vrot.lane.b32.xlu0 %v3676_v44, %s3291_s16  ;;  %725 = vst.msk [vmem:[#allocation2 + $0x51] sm:$0xff] %vm663_vm1, %v636_v57  ;;  %v3718_v62 = vld [vmem:[#allocation2 + $0x48] sm:$0xff] }
  0xf5   : > { %1143 = vrot.lane.b32.xlu1 %v3664_v41, %s3292_s23  ;;  %812 = vst.msk [vmem:[#allocation3 + $0x30] sm:$0xff] %vm663_vm1, %v3718_v62  ;;  %v608_v0 = vpop.f32.mrf.mxu3 }
  0xf6   : > { %v609_v2 = vadd.f32 %v3624_v15, %v608_v0 }
  0xf7   : > { %v566_v4 = vpop.f32.mrf.mxu0 }
  0xf8   : > { %v654_v3 = vmax.f32 %v609_v2, 0.0  ;;  %v567_v5 = vadd.f32 %v3624_v15, %v566_v4  ;;  %v3053_v4 = vld [vmem:[%s3466_s21 + $0x78] sm:$0xff] }
  0xf9   : > { %3000 = vmatmul.msk.bf16.gmra.mxu3 %vm493_vm0, %v3053_v4  ;;  %vm2537_vm0 = vcmask 1041408  }
  0xfa   : > { %743 = vst.msk [vmem:[#allocation2 + $0x129] sm:$0xff] %vm663_vm1, %v654_v3  ;;  %v637_v6 = vmax.f32 %v567_v5, 0.0  ;;  %v3746_v8 = vld [vmem:[#allocation2 + $0x120] sm:$0xff] }
  0xfb   : > { %v3720_v63 = vld [vmem:[#allocation2 + $0x50] sm:$0xff]  ;;  %830 = vst.msk [vmem:[#allocation3 + $0xc0] sm:$0xff] %vm663_vm1, %v3746_v8  ;;  %v3797_v30 = vld [vmem:[#allocation2 + $0x58] sm:$0x3] }
  0xfc   : > { %1145 = vrot.lane.b32.xlu2 %v784_v58, %s3292_s23  ;;  %1093 = vrot.lane.b32.xlu0 %v3676_v44, %s3292_s23  ;;  %813 = vst.msk [vmem:[#allocation3 + $0x38] sm:$0xff] %vm663_vm1, %v3720_v63 }
  0xfd   : > { %900 = vrot.lane.b32.xlu1 %v3687_v52, %s3291_s16  ;;  %726 = vst.msk [vmem:[#allocation2 + $0x61] sm:$0xff] %vm663_vm1, %v637_v6  ;;  %v611_v24 = vpop.f32.mrf.mxu3 }
  0xfe   : > { %v612_v25 = vadd.f32 %v3624_v15, %v611_v24 }
  0xff   : > { %v568_v11 = vpop.f32.mrf.mxu0 }
 0x100   : > { %v569_v12 = vadd.f32 %v3624_v15, %v568_v11  ;;  %v655_v27 = vmax.f32 %v612_v25, 0.0 }
 0x101   : > { %v3748_v9 = vld [vmem:[#allocation2 + $0x128] sm:$0xff]  ;;  %v3833_v49 = vld [vmem:[#allocation2 + $0x130] sm:$0x3] }
 0x102   : > { %831 = vst.msk [vmem:[#allocation3 + $0xc8] sm:$0xff] %vm663_vm1, %v3748_v9  ;;  %v638_v13 = vmax.f32 %v569_v12, 0.0 }
 0x103   : > { %744 = vst.msk [vmem:[#allocation2 + $0x139] sm:$0xff] %vm663_vm1, %v655_v27 }
 0x104   : > { %1282 = vrot.lane.b32.xlu2 %v3676_v44, %s3293_s13  ;;  %952 = vrot.lane.b32.xlu0 %v3685_v50, %s3291_s16  ;;  %727 = vst.msk [vmem:[#allocation2 + $0x69] sm:$0xff] %vm663_vm1, %v638_v13  ;;  %v3776_v20 = vld [vmem:[#allocation2 + $0x60] sm:$0xff] }
 0x105   : > { %1095 = vrot.lane.b32.xlu1 %v3687_v52, %s3292_s23  ;;  %814 = vst.msk [vmem:[#allocation3 + $0x40] sm:$0xff] %vm663_vm1, %v3776_v20  ;;  %v613_v28 = vpop.f32.mrf.mxu3 }
 0x106   : > { %v614_v29 = vadd.f32 %v3624_v15, %v613_v28 }
 0x107   : > { %v571_v32 = vpop.f32.mrf.mxu0 }
 0x108   : > { %v656_v31 = vmax.f32 %v614_v29, 0.0  ;;  %v572_v34 = vadd.f32 %v3624_v15, %v571_v32 }
 0x10a   : > { %745 = vst.msk [vmem:[#allocation2 + $0x141] sm:$0xff] %vm663_vm1, %v656_v31  ;;  %v639_v36 = vmax.f32 %v572_v34, 0.0  ;;  %v3811_v37 = vld [vmem:[#allocation2 + $0x138] sm:$0xff] }
 0x10b   : > { %v3782_v23 = vld [vmem:[#allocation2 + $0x68] sm:$0xff]  ;;  %832 = vst.msk [vmem:[#allocation3 + $0xd0] sm:$0xff] %vm663_vm1, %v3811_v37  ;;  %v3866_v6 = vld [vmem:[#allocation2 + $0x70] sm:$0x3] }
 0x10c   : > { %902 = vrot.lane.b32.xlu2 %v3740_v7, %s3291_s16  ;;  %1147 = vrot.lane.b32.xlu0 %v3685_v50, %s3292_s23  ;;  %815 = vst.msk [vmem:[#allocation3 + $0x48] sm:$0xff] %vm663_vm1, %v3782_v23 }
 0x10d   : > { %954 = vrot.lane.b32.xlu1 %v3703_v56, %s3291_s16  ;;  %728 = vst.msk [vmem:[#allocation2 + $0x79] sm:$0xff] %vm663_vm1, %v639_v36  ;;  %v616_v47 = vpop.f32.mrf.mxu3 }
 0x10e   : > { %v617_v48 = vadd.f32 %v3624_v15, %v616_v47 }
 0x10f   : > { %v573_v40 = vpop.f32.mrf.mxu0 }
 0x110   : > { %v574_v42 = vadd.f32 %v3624_v15, %v573_v40  ;;  %v657_v51 = vmax.f32 %v617_v48, 0.0 }
 0x111   : > { %v3817_v38 = vld [vmem:[#allocation2 + $0x140] sm:$0xff]  ;;  %v3899_v29 = vld [vmem:[#allocation2 + $0x148] sm:$0x3] }
 0x112   : > { %833 = vst.msk [vmem:[#allocation3 + $0xd8] sm:$0xff] %vm663_vm1, %v3817_v38  ;;  %v640_v45 = vmax.f32 %v574_v42, 0.0 }
 0x113   : > { %746 = vst.msk [vmem:[#allocation2 + $0x151] sm:$0xff] %vm663_vm1, %v657_v51 }
 0x114   : > { %1097 = vrot.lane.b32.xlu2 %v3740_v7, %s3292_s23  ;;  %1284 = vrot.lane.b32.xlu0 %v3687_v52, %s3293_s13  ;;  %729 = vst.msk [vmem:[#allocation2 + $0x81] sm:$0xff] %vm663_vm1, %v640_v45  ;;  %v3839_v53 = vld [vmem:[#allocation2 + $0x78] sm:$0xff] }
 0x115   : > { %1149 = vrot.lane.b32.xlu1 %v3703_v56, %s3292_s23  ;;  %816 = vst.msk [vmem:[#allocation3 + $0x50] sm:$0xff] %vm663_vm1, %v3839_v53  ;;  %v618_v59 = vpop.f32.mrf.mxu3 }
 0x116   : > { %v619_v60 = vadd.f32 %v3624_v15, %v618_v59 }
 0x117   : > { %v576_v3 = vpop.f32.mrf.mxu0 }
 0x118   : > { %v658_v61 = vmax.f32 %v619_v60, 0.0  ;;  %v577_v5 = vadd.f32 %v3624_v15, %v576_v3 }
 0x11a   : > { %747 = vst.msk [vmem:[#allocation2 + $0x159] sm:$0xff] %vm663_vm1, %v658_v61  ;;  %v641_v10 = vmax.f32 %v577_v5, 0.0  ;;  %v3873_v11 = vld [vmem:[#allocation2 + $0x150] sm:$0xff] }
 0x11b   : > { %v3847_v58 = vld [vmem:[#allocation2 + $0x80] sm:$0xff]  ;;  %834 = vst.msk [vmem:[#allocation3 + $0xe0] sm:$0xff] %vm663_vm1, %v3873_v11  ;;  %v3950_v4 = vld [vmem:[#allocation2 + $0x88] sm:$0x3] }
 0x11c   : > { %956 = vrot.lane.b32.xlu2 %v3770_v19, %s3291_s16  ;;  %904 = vrot.lane.b32.xlu0 %v3718_v62, %s3291_s16  ;;  %817 = vst.msk [vmem:[#allocation3 + $0x58] sm:$0xff] %vm663_vm1, %v3847_v58 }
 0x11d   : > { %1286 = vrot.lane.b32.xlu1 %v3718_v62, %s3293_s13  ;;  %730 = vst.msk [vmem:[#allocation2 + $0x91] sm:$0xff] %vm663_vm1, %v641_v10  ;;  %v621_v27 = vpop.f32.mrf.mxu3 }
 0x11e   : > { %v622_v28 = vadd.f32 %v3624_v15, %v621_v27 }
 0x11f   : > { %v578_v17 = vpop.f32.mrf.mxu0 }
 0x120   : > { %v579_v18 = vadd.f32 %v3624_v15, %v578_v17  ;;  %v659_v31 = vmax.f32 %v622_v28, 0.0 }
 0x121   : > { %v3880_v14 = vld [vmem:[#allocation2 + $0x158] sm:$0xff] }
 0x122   : > { %835 = vst.msk [vmem:[#allocation3 + $0xe8] sm:$0xff] %vm663_vm1, %v3880_v14  ;;  %v642_v21 = vmax.f32 %v579_v18, 0.0 }
 0x123   : > { %748 = vst.msk [vmem:[#allocation2 + $0x169] sm:$0xff] %vm663_vm1, %v659_v31 }
 0x124   : > { %1151 = vrot.lane.b32.xlu2 %v3770_v19, %s3292_s23  ;;  %1099 = vrot.lane.b32.xlu0 %v3718_v62, %s3292_s23  ;;  %731 = vst.msk [vmem:[#allocation2 + $0x99] sm:$0xff] %vm663_vm1, %v642_v21  ;;  %v3905_v32 = vld [vmem:[#allocation2 + $0x90] sm:$0xff] }
 0x125   : > { %906 = vrot.lane.b32.xlu1 %v3720_v63, %s3291_s16  ;;  %818 = vst.msk [vmem:[#allocation3 + $0x60] sm:$0xff] %vm663_vm1, %v3905_v32  ;;  %v623_v42 = vpop.f32.mrf.mxu3 }
 0x126   : > { %v624_v45 = vadd.f32 %v3624_v15, %v623_v42 }
 0x12a   : > { %v3935_v59 = vld [vmem:[#allocation2 + $0x168] sm:$0xff] }
 0x12b   : > { %v3913_v40 = vld [vmem:[#allocation2 + $0x98] sm:$0xff]  ;;  %836 = vst.msk [vmem:[#allocation3 + $0xf0] sm:$0xff] %vm663_vm1, %v3935_v59 }
 0x12c   : > { %908 = vrot.lane.b32.xlu2 %v3797_v30, %s3291_s16  ;;  %958 = vrot.lane.b32.xlu0 %v3746_v8, %s3291_s16  ;;  %819 = vst.msk [vmem:[#allocation3 + $0x68] sm:$0xff] %vm663_vm1, %v3913_v40 }
 0x12d   : > { %1101 = vrot.lane.b32.xlu1 %v3720_v63, %s3292_s23 }
 0x134   : > { %1103 = vrot.lane.b32.xlu2 %v3797_v30, %s3292_s23  ;;  %1153 = vrot.lane.b32.xlu0 %v3746_v8, %s3292_s23 }
 0x135   : > { %960 = vrot.lane.b32.xlu1 %v3748_v9, %s3291_s16 }
 0x136   : > { %v895_v39 = vpop.permute.xlu2 %894 }
 0x137   : > { %1037 = vst.msk [vmem:[#allocation3 + $0x17] sm:$0xff] %vm1032_vm5, %v895_v39 }
 0x13c   : > { %1288 = vrot.lane.b32.xlu2 %v3720_v63, %s3293_s13  ;;  %910 = vrot.lane.b32.xlu0 %v3776_v20, %s3291_s16 }
 0x13d   : > { %1155 = vrot.lane.b32.xlu1 %v3748_v9, %s3292_s23 }
 0x13e   : > { %v897_v46 = vpop.permute.xlu2 %896 }
 0x13f   : > { %1038 = vst.msk [vmem:[#allocation3 + $0x1f] sm:$0x1] %vm1034_vm4, %v897_v46  ;;  %v660_v46 = vmax.f32 %v624_v45, 0.0 }
 0x141   : > { %749 = vst.msk [vmem:[#allocation2 + $0x171] sm:$0xff] %vm663_vm1, %v660_v46 }
 0x144   : > { %962 = vrot.lane.b32.xlu2 %v3833_v49, %s3291_s16  ;;  %1105 = vrot.lane.b32.xlu0 %v3776_v20, %s3292_s23 }
 0x145   : > { %912 = vrot.lane.b32.xlu1 %v3782_v23, %s3291_s16 }
 0x146   : > { %v1092_v54 = vpop.permute.xlu2 %1091  ;;  %v1088_v55 = vpop.permute.xlu0 %1087 }
 0x147   : > { %1233 = vst.msk [vmem:[#allocation3 + $0x1e] sm:$0x3] %vm1229_vm6, %v1092_v54  ;;  %v893_v57 = vpop.permute.xlu1 %892  ;;  %v581_v54 = vpop.f32.mrf.mxu0 }
 0x148   : > { %1036 = vst.msk [vmem:[#allocation3 + $0xf] sm:$0xfe] %vm1030_vm3, %v893_v57 }
 0x149   : > { %1231 = vst.msk [vmem:[#allocation3 + $0xe] sm:$0xfc] %vm1225_vm8, %v1088_v55  ;;  %v582_v55 = vadd.f32 %v3624_v15, %v581_v54 }
 0x14b   : > { %v643_v57 = vmax.f32 %v582_v55, 0.0 }
 0x14c   : > { %1157 = vrot.lane.b32.xlu2 %v3833_v49, %s3292_s23  ;;  %1290 = vrot.lane.b32.xlu0 %v3776_v20, %s3293_s13 }
 0x14d   : > { %1107 = vrot.lane.b32.xlu1 %v3782_v23, %s3292_s23  ;;  %732 = vst.msk [vmem:[#allocation2 + $0xa9] sm:$0xff] %vm663_vm1, %v643_v57 }
 0x14e   : > { %v951_v0 = vpop.permute.xlu2 %950  ;;  %v1279_v1 = vpop.permute.xlu0 %1278 }
 0x14f   : > { %1065 = vst.msk [vmem:[#allocation3 + $0xaf] sm:$0x1] %vm1034_vm4, %v951_v0  ;;  %v1090_v2 = vpop.permute.xlu1 %1089 }
 0x150   : > { %1375 = vst.msk [vmem:[#allocation3] sm:$0xff] %vm1374_vm9, %v1279_v1  ;;  %v3943_v1 = vld [vmem:[#allocation2 + $0x170] sm:$0xff] }
 0x151   : > { %1232 = vst.msk [vmem:[#allocation3 + $0x16] sm:$0xff] %vm1227_vm7, %v1090_v2  ;;  %v583_v2 = vpop.f32.mrf.mxu0 }
 0x152   : > { %v584_v3 = vadd.f32 %v3624_v15, %v583_v2  ;;  %837 = vst.msk [vmem:[#allocation3 + $0xf8] sm:$0xff] %vm663_vm1, %v3943_v1 }
 0x154   : > { %914 = vrot.lane.b32.xlu2 %v3866_v6, %s3291_s16  ;;  %964 = vrot.lane.b32.xlu0 %v3811_v37, %s3291_s16  ;;  %v644_v5 = vmax.f32 %v584_v3, 0.0  ;;  %v3967_v21 = vld [vmem:[#allocation2 + $0xa8] sm:$0xff] }
 0x155   : > { %1292 = vrot.lane.b32.xlu1 %v3782_v23, %s3293_s13  ;;  %820 = vst.msk [vmem:[#allocation3 + $0x70] sm:$0xff] %vm663_vm1, %v3967_v21 }
 0x156   : > { %v1146_v12 = vpop.permute.xlu2 %1145  ;;  %v947_v13 = vpop.permute.xlu0 %946  ;;  %733 = vst.msk [vmem:[#allocation2 + $0xb1] sm:$0xff] %vm663_vm1, %v644_v5 }
 0x157   : > { %1063 = vst.msk [vmem:[#allocation3 + $0x9f] sm:$0xfe] %vm1030_vm3, %v947_v13  ;;  %v1281_v16 = vpop.permute.xlu1 %1280 }
 0x158   : > { %1376 = vst.msk [vmem:[#allocation3 + $0x8] sm:$0xff] %vm1374_vm9, %v1281_v16 }
 0x159   : > { %v586_v16 = vpop.f32.mrf.mxu0 }
 0x15a   : > { %v587_v17 = vadd.f32 %v3624_v15, %v586_v16 }
 0x15c   : > { %1109 = vrot.lane.b32.xlu2 %v3866_v6, %s3292_s23  ;;  %1159 = vrot.lane.b32.xlu0 %v3811_v37, %s3292_s23  ;;  %v645_v18 = vmax.f32 %v587_v17, 0.0 }
 0x15d   : > { %966 = vrot.lane.b32.xlu1 %v3817_v38, %s3291_s16  ;;  %v3975_v27 = vld [vmem:[#allocation2 + $0xb0] sm:$0xff] }
 0x15e   : > { %v1283_v22 = vpop.permute.xlu2 %1282  ;;  %v1142_v24 = vpop.permute.xlu0 %1141  ;;  %734 = vst.msk [vmem:[#allocation2 + $0xc1] sm:$0xff] %vm663_vm1, %v645_v18 }
 0x15f   : > { %1377 = vst.msk [vmem:[#allocation3 + $0x10] sm:$0xff] %vm1374_vm9, %v1283_v22  ;;  %v949_v25 = vpop.permute.xlu1 %948 }
 0x160   : > { %1258 = vst.msk [vmem:[#allocation3 + $0x9e] sm:$0xfc] %vm1225_vm8, %v1142_v24 }
 0x161   : > { %1064 = vst.msk [vmem:[#allocation3 + $0xa7] sm:$0xff] %vm1032_vm5, %v949_v25  ;;  %v588_v28 = vpop.f32.mrf.mxu0 }
 0x162   : > { %1260 = vst.msk [vmem:[#allocation3 + $0xae] sm:$0x3] %vm1229_vm6, %v1146_v12  ;;  %v589_v31 = vadd.f32 %v3624_v15, %v588_v28 }
 0x163   : > { %821 = vst.msk [vmem:[#allocation3 + $0x78] sm:$0xff] %vm663_vm1, %v3975_v27 }
 0x164   : > { %968 = vrot.lane.b32.xlu2 %v3899_v29, %s3291_s16  ;;  %916 = vrot.lane.b32.xlu0 %v3839_v53, %s3291_s16 }
 0x165   : > { %1161 = vrot.lane.b32.xlu1 %v3817_v38, %s3292_s23 }
 0x166   : > { %v903_v34 = vpop.permute.xlu2 %902  ;;  %v899_v36 = vpop.permute.xlu0 %898 }
 0x167   : > { %1041 = vst.msk [vmem:[#allocation3 + $0x2f] sm:$0x1] %vm1034_vm4, %v903_v34  ;;  %v1144_v39 = vpop.permute.xlu1 %1143  ;;  %v3982_v34 = vld [vmem:[#allocation2 + $0x160] sm:$0x3] }
 0x168   : > { %1039 = vst.msk [vmem:[#allocation3 + $0x1f] sm:$0xfe] %vm1030_vm3, %v899_v36  ;;  %v646_v36 = vmax.f32 %v589_v31, 0.0 }
 0x169   : > { %1259 = vst.msk [vmem:[#allocation3 + $0xa6] sm:$0xff] %vm1227_vm7, %v1144_v39  ;;  %v591_v46 = vpop.f32.mrf.mxu0 }
 0x16a   : > { %735 = vst.msk [vmem:[#allocation2 + $0xc9] sm:$0xff] %vm663_vm1, %v646_v36  ;;  %v592_v57 = vadd.f32 %v3624_v15, %v591_v46 }
 0x16c   : > { %1163 = vrot.lane.b32.xlu2 %v3899_v29, %s3292_s23  ;;  %1111 = vrot.lane.b32.xlu0 %v3839_v53, %s3292_s23  ;;  %v647_v2 = vmax.f32 %v592_v57, 0.0 }
 0x16d   : > { %918 = vrot.lane.b32.xlu1 %v3847_v58, %s3291_s16 }
 0x16e   : > { %v1098_v47 = vpop.permute.xlu2 %1097  ;;  %v1094_v48 = vpop.permute.xlu0 %1093  ;;  %736 = vst.msk [vmem:[#allocation2 + $0xd9] sm:$0xff] %vm663_vm1, %v647_v2 }
 0x16f   : > { %1234 = vst.msk [vmem:[#allocation3 + $0x1e] sm:$0xfc] %vm1225_vm8, %v1094_v48  ;;  %v901_v51 = vpop.permute.xlu1 %900 }
 0x170   : > { %1040 = vst.msk [vmem:[#allocation3 + $0x27] sm:$0xff] %vm1032_vm5, %v901_v51 }
 0x171   : > { %1236 = vst.msk [vmem:[#allocation3 + $0x2e] sm:$0x3] %vm1229_vm6, %v1098_v47  ;;  %v3997_v47 = vld [vmem:[#allocation2 + $0xc0] sm:$0xff]  ;;  %v4003_v48 = vld [vmem:[#allocation2 + $0xc8] sm:$0xff] }
 0x172   : > { %822 = vst.msk [vmem:[#allocation3 + $0x80] sm:$0xff] %vm663_vm1, %v3997_v47 }
 0x173   : > { %823 = vst.msk [vmem:[#allocation3 + $0x88] sm:$0xff] %vm663_vm1, %v4003_v48 }
 0x174   : > { %1294 = vrot.lane.b32.xlu2 %v3839_v53, %s3293_s13  ;;  %970 = vrot.lane.b32.xlu0 %v3873_v11, %s3291_s16 }
 0x175   : > { %1113 = vrot.lane.b32.xlu1 %v3847_v58, %s3292_s23 }
 0x176   : > { %v957_v60 = vpop.permute.xlu2 %956  ;;  %v953_v61 = vpop.permute.xlu0 %952 }
 0x177   : > { %1068 = vst.msk [vmem:[#allocation3 + $0xbf] sm:$0x1] %vm1034_vm4, %v957_v60  ;;  %v1096_v0 = vpop.permute.xlu1 %1095  ;;  %v593_v60 = vpop.f32.mrf.mxu0 }
 0x178   : > { %1066 = vst.msk [vmem:[#allocation3 + $0xaf] sm:$0xfe] %vm1030_vm3, %v953_v61  ;;  %v594_v61 = vadd.f32 %v3624_v15, %v593_v60 }
 0x179   : > { %1235 = vst.msk [vmem:[#allocation3 + $0x26] sm:$0xff] %vm1227_vm7, %v1096_v0  ;;  %v4013_v0 = vld [vmem:[#allocation2 + $0xa0] sm:$0x3] }
 0x17a   : > { %v648_v3 = vmax.f32 %v594_v61, 0.0  ;;  %v4082_v61 = vld [vmem:[#allocation2 + $0xd0] sm:$0x3] }
 0x17c   : > { %920 = vrot.lane.b32.xlu2 %v3950_v4, %s3291_s16  ;;  %1165 = vrot.lane.b32.xlu0 %v3873_v11, %s3292_s23  ;;  %737 = vst.msk [vmem:[#allocation2 + $0xe1] sm:$0xff] %vm663_vm1, %v648_v3 }
 0x17d   : > { %972 = vrot.lane.b32.xlu1 %v3880_v14, %s3291_s16 }
 0x17e   : > { %v1152_v10 = vpop.permute.xlu2 %1151  ;;  %v1148_v12 = vpop.permute.xlu0 %1147 }
 0x17f   : > { %1261 = vst.msk [vmem:[#allocation3 + $0xae] sm:$0xfc] %vm1225_vm8, %v1148_v12  ;;  %v955_v13 = vpop.permute.xlu1 %954 }
 0x180   : > { %1067 = vst.msk [vmem:[#allocation3 + $0xb7] sm:$0xff] %vm1032_vm5, %v955_v13  ;;  %v4030_v13 = vld [vmem:[#allocation2 + $0xd8] sm:$0xff] }
 0x181   : > { %1263 = vst.msk [vmem:[#allocation3 + $0xbe] sm:$0x3] %vm1229_vm6, %v1152_v10 }
 0x182   : > { %824 = vst.msk [vmem:[#allocation3 + $0x90] sm:$0xff] %vm663_vm1, %v4030_v13 }
 0x183   : > { %v4036_v16 = vld [vmem:[#allocation2 + $0xe0] sm:$0xff] }
 0x184   : > { %1115 = vrot.lane.b32.xlu2 %v3950_v4, %s3292_s23  ;;  %922 = vrot.lane.b32.xlu0 %v3905_v32, %s3291_s16  ;;  %825 = vst.msk [vmem:[#allocation3 + $0x98] sm:$0xff] %vm663_vm1, %v4036_v16 }
 0x185   : > { %1167 = vrot.lane.b32.xlu1 %v3880_v14, %s3292_s23 }
 0x186   : > { %v909_v22 = vpop.permute.xlu2 %908  ;;  %v1285_v24 = vpop.permute.xlu0 %1284 }
 0x187   : > { %1044 = vst.msk [vmem:[#allocation3 + $0x3f] sm:$0x1] %vm1034_vm4, %v909_v22  ;;  %v1150_v25 = vpop.permute.xlu1 %1149 }
 0x188   : > { %1378 = vst.msk [vmem:[#allocation3 + $0x18] sm:$0xff] %vm1374_vm9, %v1285_v24  ;;  %v4043_v24 = vld [vmem:[#allocation2 + $0x178] sm:$0x3] }
 0x189   : > { %1262 = vst.msk [vmem:[#allocation3 + $0xb6] sm:$0xff] %vm1227_vm7, %v1150_v25 }
 0x18c   : > { %974 = vrot.lane.b32.xlu2 %v3982_v34, %s3291_s16  ;;  %1117 = vrot.lane.b32.xlu0 %v3905_v32, %s3292_s23 }
 0x18d   : > { %924 = vrot.lane.b32.xlu1 %v3913_v40, %s3291_s16 }
 0x18e   : > { %v1104_v39 = vpop.permute.xlu2 %1103  ;;  %v905_v42 = vpop.permute.xlu0 %904 }
 0x18f   : > { %1042 = vst.msk [vmem:[#allocation3 + $0x2f] sm:$0xfe] %vm1030_vm3, %v905_v42  ;;  %v1287_v45 = vpop.permute.xlu1 %1286 }
 0x190   : > { %1379 = vst.msk [vmem:[#allocation3 + $0x20] sm:$0xff] %vm1374_vm9, %v1287_v45  ;;  %v4063_v45 = vld [vmem:[#allocation2 + $0xb8] sm:$0x3] }
 0x194   : > { %1169 = vrot.lane.b32.xlu2 %v3982_v34, %s3292_s23  ;;  %976 = vrot.lane.b32.xlu0 %v3935_v59, %s3291_s16 }
 0x195   : > { %1119 = vrot.lane.b32.xlu1 %v3913_v40, %s3292_s23 }
 0x196   : > { %v1289_v51 = vpop.permute.xlu2 %1288  ;;  %v1100_v54 = vpop.permute.xlu0 %1099 }
 0x197   : > { %1380 = vst.msk [vmem:[#allocation3 + $0x28] sm:$0xff] %vm1374_vm9, %v1289_v51  ;;  %v907_v55 = vpop.permute.xlu1 %906 }
 0x198   : > { %1237 = vst.msk [vmem:[#allocation3 + $0x2e] sm:$0xfc] %vm1225_vm8, %v1100_v54 }
 0x199   : > { %1043 = vst.msk [vmem:[#allocation3 + $0x37] sm:$0xff] %vm1032_vm5, %v907_v55 }
 0x19a   : > { %1239 = vst.msk [vmem:[#allocation3 + $0x3e] sm:$0x3] %vm1229_vm6, %v1104_v39 }
 0x19c   : > { %926 = vrot.lane.b32.xlu2 %v4013_v0, %s3291_s16  ;;  %1171 = vrot.lane.b32.xlu0 %v3935_v59, %s3292_s23 }
 0x19d   : > { %978 = vrot.lane.b32.xlu1 %v3943_v1, %s3291_s16 }
 0x19e   : > { %v963_v5 = vpop.permute.xlu2 %962  ;;  %v959_v10 = vpop.permute.xlu0 %958 }
 0x19f   : > { %1071 = vst.msk [vmem:[#allocation3 + $0xcf] sm:$0x1] %vm1034_vm4, %v963_v5  ;;  %v1102_v12 = vpop.permute.xlu1 %1101 }
 0x1a0   : > { %1069 = vst.msk [vmem:[#allocation3 + $0xbf] sm:$0xfe] %vm1030_vm3, %v959_v10 }
 0x1a1   : > { %1238 = vst.msk [vmem:[#allocation3 + $0x36] sm:$0xff] %vm1227_vm7, %v1102_v12 }
 0x1a4   : > { %1121 = vrot.lane.b32.xlu2 %v4013_v0, %s3292_s23  ;;  %928 = vrot.lane.b32.xlu0 %v3967_v21, %s3291_s16 }
 0x1a5   : > { %1173 = vrot.lane.b32.xlu1 %v3943_v1, %s3292_s23 }
 0x1a6   : > { %v1158_v17 = vpop.permute.xlu2 %1157  ;;  %v1154_v18 = vpop.permute.xlu0 %1153 }
 0x1a7   : > { %1264 = vst.msk [vmem:[#allocation3 + $0xbe] sm:$0xfc] %vm1225_vm8, %v1154_v18  ;;  %v961_v22 = vpop.permute.xlu1 %960  ;;  %v626_v18 = vpop.f32.mrf.mxu3 }
 0x1a8   : > { %1070 = vst.msk [vmem:[#allocation3 + $0xc7] sm:$0xff] %vm1032_vm5, %v961_v22  ;;  %v627_v22 = vadd.f32 %v3624_v15, %v626_v18 }
 0x1a9   : > { %1266 = vst.msk [vmem:[#allocation3 + $0xce] sm:$0x3] %vm1229_vm6, %v1158_v17 }
 0x1ac   : > { %980 = vrot.lane.b32.xlu2 %v4043_v24, %s3291_s16  ;;  %1123 = vrot.lane.b32.xlu0 %v3967_v21, %s3292_s23 }
 0x1ad   : > { %930 = vrot.lane.b32.xlu1 %v3975_v27, %s3291_s16 }
 0x1ae   : > { %v915_v25 = vpop.permute.xlu2 %914  ;;  %v911_v28 = vpop.permute.xlu0 %910 }
 0x1af   : > { %1047 = vst.msk [vmem:[#allocation3 + $0x4f] sm:$0x1] %vm1034_vm4, %v915_v25  ;;  %v1156_v31 = vpop.permute.xlu1 %1155  ;;  %v661_v25 = vmax.f32 %v627_v22, 0.0 }
 0x1b0   : > { %1045 = vst.msk [vmem:[#allocation3 + $0x3f] sm:$0xfe] %vm1030_vm3, %v911_v28 }
 0x1b1   : > { %1265 = vst.msk [vmem:[#allocation3 + $0xc6] sm:$0xff] %vm1227_vm7, %v1156_v31 }
 0x1b2   : > { %750 = vst.msk [vmem:[#allocation2 + $0x181] sm:$0xff] %vm663_vm1, %v661_v25 }
 0x1b4   : > { %1175 = vrot.lane.b32.xlu2 %v4043_v24, %s3292_s23  ;;  %934 = vrot.lane.b32.xlu0 %v3997_v47, %s3291_s16 }
 0x1b5   : > { %1125 = vrot.lane.b32.xlu1 %v3975_v27, %s3292_s23 }
 0x1b6   : > { %v1110_v36 = vpop.permute.xlu2 %1109  ;;  %v1106_v39 = vpop.permute.xlu0 %1105 }
 0x1b7   : > { %1240 = vst.msk [vmem:[#allocation3 + $0x3e] sm:$0xfc] %vm1225_vm8, %v1106_v39  ;;  %v913_v42 = vpop.permute.xlu1 %912  ;;  %v628_v39 = vpop.f32.mrf.mxu3 }
 0x1b8   : > { %1046 = vst.msk [vmem:[#allocation3 + $0x47] sm:$0xff] %vm1032_vm5, %v913_v42  ;;  %v629_v42 = vadd.f32 %v3624_v15, %v628_v39 }
 0x1b9   : > { %1242 = vst.msk [vmem:[#allocation3 + $0x4e] sm:$0x3] %vm1229_vm6, %v1110_v36 }
 0x1bc   : > { %932 = vrot.lane.b32.xlu2 %v4063_v45, %s3291_s16  ;;  %1129 = vrot.lane.b32.xlu0 %v3997_v47, %s3292_s23 }
 0x1bd   : > { %936 = vrot.lane.b32.xlu1 %v4003_v48, %s3291_s16 }
 0x1be   : > { %v969_v46 = vpop.permute.xlu2 %968  ;;  %v1291_v51 = vpop.permute.xlu0 %1290 }
 0x1bf   : > { %1074 = vst.msk [vmem:[#allocation3 + $0xdf] sm:$0x1] %vm1034_vm4, %v969_v46  ;;  %v1108_v54 = vpop.permute.xlu1 %1107  ;;  %v4115_v46 = vld [vmem:[#allocation2 + $0xe8] sm:$0x3] }
 0x1c0   : > { %1381 = vst.msk [vmem:[#allocation3 + $0x30] sm:$0xff] %vm1374_vm9, %v1291_v51  ;;  %v662_v51 = vmax.f32 %v629_v42, 0.0 }
 0x1c1   : > { %1241 = vst.msk [vmem:[#allocation3 + $0x46] sm:$0xff] %vm1227_vm7, %v1108_v54 }
 0x1c2   : > { %751 = vst.msk [vmem:[#allocation2 + $0x189] sm:$0xff] %vm663_vm1, %v662_v51 }
 0x1c4   : > { %1127 = vrot.lane.b32.xlu2 %v4063_v45, %s3292_s23  ;;  %940 = vrot.lane.b32.xlu0 %v4030_v13, %s3291_s16 }
 0x1c5   : > { %1131 = vrot.lane.b32.xlu1 %v4003_v48, %s3292_s23 }
 0x1c6   : > { %v1164_v55 = vpop.permute.xlu2 %1163  ;;  %v965_v57 = vpop.permute.xlu0 %964 }
 0x1c7   : > { %1072 = vst.msk [vmem:[#allocation3 + $0xcf] sm:$0xfe] %vm1030_vm3, %v965_v57  ;;  %v1293_v60 = vpop.permute.xlu1 %1292 }
 0x1c8   : > { %1382 = vst.msk [vmem:[#allocation3 + $0x38] sm:$0xff] %vm1374_vm9, %v1293_v60 }
 0x1c9   : > { %v4178_v51 = vld [vmem:[#allocation2 + $0x188] sm:$0xff] }
 0x1cc   : > { %938 = vrot.lane.b32.xlu2 %v4082_v61, %s3291_s16  ;;  %1135 = vrot.lane.b32.xlu0 %v4030_v13, %s3292_s23 }
 0x1cd   : > { %1298 = vrot.lane.b32.xlu1 %v3905_v32, %s3293_s13 }
 0x1ce   : > { %v1295_v2 = vpop.permute.xlu2 %1294  ;;  %v1160_v3 = vpop.permute.xlu0 %1159 }
 0x1cf   : > { %1383 = vst.msk [vmem:[#allocation3 + $0x40] sm:$0xff] %vm1374_vm9, %v1295_v2  ;;  %v967_v5 = vpop.permute.xlu1 %966 }
 0x1d0   : > { %1267 = vst.msk [vmem:[#allocation3 + $0xce] sm:$0xfc] %vm1225_vm8, %v1160_v3 }
 0x1d1   : > { %1073 = vst.msk [vmem:[#allocation3 + $0xd7] sm:$0xff] %vm1032_vm5, %v967_v5 }
 0x1d2   : > { %1269 = vst.msk [vmem:[#allocation3 + $0xde] sm:$0x3] %vm1229_vm6, %v1164_v55 }
 0x1d4   : > { %1133 = vrot.lane.b32.xlu2 %v4082_v61, %s3292_s23  ;;  %1296 = vrot.lane.b32.xlu0 %v3847_v58, %s3293_s13 }
 0x1d5   : > { %942 = vrot.lane.b32.xlu1 %v4036_v16, %s3291_s16 }
 0x1d6   : > { %v921_v10 = vpop.permute.xlu2 %920  ;;  %v917_v12 = vpop.permute.xlu0 %916 }
 0x1d7   : > { %1050 = vst.msk [vmem:[#allocation3 + $0x5f] sm:$0x1] %vm1034_vm4, %v921_v10  ;;  %v1162_v17 = vpop.permute.xlu1 %1161 }
 0x1d8   : > { %1048 = vst.msk [vmem:[#allocation3 + $0x4f] sm:$0xfe] %vm1030_vm3, %v917_v12 }
 0x1d9   : > { %1268 = vst.msk [vmem:[#allocation3 + $0xd6] sm:$0xff] %vm1227_vm7, %v1162_v17 }
 0x1dc   : > { %1300 = vrot.lane.b32.xlu2 %v3913_v40, %s3293_s13  ;;  %1302 = vrot.lane.b32.xlu0 %v3967_v21, %s3293_s13 }
 0x1dd   : > { %1137 = vrot.lane.b32.xlu1 %v4036_v16, %s3292_s23 }
 0x1de   : > { %v1116_v28 = vpop.permute.xlu2 %1115  ;;  %v1112_v31 = vpop.permute.xlu0 %1111 }
 0x1df   : > { %1243 = vst.msk [vmem:[#allocation3 + $0x4e] sm:$0xfc] %vm1225_vm8, %v1112_v31  ;;  %v919_v36 = vpop.permute.xlu1 %918  ;;  %v4163_v31 = vld [vmem:[#allocation2 + $0x180] sm:$0xff] }
 0x1e0   : > { %1049 = vst.msk [vmem:[#allocation3 + $0x57] sm:$0xff] %vm1032_vm5, %v919_v36 }
 0x1e1   : > { %1245 = vst.msk [vmem:[#allocation3 + $0x5e] sm:$0x3] %vm1229_vm6, %v1116_v28 }
 0x1e4   : > { %944 = vrot.lane.b32.xlu2 %v4115_v46, %s3291_s16  ;;  %1308 = vrot.lane.b32.xlu0 %v4003_v48, %s3293_s13  ;;  %s3230_s16 = scalar_lea.hbm %s3229_s22, 32 }
 0x1e5   : > { %1304 = vrot.lane.b32.xlu1 %v3975_v27, %s3293_s13  ;;  %p3231_p6 = scmp.ne.s32.totalorder %s3229_s22, %s3230_s16 }
 0x1e6   : > { %v975_v54 = vpop.permute.xlu2 %974  ;;  %v971_v55 = vpop.permute.xlu0 %970 }
 0x1e7   : > { %1077 = vst.msk [vmem:[#allocation3 + $0xef] sm:$0x1] %vm1034_vm4, %v975_v54  ;;  %v1114_v57 = vpop.permute.xlu1 %1113  ;;  %p3232_p13 = pnand %p3231_p6, %p3396_p11 }
 0x1e8   : > { %1075 = vst.msk [vmem:[#allocation3 + $0xdf] sm:$0xfe] %vm1030_vm3, %v971_v55 }
 0x1e9   : > { %1244 = vst.msk [vmem:[#allocation3 + $0x56] sm:$0xff] %vm1227_vm7, %v1114_v57  ;;  %p3233_p3 = pneg %p3232_p13 }
 0x1ec   : > { %1139 = vrot.lane.b32.xlu2 %v4115_v46, %s3292_s23  ;;  %1314 = vrot.lane.b32.xlu0 %v3646_v33, %s3293_s13 }
 0x1ed   : > { %1310 = vrot.lane.b32.xlu1 %v4030_v13, %s3293_s13 }
 0x1ee   : > { %v1170_v15 = vpop.permute.xlu2 %1169  ;;  %v1166_v60 = vpop.permute.xlu0 %1165 }
 0x1ef   : > { %1270 = vst.msk [vmem:[#allocation3 + $0xde] sm:$0xfc] %vm1225_vm8, %v1166_v60  ;;  %v973_v2 = vpop.permute.xlu1 %972 }
 0x1f0   : > { %1076 = vst.msk [vmem:[#allocation3 + $0xe7] sm:$0xff] %vm1032_vm5, %v973_v2 }
 0x1f1   : > { %1272 = vst.msk [vmem:[#allocation3 + $0xee] sm:$0x3] %vm1229_vm6, %v1170_v15 }
 0x1f4   : > { %1306 = vrot.lane.b32.xlu2 %v3997_v47, %s3293_s13  ;;  %1320 = vrot.lane.b32.xlu0 %v3703_v56, %s3293_s13 }
 0x1f5   : > { %1316 = vrot.lane.b32.xlu1 %v3664_v41, %s3293_s13 }
 0x1f6   : > { %v927_v3 = vpop.permute.xlu2 %926  ;;  %v923_v5 = vpop.permute.xlu0 %922 }
 0x1f7   : > { %1053 = vst.msk [vmem:[#allocation3 + $0x6f] sm:$0x1] %vm1034_vm4, %v927_v3  ;;  %v1168_v10 = vpop.permute.xlu1 %1167 }
 0x1f8   : > { %1051 = vst.msk [vmem:[#allocation3 + $0x5f] sm:$0xfe] %vm1030_vm3, %v923_v5 }
 0x1f9   : > { %1271 = vst.msk [vmem:[#allocation3 + $0xe6] sm:$0xff] %vm1227_vm7, %v1168_v10 }
 0x1fc   : > { %1312 = vrot.lane.b32.xlu2 %v4036_v16, %s3293_s13  ;;  %1326 = vrot.lane.b32.xlu0 %v3811_v37, %s3293_s13 }
 0x1fd   : > { %1322 = vrot.lane.b32.xlu1 %v3746_v8, %s3293_s13 }
 0x1fe   : > { %v1122_v12 = vpop.permute.xlu2 %1121  ;;  %v1118_v17 = vpop.permute.xlu0 %1117 }
 0x1ff   : > { %1246 = vst.msk [vmem:[#allocation3 + $0x5e] sm:$0xfc] %vm1225_vm8, %v1118_v17  ;;  %v925_v18 = vpop.permute.xlu1 %924 }
 0x200   : > { %1052 = vst.msk [vmem:[#allocation3 + $0x67] sm:$0xff] %vm1032_vm5, %v925_v18 }
 0x201   : > { %1248 = vst.msk [vmem:[#allocation3 + $0x6e] sm:$0x3] %vm1229_vm6, %v1122_v12 }
 0x204   : > { %1318 = vrot.lane.b32.xlu2 %v3685_v50, %s3293_s13  ;;  %1332 = vrot.lane.b32.xlu0 %v3880_v14, %s3293_s13 }
 0x205   : > { %1328 = vrot.lane.b32.xlu1 %v3817_v38, %s3293_s13 }
 0x206   : > { %v981_v22 = vpop.permute.xlu2 %980  ;;  %v977_v25 = vpop.permute.xlu0 %976 }
 0x207   : > { %1080 = vst.msk [vmem:[#allocation3 + $0xff] sm:$0x1] %vm1034_vm4, %v981_v22  ;;  %v1120_v28 = vpop.permute.xlu1 %1119 }
 0x208   : > { %1078 = vst.msk [vmem:[#allocation3 + $0xef] sm:$0xfe] %vm1030_vm3, %v977_v25 }
 0x209   : > { %1247 = vst.msk [vmem:[#allocation3 + $0x66] sm:$0xff] %vm1227_vm7, %v1120_v28 }
 0x20c   : > { %1324 = vrot.lane.b32.xlu2 %v3748_v9, %s3293_s13  ;;  %1338 = vrot.lane.b32.xlu0 %v4163_v31, %s3293_s13 }
 0x20d   : > { %1334 = vrot.lane.b32.xlu1 %v3935_v59, %s3293_s13 }
 0x20e   : > { %v1176_v36 = vpop.permute.xlu2 %1175  ;;  %v1172_v39 = vpop.permute.xlu0 %1171 }
 0x20f   : > { %1273 = vst.msk [vmem:[#allocation3 + $0xee] sm:$0xfc] %vm1225_vm8, %v1172_v39  ;;  %v979_v42 = vpop.permute.xlu1 %978 }
 0x210   : > { %1079 = vst.msk [vmem:[#allocation3 + $0xf7] sm:$0xff] %vm1032_vm5, %v979_v42 }
 0x211   : > { %1275 = vst.msk [vmem:[#allocation3 + $0xfe] sm:$0x3] %vm1229_vm6, %v1176_v36 }
 0x214   : > { %1330 = vrot.lane.b32.xlu2 %v3873_v11, %s3293_s13  ;;  %1410 = vrot.lane.b32.xlu0 %v3649_v35, %s3294_s24 }
 0x215   : > { %1340 = vrot.lane.b32.xlu1 %v4178_v51, %s3293_s13 }
 0x216   : > { %v933_v54 = vpop.permute.xlu2 %932  ;;  %v929_v55 = vpop.permute.xlu0 %928 }
 0x217   : > { %1056 = vst.msk [vmem:[#allocation3 + $0x7f] sm:$0x1] %vm1034_vm4, %v933_v54  ;;  %v1174_v57 = vpop.permute.xlu1 %1173 }
 0x218   : > { %1054 = vst.msk [vmem:[#allocation3 + $0x6f] sm:$0xfe] %vm1030_vm3, %v929_v55 }
 0x219   : > { %1274 = vst.msk [vmem:[#allocation3 + $0xf6] sm:$0xff] %vm1227_vm7, %v1174_v57 }
 0x21c   : > { %1336 = vrot.lane.b32.xlu2 %v3943_v1, %s3293_s13  ;;  %1416 = vrot.lane.b32.xlu0 %v3687_v52, %s3294_s24 }
 0x21d   : > { %1412 = vrot.lane.b32.xlu1 %v3668_v43, %s3294_s24 }
 0x21e   : > { %v1128_v15 = vpop.permute.xlu2 %1127  ;;  %v1124_v60 = vpop.permute.xlu0 %1123 }
 0x21f   : > { %1249 = vst.msk [vmem:[#allocation3 + $0x6e] sm:$0xfc] %vm1225_vm8, %v1124_v60  ;;  %v931_v2 = vpop.permute.xlu1 %930  ;;  %v3134_v60 = vld [vmem:[#allocation2 + $0x100] sm:$0x3] }
 0x220   : > { %1055 = vst.msk [vmem:[#allocation3 + $0x77] sm:$0xff] %vm1032_vm5, %v931_v2 }
 0x221   : > { %1251 = vst.msk [vmem:[#allocation3 + $0x7e] sm:$0x3] %vm1229_vm6, %v1128_v15 }
 0x224   : > { %1408 = vrot.lane.b32.xlu2 %v3633_v26, %s3294_s24  ;;  %1422 = vrot.lane.b32.xlu0 %v3720_v63, %s3294_s24 }
 0x225   : > { %1418 = vrot.lane.b32.xlu1 %v3740_v7, %s3294_s24 }
 0x226   : > { %v939_v3 = vpop.permute.xlu2 %938  ;;  %v935_v43 = vpop.permute.xlu0 %934 }
 0x227   : > { %1059 = vst.msk [vmem:[#allocation3 + $0x8f] sm:$0x1] %vm1034_vm4, %v939_v3  ;;  %v1126_v5 = vpop.permute.xlu1 %1125 }
 0x228   : > { %1057 = vst.msk [vmem:[#allocation3 + $0x7f] sm:$0xfe] %vm1030_vm3, %v935_v43 }
 0x229   : > { %1250 = vst.msk [vmem:[#allocation3 + $0x76] sm:$0xff] %vm1227_vm7, %v1126_v5 }
 0x22c   : > { %1414 = vrot.lane.b32.xlu2 %v3676_v44, %s3294_s24  ;;  %1428 = vrot.lane.b32.xlu0 %v3782_v23, %s3294_s24 }
 0x22d   : > { %1424 = vrot.lane.b32.xlu1 %v3797_v30, %s3294_s24 }
 0x22e   : > { %v1134_v10 = vpop.permute.xlu2 %1133  ;;  %v1130_v7 = vpop.permute.xlu0 %1129 }
 0x22f   : > { %1252 = vst.msk [vmem:[#allocation3 + $0x7e] sm:$0xfc] %vm1225_vm8, %v1130_v7  ;;  %v937_v12 = vpop.permute.xlu1 %936 }
 0x230   : > { %1058 = vst.msk [vmem:[#allocation3 + $0x87] sm:$0xff] %vm1032_vm5, %v937_v12 }
 0x231   : > { %1254 = vst.msk [vmem:[#allocation3 + $0x8e] sm:$0x3] %vm1229_vm6, %v1134_v10 }
 0x234   : > { %1420 = vrot.lane.b32.xlu2 %v3718_v62, %s3294_s24  ;;  %1434 = vrot.lane.b32.xlu0 %v3847_v58, %s3294_s24 }
 0x235   : > { %1430 = vrot.lane.b32.xlu1 %v3866_v6, %s3294_s24 }
 0x236   : > { %v1301_v17 = vpop.permute.xlu2 %1300  ;;  %v941_v30 = vpop.permute.xlu0 %940 }
 0x237   : > { %1386 = vst.msk [vmem:[#allocation3 + $0x58] sm:$0xff] %vm1374_vm9, %v1301_v17  ;;  %v1132_v18 = vpop.permute.xlu1 %1131 }
 0x238   : > { %1060 = vst.msk [vmem:[#allocation3 + $0x8f] sm:$0xfe] %vm1030_vm3, %v941_v30  ;;  %vm2078_vm3 = vcmask 254176  }
 0x239   : > { %1253 = vst.msk [vmem:[#allocation3 + $0x86] sm:$0xff] %vm1227_vm7, %v1132_v18 }
 0x23c   : > { %1426 = vrot.lane.b32.xlu2 %v3776_v20, %s3294_s24  ;;  %1440 = vrot.lane.b32.xlu0 %v3913_v40, %s3294_s24 }
 0x23d   : > { %1436 = vrot.lane.b32.xlu1 %v3950_v4, %s3294_s24 }
 0x23e   : > { %v945_v22 = vpop.permute.xlu2 %944  ;;  %v1136_v6 = vpop.permute.xlu0 %1135 }
 0x23f   : > { %1062 = vst.msk [vmem:[#allocation3 + $0x9f] sm:$0x1] %vm1034_vm4, %v945_v22  ;;  %v1299_v25 = vpop.permute.xlu1 %1298  ;;  %vm2074_vm4 = vcmask 261345  }
 0x240   : > { %1255 = vst.msk [vmem:[#allocation3 + $0x8e] sm:$0xfc] %vm1225_vm8, %v1136_v6  ;;  %vm2271_vm8 = vcmask 294144  }
 0x241   : > { %1385 = vst.msk [vmem:[#allocation3 + $0x50] sm:$0xff] %vm1374_vm9, %v1299_v25 }
 0x244   : > { %1432 = vrot.lane.b32.xlu2 %v3839_v53, %s3294_s24  ;;  %1446 = vrot.lane.b32.xlu0 %v3975_v27, %s3294_s24 }
 0x245   : > { %1442 = vrot.lane.b32.xlu1 %v4013_v0, %s3294_s24 }
 0x246   : > { %v1140_v28 = vpop.permute.xlu2 %1139  ;;  %v1297_v4 = vpop.permute.xlu0 %1296 }
 0x247   : > { %1384 = vst.msk [vmem:[#allocation3 + $0x48] sm:$0xff] %vm1374_vm9, %v1297_v4  ;;  %v943_v36 = vpop.permute.xlu1 %942 }
 0x248   : > { %1061 = vst.msk [vmem:[#allocation3 + $0x97] sm:$0xff] %vm1032_vm5, %v943_v36  ;;  %vm2269_vm5 = vcmask 294146  }
 0x249   : > { %1257 = vst.msk [vmem:[#allocation3 + $0x9e] sm:$0x3] %vm1229_vm6, %v1140_v28  ;;  %vm2076_vm6 = vcmask 261344  }
 0x24c   : > { %1438 = vrot.lane.b32.xlu2 %v3905_v32, %s3294_s24  ;;  %1452 = vrot.lane.b32.xlu0 %v4003_v48, %s3294_s24 }
 0x24d   : > { %1448 = vrot.lane.b32.xlu1 %v4063_v45, %s3294_s24 }
 0x24e   : > { %v1307_v39 = vpop.permute.xlu2 %1306  ;;  %v1303_v0 = vpop.permute.xlu0 %1302 }
 0x24f   : > { %1389 = vst.msk [vmem:[#allocation3 + $0x70] sm:$0xff] %vm1374_vm9, %v1307_v39  ;;  %v1138_v42 = vpop.permute.xlu1 %1137 }
 0x250   : > { %1387 = vst.msk [vmem:[#allocation3 + $0x60] sm:$0xff] %vm1374_vm9, %v1303_v0 }
 0x251   : > { %1256 = vst.msk [vmem:[#allocation3 + $0x96] sm:$0xff] %vm1227_vm7, %v1138_v42  ;;  %vm2273_vm7 = vcmask 288000  }
 0x254   : > { %1444 = vrot.lane.b32.xlu2 %v3967_v21, %s3294_s24  ;;  %1458 = vrot.lane.b32.xlu0 %v4036_v16, %s3294_s24 }
 0x255   : > { %1454 = vrot.lane.b32.xlu1 %v4082_v61, %s3294_s24 }
 0x256   : > { %v1313_v54 = vpop.permute.xlu2 %1312  ;;  %v1309_v45 = vpop.permute.xlu0 %1308 }
 0x257   : > { %1392 = vst.msk [vmem:[#allocation3 + $0x88] sm:$0xff] %vm1374_vm9, %v1313_v54  ;;  %v1305_v55 = vpop.permute.xlu1 %1304 }
 0x258   : > { %1390 = vst.msk [vmem:[#allocation3 + $0x78] sm:$0xff] %vm1374_vm9, %v1309_v45 }
 0x259   : > { %1388 = vst.msk [vmem:[#allocation3 + $0x68] sm:$0xff] %vm1374_vm9, %v1305_v55 }
 0x25c   : > { %1450 = vrot.lane.b32.xlu2 %v3997_v47, %s3294_s24  ;;  %1464 = vrot.lane.b32.xlu0 %v3664_v41, %s3294_s24 }
 0x25d   : > { %1460 = vrot.lane.b32.xlu1 %v4115_v46, %s3294_s24 }
 0x25e   : > { %v1319_v57 = vpop.permute.xlu2 %1318  ;;  %v1315_v61 = vpop.permute.xlu0 %1314 }
 0x25f   : > { %1395 = vst.msk [vmem:[#allocation3 + $0xa0] sm:$0xff] %vm1374_vm9, %v1319_v57  ;;  %v1311_v15 = vpop.permute.xlu1 %1310 }
 0x260   : > { %1393 = vst.msk [vmem:[#allocation3 + $0x90] sm:$0xff] %vm1374_vm9, %v1315_v61 }
 0x261   : > { %1391 = vst.msk [vmem:[#allocation3 + $0x80] sm:$0xff] %vm1374_vm9, %v1311_v15 }
 0x264   : > { %1456 = vrot.lane.b32.xlu2 %v4030_v13, %s3294_s24  ;;  %1470 = vrot.lane.b32.xlu0 %v3703_v56, %s3294_s24 }
 0x265   : > { %1466 = vrot.lane.b32.xlu1 %v3134_v60, %s3294_s24 }
 0x266   : > { %v1325_v2 = vpop.permute.xlu2 %1324  ;;  %v1321_v46 = vpop.permute.xlu0 %1320 }
 0x267   : > { %1398 = vst.msk [vmem:[#allocation3 + $0xb8] sm:$0xff] %vm1374_vm9, %v1325_v2  ;;  %v1317_v3 = vpop.permute.xlu1 %1316 }
 0x268   : > { %1396 = vst.msk [vmem:[#allocation3 + $0xa8] sm:$0xff] %vm1374_vm9, %v1321_v46 }
 0x269   : > { %1394 = vst.msk [vmem:[#allocation3 + $0x98] sm:$0xff] %vm1374_vm9, %v1317_v3 }
 0x26c   : > { %1462 = vrot.lane.b32.xlu2 %v3646_v33, %s3294_s24  ;;  %1476 = vrot.lane.b32.xlu0 %v3748_v9, %s3294_s24 }
 0x26d   : > { %1472 = vrot.lane.b32.xlu1 %v3770_v19, %s3294_s24 }
 0x26e   : > { %v1331_v43 = vpop.permute.xlu2 %1330  ;;  %v1327_v5 = vpop.permute.xlu0 %1326 }
 0x26f   : > { %1401 = vst.msk [vmem:[#allocation3 + $0xd0] sm:$0xff] %vm1374_vm9, %v1331_v43  ;;  %v1323_v10 = vpop.permute.xlu1 %1322 }
 0x270   : > { %1399 = vst.msk [vmem:[#allocation3 + $0xc0] sm:$0xff] %vm1374_vm9, %v1327_v5  ;;  %v3137_v5 = vld [vmem:[#allocation2 + $0x58] sm:$0x3] }
 0x271   : > { %1397 = vst.msk [vmem:[#allocation3 + $0xb0] sm:$0xff] %vm1374_vm9, %v1323_v10 }
 0x274   : > { %1468 = vrot.lane.b32.xlu2 %v3685_v50, %s3294_s24  ;;  %1482 = vrot.lane.b32.xlu0 %v3817_v38, %s3294_s24 }
 0x275   : > { %1478 = vrot.lane.b32.xlu1 %v3833_v49, %s3294_s24 }
 0x276   : > { %v1337_v7 = vpop.permute.xlu2 %1336  ;;  %v1333_v19 = vpop.permute.xlu0 %1332 }
 0x277   : > { %1404 = vst.msk [vmem:[#allocation3 + $0xe8] sm:$0xff] %vm1374_vm9, %v1337_v7  ;;  %v1329_v12 = vpop.permute.xlu1 %1328 }
 0x278   : > { %1402 = vst.msk [vmem:[#allocation3 + $0xd8] sm:$0xff] %vm1374_vm9, %v1333_v19 }
 0x279   : > { %1400 = vst.msk [vmem:[#allocation3 + $0xc8] sm:$0xff] %vm1374_vm9, %v1329_v12 }
 0x27c   : > { %1474 = vrot.lane.b32.xlu2 %v3746_v8, %s3294_s24  ;;  %1488 = vrot.lane.b32.xlu0 %v3880_v14, %s3294_s24 }
 0x27d   : > { %1484 = vrot.lane.b32.xlu1 %v3899_v29, %s3294_s24 }
 0x27e   : > { %v1409_v49 = vpop.permute.xlu2 %1408  ;;  %v1339_v17 = vpop.permute.xlu0 %1338 }
 0x27f   : > { %1553 = vst.msk [vmem:[#allocation3 - $0x1] sm:$0xfe] %vm1552_vm10, %v1409_v49  ;;  %v1335_v30 = vpop.permute.xlu1 %1334 }
 0x280   : > { %1405 = vst.msk [vmem:[#allocation3 + $0xf0] sm:$0xff] %vm1374_vm9, %v1339_v17  ;;  %v3138_v17 = vld [vmem:[#allocation2 + $0x118] sm:$0x3] }
 0x281   : > { %1403 = vst.msk [vmem:[#allocation3 + $0xe0] sm:$0xff] %vm1374_vm9, %v1335_v30 }
 0x284   : > { %1480 = vrot.lane.b32.xlu2 %v3811_v37, %s3294_s24  ;;  %1494 = vrot.lane.b32.xlu0 %v3943_v1, %s3294_s24 }
 0x285   : > { %1490 = vrot.lane.b32.xlu1 %v3982_v34, %s3294_s24 }
 0x286   : > { %v1415_v29 = vpop.permute.xlu2 %1414  ;;  %v1411_v18 = vpop.permute.xlu0 %1410 }
 0x287   : > { %1558 = vst.msk [vmem:[#allocation3 + $0xf] sm:$0xfe] %vm1552_vm10, %v1415_v29  ;;  %v1341_v22 = vpop.permute.xlu1 %1340 }
 0x288   : > { %1555 = vst.msk [vmem:[#allocation3 + $0x7] sm:$0xff] %vm1554_vm11, %v1411_v18 }
 0x289   : > { %1406 = vst.msk [vmem:[#allocation3 + $0xf8] sm:$0xff] %vm1374_vm9, %v1341_v22  ;;  %v3139_v22 = vld [vmem:[#allocation2 + $0x130] sm:$0x3]  ;;  %vm2488_vm9 = vcmask 293888  }
 0x28c   : > { %1486 = vrot.lane.b32.xlu2 %v3873_v11, %s3294_s24  ;;  %1500 = vrot.lane.b32.xlu0 %v4178_v51, %s3294_s24  ;;  %v4323_v51 = vld [vmem:[#allocation2 + $0x190] sm:$0x3] }
 0x28d   : > { %1496 = vrot.lane.b32.xlu1 %v4043_v24, %s3294_s24 }
 0x28e   : > { %v1421_v34 = vpop.permute.xlu2 %1420  ;;  %v1417_v6 = vpop.permute.xlu0 %1416 }
 0x28f   : > { %1561 = vst.msk [vmem:[#allocation3 + $0x1f] sm:$0xfe] %vm1552_vm10, %v1421_v34  ;;  %v1413_v25 = vpop.permute.xlu1 %1412 }
 0x290   : > { %1559 = vst.msk [vmem:[#allocation3 + $0x17] sm:$0xff] %vm1554_vm11, %v1417_v6 }
 0x291   : > { %1557 = vst.msk [vmem:[#allocation3 + $0xf] sm:$0x1] %vm1556_vm12, %v1413_v25 }
 0x294   : > { %1492 = vrot.lane.b32.xlu2 %v3935_v59, %s3294_s24  ;;  %1605 = vrot.lane.b32.xlu0 %v3649_v35, %s3295_s26  ;;  %v3135_v35 = vld [vmem:[#allocation2 + $0x28] sm:$0x3] }
 0x295   : > { %1502 = vrot.lane.b32.xlu1 %v4323_v51, %s3294_s24 }
 0x296   : > { %v1427_v24 = vpop.permute.xlu2 %1426  ;;  %v1423_v28 = vpop.permute.xlu0 %1422 }
 0x297   : > { %1564 = vst.msk [vmem:[#allocation3 + $0x2f] sm:$0xfe] %vm1552_vm10, %v1427_v24  ;;  %v1419_v4 = vpop.permute.xlu1 %1418 }
 0x298   : > { %1562 = vst.msk [vmem:[#allocation3 + $0x27] sm:$0xff] %vm1554_vm11, %v1423_v28 }
 0x299   : > { %1560 = vst.msk [vmem:[#allocation3 + $0x1f] sm:$0x1] %vm1556_vm12, %v1419_v4 }
 0x29c   : > { %1498 = vrot.lane.b32.xlu2 %v4163_v31, %s3294_s24  ;;  %1611 = vrot.lane.b32.xlu0 %v3687_v52, %s3295_s26  ;;  %v3136_v31 = vld [vmem:[#allocation2 + $0x40] sm:$0x3] }
 0x29d   : > { %1607 = vrot.lane.b32.xlu1 %v3135_v35, %s3295_s26 }
 0x29e   : > { %v1433_v36 = vpop.permute.xlu2 %1432  ;;  %v1429_v39 = vpop.permute.xlu0 %1428 }
 0x29f   : > { %1567 = vst.msk [vmem:[#allocation3 + $0x3f] sm:$0xfe] %vm1552_vm10, %v1433_v36  ;;  %v1425_v0 = vpop.permute.xlu1 %1424 }
 0x2a0   : > { %1565 = vst.msk [vmem:[#allocation3 + $0x37] sm:$0xff] %vm1554_vm11, %v1429_v39  ;;  %v4430_v39 = vld [vmem:[#allocation2 + $0x70] sm:$0x3] }
 0x2a1   : > { %1563 = vst.msk [vmem:[#allocation3 + $0x2f] sm:$0x1] %vm1556_vm12, %v1425_v0 }
 0x2a4   : > { %1603 = vrot.lane.b32.xlu2 %v3633_v26, %s3295_s26  ;;  %1617 = vrot.lane.b32.xlu0 %v3720_v63, %s3295_s26 }
 0x2a5   : > { %1613 = vrot.lane.b32.xlu1 %v3136_v31, %s3295_s26 }
 0x2a6   : > { %v1439_v42 = vpop.permute.xlu2 %1438  ;;  %v1435_v54 = vpop.permute.xlu0 %1434 }
 0x2a7   : > { %1570 = vst.msk [vmem:[#allocation3 + $0x4f] sm:$0xfe] %vm1552_vm10, %v1439_v42  ;;  %v1431_v45 = vpop.permute.xlu1 %1430 }
 0x2a8   : > { %1568 = vst.msk [vmem:[#allocation3 + $0x47] sm:$0xff] %vm1554_vm11, %v1435_v54 }
 0x2a9   : > { %1566 = vst.msk [vmem:[#allocation3 + $0x3f] sm:$0x1] %vm1556_vm12, %v1431_v45 }
 0x2ac   : > { %1609 = vrot.lane.b32.xlu2 %v3676_v44, %s3295_s26  ;;  %1930 = vrot.lane.b32.xlu0 %v3676_v44, %s3296_s14 }
 0x2ad   : > { %1800 = vrot.lane.b32.xlu1 %v3676_v44, %s3297_s0 }
 0x2ae   : > { %v1445_v26 = vpop.permute.xlu2 %1444  ;;  %v1441_v55 = vpop.permute.xlu0 %1440 }
 0x2af   : > { %1573 = vst.msk [vmem:[#allocation3 + $0x5f] sm:$0xfe] %vm1552_vm10, %v1445_v26  ;;  %v1437_v57 = vpop.permute.xlu1 %1436 }
 0x2b0   : > { %1571 = vst.msk [vmem:[#allocation3 + $0x57] sm:$0xff] %vm1554_vm11, %v1441_v55 }
 0x2b1   : > { %1569 = vst.msk [vmem:[#allocation3 + $0x4f] sm:$0x1] %vm1556_vm12, %v1437_v57 }
 0x2b4   : > { %1615 = vrot.lane.b32.xlu2 %v3718_v62, %s3295_s26  ;;  %2125 = vrot.lane.b32.xlu0 %v3676_v44, %s3298_s19 }
 0x2b5   : > { %1932 = vrot.lane.b32.xlu1 %v3687_v52, %s3296_s14 }
 0x2b6   : > { %v1451_v61 = vpop.permute.xlu2 %1450  ;;  %v1447_v15 = vpop.permute.xlu0 %1446 }
 0x2b7   : > { %1576 = vst.msk [vmem:[#allocation3 + $0x6f] sm:$0xfe] %vm1552_vm10, %v1451_v61  ;;  %v1443_v60 = vpop.permute.xlu1 %1442  ;;  %v2388_v61 = vld [vmem:[%s5025_s4 + $0x10] sm:$0x3] }
 0x2b8   : > { %1574 = vst.msk [vmem:[#allocation3 + $0x67] sm:$0xff] %vm1554_vm11, %v1447_v15 }
 0x2b9   : > { %1572 = vst.msk [vmem:[#allocation3 + $0x5f] sm:$0x1] %vm1556_vm12, %v1443_v60  ;;  %v2482_v60 = vunpack.c.l.b16 %v2388_v61 }
 0x2bc   : > { %1802 = vrot.lane.b32.xlu2 %v3687_v52, %s3297_s0  ;;  %1804 = vrot.lane.b32.xlu0 %v3718_v62, %s3297_s0 }
 0x2bd   : > { %2127 = vrot.lane.b32.xlu1 %v3687_v52, %s3298_s19 }
 0x2be   : > { %v1457_v44 = vpop.permute.xlu2 %1456  ;;  %v1453_v2 = vpop.permute.xlu0 %1452 }
 0x2bf   : > { %1579 = vst.msk [vmem:[#allocation3 + $0x7f] sm:$0xfe] %vm1552_vm10, %v1457_v44  ;;  %v1449_v46 = vpop.permute.xlu1 %1448  ;;  %v2485_v44 = vpack.c.b16 %v2482_v60, %v2482_v60  ;;  %v4535_v60 = vld [vmem:[#allocation2 + $0x160] sm:$0x3] }
 0x2c0   : > { %1577 = vst.msk [vmem:[#allocation3 + $0x77] sm:$0xff] %vm1554_vm11, %v1453_v2 }
 0x2c1   : > { %1575 = vst.msk [vmem:[#allocation3 + $0x6f] sm:$0x1] %vm1556_vm12, %v1449_v46  ;;  %v2539_v2 = vsel %vm2537_vm0, %v2485_v44, 0 }
 0x2c2   : > { %2546 = vmatpush.bf16.msra.mxu1 %v2539_v2  ;;  %3060 = vmatpush.bf16.msra.mxu2 %v2539_v2 }
 0x2c4   : > { %1934 = vrot.lane.b32.xlu2 %v3136_v31, %s3296_s14  ;;  %1938 = vrot.lane.b32.xlu0 %v3720_v63, %s3296_s14 }
 0x2c5   : > { %1806 = vrot.lane.b32.xlu1 %v3720_v63, %s3297_s0 }
 0x2c6   : > { %v1463_v3 = vpop.permute.xlu2 %1462  ;;  %v1459_v43 = vpop.permute.xlu0 %1458 }
 0x2c7   : > { %1582 = vst.msk [vmem:[#allocation3 + $0x8f] sm:$0xfe] %vm1552_vm10, %v1463_v3  ;;  %v1455_v52 = vpop.permute.xlu1 %1454 }
 0x2c8   : > { %1580 = vst.msk [vmem:[#allocation3 + $0x87] sm:$0xff] %vm1554_vm11, %v1459_v43 }
 0x2c9   : > { %1578 = vst.msk [vmem:[#allocation3 + $0x7f] sm:$0x1] %vm1556_vm12, %v1455_v52  ;;  %v3055_v52 = vld [vmem:[%s5025_s4] sm:$0xff] }
 0x2cc   : > { %2129 = vrot.lane.b32.xlu2 %v3136_v31, %s3298_s19  ;;  %2133 = vrot.lane.b32.xlu0 %v3720_v63, %s3298_s19 }
 0x2cd   : > { %1940 = vrot.lane.b32.xlu1 %v3137_v5, %s3296_s14 }
 0x2ce   : > { %v1469_v10 = vpop.permute.xlu2 %1468  ;;  %v1465_v7 = vpop.permute.xlu0 %1464 }
 0x2cf   : > { %1585 = vst.msk [vmem:[#allocation3 + $0x9f] sm:$0xfe] %vm1552_vm10, %v1469_v10  ;;  %v1461_v19 = vpop.permute.xlu1 %1460 }
 0x2d0   : > { %1583 = vst.msk [vmem:[#allocation3 + $0x97] sm:$0xff] %vm1554_vm11, %v1465_v7 }
 0x2d1   : > { %1581 = vst.msk [vmem:[#allocation3 + $0x8f] sm:$0x1] %vm1556_vm12, %v1461_v19 }
 0x2d4   : > { %1936 = vrot.lane.b32.xlu2 %v3718_v62, %s3296_s14  ;;  %1665 = vrot.lane.b32.xlu0 %v3703_v56, %s3295_s26 }
 0x2d5   : > { %2135 = vrot.lane.b32.xlu1 %v3137_v5, %s3298_s19 }
 0x2d6   : > { %v1475_v63 = vpop.permute.xlu2 %1474  ;;  %v1471_v12 = vpop.permute.xlu0 %1470 }
 0x2d7   : > { %1588 = vst.msk [vmem:[#allocation3 + $0xaf] sm:$0xfe] %vm1552_vm10, %v1475_v63  ;;  %v1467_v49 = vpop.permute.xlu1 %1466 }
 0x2d8   : > { %1586 = vst.msk [vmem:[#allocation3 + $0xa7] sm:$0xff] %vm1554_vm11, %v1471_v12  ;;  %v3141_v12 = vld [vmem:[#allocation2 + $0x148] sm:$0x3] }
 0x2d9   : > { %1584 = vst.msk [vmem:[#allocation3 + $0x9f] sm:$0x1] %vm1556_vm12, %v1467_v49 }
 0x2dc   : > { %2131 = vrot.lane.b32.xlu2 %v3718_v62, %s3298_s19  ;;  %1842 = vrot.lane.b32.xlu0 %v3748_v9, %s3297_s0 }
 0x2dd   : > { %1667 = vrot.lane.b32.xlu1 %v3138_v17, %s3295_s26 }
 0x2de   : > { %v1481_v30 = vpop.permute.xlu2 %1480  ;;  %v1477_v29 = vpop.permute.xlu0 %1476 }
 0x2df   : > { %1591 = vst.msk [vmem:[#allocation3 + $0xbf] sm:$0xfe] %vm1552_vm10, %v1481_v30  ;;  %v1473_v18 = vpop.permute.xlu1 %1472 }
 0x2e0   : > { %1589 = vst.msk [vmem:[#allocation3 + $0xb7] sm:$0xff] %vm1554_vm11, %v1477_v29 }
 0x2e1   : > { %1587 = vst.msk [vmem:[#allocation3 + $0xaf] sm:$0x1] %vm1556_vm12, %v1473_v18 }
 0x2e4   : > { %1663 = vrot.lane.b32.xlu2 %v3685_v50, %s3295_s26  ;;  %1994 = vrot.lane.b32.xlu0 %v3139_v22, %s3296_s14 }
 0x2e5   : > { %1990 = vrot.lane.b32.xlu1 %v3746_v8, %s3296_s14 }
 0x2e6   : > { %v1487_v62 = vpop.permute.xlu2 %1486  ;;  %v1483_v34 = vpop.permute.xlu0 %1482 }
 0x2e7   : > { %1594 = vst.msk [vmem:[#allocation3 + $0xcf] sm:$0xfe] %vm1552_vm10, %v1487_v62  ;;  %v1479_v6 = vpop.permute.xlu1 %1478 }
 0x2e8   : > { %1592 = vst.msk [vmem:[#allocation3 + $0xc7] sm:$0xff] %vm1554_vm11, %v1483_v34 }
 0x2e9   : > { %1590 = vst.msk [vmem:[#allocation3 + $0xbf] sm:$0x1] %vm1556_vm12, %v1479_v6 }
 0x2ec   : > { %1840 = vrot.lane.b32.xlu2 %v3746_v8, %s3297_s0  ;;  %2189 = vrot.lane.b32.xlu0 %v3139_v22, %s3298_s19 }
 0x2ed   : > { %2185 = vrot.lane.b32.xlu1 %v3746_v8, %s3298_s19 }
 0x2ee   : > { %v1493_v25 = vpop.permute.xlu2 %1492  ;;  %v1489_v24 = vpop.permute.xlu0 %1488 }
 0x2ef   : > { %1597 = vst.msk [vmem:[#allocation3 + $0xdf] sm:$0xfe] %vm1552_vm10, %v1493_v25  ;;  %v1485_v28 = vpop.permute.xlu1 %1484 }
 0x2f0   : > { %1595 = vst.msk [vmem:[#allocation3 + $0xd7] sm:$0xff] %vm1554_vm11, %v1489_v24  ;;  %v3142_v24 = vld [vmem:[#allocation2 + $0x88] sm:$0x3] }
 0x2f1   : > { %1593 = vst.msk [vmem:[#allocation3 + $0xcf] sm:$0x1] %vm1556_vm12, %v1485_v28 }
 0x2f4   : > { %1992 = vrot.lane.b32.xlu2 %v3748_v9, %s3296_s14  ;;  %1810 = vrot.lane.b32.xlu0 %v3782_v23, %s3297_s0 }
 0x2f5   : > { %1619 = vrot.lane.b32.xlu1 %v3137_v5, %s3295_s26 }
 0x2f6   : > { %v1499_v4 = vpop.permute.xlu2 %1498  ;;  %v1495_v35 = vpop.permute.xlu0 %1494 }
 0x2f7   : > { %1600 = vst.msk [vmem:[#allocation3 + $0xef] sm:$0xfe] %vm1552_vm10, %v1499_v4  ;;  %v1491_v36 = vpop.permute.xlu1 %1490 }
 0x2f8   : > { %1598 = vst.msk [vmem:[#allocation3 + $0xe7] sm:$0xff] %vm1554_vm11, %v1495_v35 }
 0x2f9   : > { %1596 = vst.msk [vmem:[#allocation3 + $0xdf] sm:$0x1] %vm1556_vm12, %v1491_v36 }
 0x2fc   : > { %2187 = vrot.lane.b32.xlu2 %v3748_v9, %s3298_s19  ;;  %1946 = vrot.lane.b32.xlu0 %v4430_v39, %s3296_s14 }
 0x2fd   : > { %1942 = vrot.lane.b32.xlu1 %v3776_v20, %s3296_s14 }
 0x2fe   : > { %v1604_v0 = vpop.permute.xlu2 %1603  ;;  %v1501_v31 = vpop.permute.xlu0 %1500 }
 0x2ff   : > { %1748 = vst.msk [vmem:[#allocation3 - $0x2] sm:$0xfc] %vm1747_vm13, %v1604_v0  ;;  %v1497_v42 = vpop.permute.xlu1 %1496 }
 0x300   : > { %1601 = vst.msk [vmem:[#allocation3 + $0xf7] sm:$0xff] %vm1554_vm11, %v1501_v31 }
 0x301   : > { %1599 = vst.msk [vmem:[#allocation3 + $0xef] sm:$0x1] %vm1556_vm12, %v1497_v42 }
 0x304   : > { %1808 = vrot.lane.b32.xlu2 %v3776_v20, %s3297_s0  ;;  %2141 = vrot.lane.b32.xlu0 %v4430_v39, %s3298_s19 }
 0x305   : > { %2137 = vrot.lane.b32.xlu1 %v3776_v20, %s3298_s19 }
 0x306   : > { %v1610_v54 = vpop.permute.xlu2 %1609  ;;  %v1606_v45 = vpop.permute.xlu0 %1605 }
 0x307   : > { %1753 = vst.msk [vmem:[#allocation3 + $0xe] sm:$0xfc] %vm1747_vm13, %v1610_v54  ;;  %v1503_v26 = vpop.permute.xlu1 %1502 }
 0x308   : > { %1750 = vst.msk [vmem:[#allocation3 + $0x6] sm:$0xff] %vm1749_vm14, %v1606_v45 }
 0x309   : > { %1602 = vst.msk [vmem:[#allocation3 + $0xff] sm:$0x1] %vm1556_vm12, %v1503_v26 }
 0x30c   : > { %1944 = vrot.lane.b32.xlu2 %v3782_v23, %s3296_s14  ;;  %1673 = vrot.lane.b32.xlu0 %v3139_v22, %s3295_s26 }
 0x30d   : > { %1669 = vrot.lane.b32.xlu1 %v3746_v8, %s3295_s26  ;;  %v3056_v8 = vld [vmem:[%s5025_s4 + $0x8] sm:$0xff] }
 0x30e   : > { %v1616_v55 = vpop.permute.xlu2 %1615  ;;  %v1612_v57 = vpop.permute.xlu0 %1611  ;;  %2547 = vmatpush.bf16.msra.mxu1 %v3056_v8  ;;  %3061 = vmatpush.bf16.msra.mxu2 %v3056_v8 }
 0x30f   : > { %1756 = vst.msk [vmem:[#allocation3 + $0x1e] sm:$0xfc] %vm1747_vm13, %v1616_v55  ;;  %v1608_v15 = vpop.permute.xlu1 %1607 }
 0x310   : > { %1754 = vst.msk [vmem:[#allocation3 + $0x16] sm:$0xff] %vm1749_vm14, %v1612_v57 }
 0x311   : > { %1752 = vst.msk [vmem:[#allocation3 + $0xe] sm:$0x3] %vm1751_vm15, %v1608_v15 }
 0x312   : > { %2548 = vmatpush.bf16.msra.mxu1 %v3055_v52  ;;  %3062 = vmatpush.bf16.msra.mxu2 %v3055_v52 }
 0x314   : > { %2139 = vrot.lane.b32.xlu2 %v3782_v23, %s3298_s19  ;;  %1996 = vrot.lane.b32.xlu0 %v3811_v37, %s3296_s14 }
 0x315   : > { %1844 = vrot.lane.b32.xlu1 %v3811_v37, %s3297_s0 }
 0x316   : > { %v1803_v46 = vpop.permute.xlu2 %1802  ;;  %v1618_v3 = vpop.permute.xlu0 %1617 }
 0x317   : > { %1898 = vst.msk [vmem:[#allocation3 + $0x8] sm:$0xff] %vm1896_vm2, %v1803_v46  ;;  %v1614_v43 = vpop.permute.xlu1 %1613 }
 0x318   : > { %1757 = vst.msk [vmem:[#allocation3 + $0x26] sm:$0xff] %vm1749_vm14, %v1618_v3 }
 0x319   : > { %1755 = vst.msk [vmem:[#allocation3 + $0x1e] sm:$0x3] %vm1751_vm15, %v1614_v43 }
 0x31c   : > { %1671 = vrot.lane.b32.xlu2 %v3748_v9, %s3295_s26  ;;  %2191 = vrot.lane.b32.xlu0 %v3811_v37, %s3298_s19 }
 0x31d   : > { %1998 = vrot.lane.b32.xlu1 %v3817_v38, %s3296_s14 }
 0x31e   : > { %v1935_v5 = vpop.permute.xlu2 %1934  ;;  %v1931_v10 = vpop.permute.xlu0 %1930 }
 0x31f   : > { %2079 = vst.msk [vmem:[#allocation3 + $0xf] sm:$0x1] %vm2078_vm3, %v1935_v5  ;;  %v1801_v7 = vpop.permute.xlu1 %1800 }
 0x320   : > { %1897 = vst.msk [vmem:[#allocation3] sm:$0xff] %vm1896_vm2, %v1801_v7 }
 0x321   : > { %2075 = vst.msk [vmem:[#allocation3 - $0x1] sm:$0xfe] %vm2074_vm4, %v1931_v10 }
 0x324   : > { %1846 = vrot.lane.b32.xlu2 %v3817_v38, %s3297_s0  ;;  %1621 = vrot.lane.b32.xlu0 %v3776_v20, %s3295_s26 }
 0x325   : > { %2193 = vrot.lane.b32.xlu1 %v3817_v38, %s3298_s19 }
 0x326   : > { %v2130_v9 = vpop.permute.xlu2 %2129  ;;  %v2126_v19 = vpop.permute.xlu0 %2125 }
 0x327   : > { %2270 = vst.msk [vmem:[#allocation3 - $0x2] sm:$0xfc] %vm2269_vm5, %v2126_v19  ;;  %v1933_v63 = vpop.permute.xlu1 %1932 }
 0x328   : > { %2077 = vst.msk [vmem:[#allocation3 + $0x7] sm:$0xff] %vm2076_vm6, %v1933_v63 }
 0x329   : > { %2274 = vst.msk [vmem:[#allocation3 + $0xe] sm:$0x3] %vm2273_vm7, %v2130_v9 }
 0x32c   : > { %2000 = vrot.lane.b32.xlu2 %v3141_v12, %s3296_s14  ;;  %1812 = vrot.lane.b32.xlu0 %v3839_v53, %s3297_s0 }
 0x32d   : > { %1623 = vrot.lane.b32.xlu1 %v3782_v23, %s3295_s26 }
 0x32e   : > { %v1937_v20 = vpop.permute.xlu2 %1936  ;;  %v1805_v49 = vpop.permute.xlu0 %1804 }
 0x32f   : > { %1899 = vst.msk [vmem:[#allocation3 + $0x10] sm:$0xff] %vm1896_vm2, %v1805_v49  ;;  %v2128_v17 = vpop.permute.xlu1 %2127 }
 0x330   : > { %2080 = vst.msk [vmem:[#allocation3 + $0xf] sm:$0xfe] %vm2074_vm4, %v1937_v20 }
 0x331   : > { %2272 = vst.msk [vmem:[#allocation3 + $0x6] sm:$0xff] %vm2271_vm8, %v2128_v17 }
 0x334   : > { %2195 = vrot.lane.b32.xlu2 %v3141_v12, %s3298_s19  ;;  %1950 = vrot.lane.b32.xlu0 %v3847_v58, %s3296_s14 }
 0x335   : > { %1814 = vrot.lane.b32.xlu1 %v3847_v58, %s3297_s0 }
 0x336   : > { %v2132_v30 = vpop.permute.xlu2 %2131  ;;  %v1939_v23 = vpop.permute.xlu0 %1938 }
 0x337   : > { %2275 = vst.msk [vmem:[#allocation3 + $0xe] sm:$0xfc] %vm2269_vm5, %v2132_v30  ;;  %v1807_v29 = vpop.permute.xlu1 %1806 }
 0x338   : > { %1900 = vst.msk [vmem:[#allocation3 + $0x18] sm:$0xff] %vm1896_vm2, %v1807_v29  ;;  %v2320_v18 = vld [vmem:[#allocation3] sm:$0xff]  ;;  %v2321_v22 = vld [vmem:[#allocation3 + $0x8] sm:$0xff] }
 0x339   : > { %2081 = vst.msk [vmem:[#allocation3 + $0x17] sm:$0xff] %vm2076_vm6, %v1939_v23  ;;  %v2352_v62 = vpack.c.bf16 %v2320_v18, %v2320_v18  ;;  %v2353_v34 = vpack.c.bf16 %v2321_v22, %v2321_v22 }
 0x33b   : > { %v2425_v6 = vunpack.c.l.b16 %v2352_v62  ;;  %v2426_v25 = vunpack.c.l.b16 %v2353_v34 }
 0x33c   : > { %1625 = vrot.lane.b32.xlu2 %v4430_v39, %s3295_s26  ;;  %2145 = vrot.lane.b32.xlu0 %v3847_v58, %s3298_s19 }
 0x33d   : > { %1952 = vrot.lane.b32.xlu1 %v3142_v24, %s3296_s14  ;;  %v2457_v28 = vpack.c.b16 %v2426_v25, %v2425_v6 }
 0x33e   : > { %v1664_v4 = vpop.permute.xlu2 %1663  ;;  %v2134_v35 = vpop.permute.xlu0 %2133 }
 0x33f   : > { %3009 = vmatmul.msk.bf16.vlgmr.msra.gmra.mxu1 %vm2488_vm9, %v2457_v28  ;;  %1780 = vst.msk [vmem:[#allocation3 + $0x9e] sm:$0xfc] %vm1747_vm13, %v1664_v4  ;;  %v1941_v36 = vpop.permute.xlu1 %1940 }
 0x340   : > { %2276 = vst.msk [vmem:[#allocation3 + $0x16] sm:$0xff] %vm2271_vm8, %v2134_v35  ;;  %v3144_v35 = vld [vmem:[#allocation2 + $0xa0] sm:$0x3] }
 0x341   : > { %2082 = vst.msk [vmem:[#allocation3 + $0x1f] sm:$0x1] %vm2078_vm3, %v1941_v36 }
 0x344   : > { %1948 = vrot.lane.b32.xlu2 %v3839_v53, %s3296_s14  ;;  %1677 = vrot.lane.b32.xlu0 %v3817_v38, %s3295_s26 }
 0x345   : > { %2147 = vrot.lane.b32.xlu1 %v3142_v24, %s3298_s19 }
 0x346   : > { %v1841_v39 = vpop.permute.xlu2 %1840  ;;  %v1666_v0 = vpop.permute.xlu0 %1665 }
 0x347   : > { %1781 = vst.msk [vmem:[#allocation3 + $0xa6] sm:$0xff] %vm1749_vm14, %v1666_v0  ;;  %v2136_v31 = vpop.permute.xlu1 %2135  ;;  %v2322_v42 = vld [vmem:[#allocation3 + $0x10] sm:$0xff] }
 0x348   : > { %1917 = vst.msk [vmem:[#allocation3 + $0xa0] sm:$0xff] %vm1896_vm2, %v1841_v39  ;;  %v2354_v26 = vpack.c.bf16 %v2322_v42, %v2322_v42 }
 0x349   : > { %2277 = vst.msk [vmem:[#allocation3 + $0x1e] sm:$0x3] %vm2273_vm7, %v2136_v31 }
 0x34a   : > { %v2427_v61 = vunpack.c.l.b16 %v2354_v26 }
 0x34c   : > { %2143 = vrot.lane.b32.xlu2 %v3839_v53, %s3298_s19  ;;  %1850 = vrot.lane.b32.xlu0 %v3880_v14, %s3297_s0 }
 0x34d   : > { %1679 = vrot.lane.b32.xlu1 %v3141_v12, %s3295_s26 }
 0x34e   : > { %v1993_v38 = vpop.permute.xlu2 %1992  ;;  %v1843_v54 = vpop.permute.xlu0 %1842 }
 0x34f   : > { %v1668_v45 = vpop.permute.xlu1 %1667 }
 0x350   : > { %1782 = vst.msk [vmem:[#allocation3 + $0xae] sm:$0x3] %vm1751_vm15, %v1668_v45  ;;  %v2323_v55 = vld [vmem:[#allocation3 + $0x18] sm:$0xff] }
 0x351   : > { %1918 = vst.msk [vmem:[#allocation3 + $0xa8] sm:$0xff] %vm1896_vm2, %v1843_v54  ;;  %v2355_v57 = vpack.c.bf16 %v2323_v55, %v2323_v55 }
 0x352   : > { %2108 = vst.msk [vmem:[#allocation3 + $0xa7] sm:$0xff] %vm2076_vm6, %v1993_v38  ;;  %v3145_v38 = vld [vmem:[#allocation2 + $0x178] sm:$0x3] }
 0x353   : > { %v2428_v15 = vunpack.c.l.b16 %v2355_v57 }
 0x354   : > { %1675 = vrot.lane.b32.xlu2 %v3811_v37, %s3295_s26  ;;  %2006 = vrot.lane.b32.xlu0 %v4535_v60, %s3296_s14 }
 0x355   : > { %2002 = vrot.lane.b32.xlu1 %v3873_v11, %s3296_s14  ;;  %v2458_v44 = vpack.c.b16 %v2428_v15, %v2427_v61 }
 0x356   : > { %v2188_v2 = vpop.permute.xlu2 %2187  ;;  %v1995_v8 = vpop.permute.xlu0 %1994 }
 0x357   : > { %3010 = vmatmul.msk.bf16.gmra.mxu1 %vm2488_vm9, %v2458_v44  ;;  %2109 = vst.msk [vmem:[#allocation3 + $0xaf] sm:$0x1] %vm2078_vm3, %v1995_v8  ;;  %v1991_v46 = vpop.permute.xlu1 %1990 }
 0x358   : > { %2107 = vst.msk [vmem:[#allocation3 + $0x9f] sm:$0xfe] %vm2074_vm4, %v1991_v46 }
 0x359   : > { %2303 = vst.msk [vmem:[#allocation3 + $0xa6] sm:$0xff] %vm2271_vm8, %v2188_v2 }
 0x35c   : > { %1848 = vrot.lane.b32.xlu2 %v3873_v11, %s3297_s0  ;;  %2201 = vrot.lane.b32.xlu0 %v4535_v60, %s3298_s19 }
 0x35d   : > { %2197 = vrot.lane.b32.xlu1 %v3873_v11, %s3298_s19 }
 0x35e   : > { %v1809_v37 = vpop.permute.xlu2 %1808  ;;  %v2190_v3 = vpop.permute.xlu0 %2189 }
 0x35f   : > { %1901 = vst.msk [vmem:[#allocation3 + $0x20] sm:$0xff] %vm1896_vm2, %v1809_v37  ;;  %v2186_v43 = vpop.permute.xlu1 %2185 }
 0x360   : > { %2304 = vst.msk [vmem:[#allocation3 + $0xae] sm:$0x3] %vm2273_vm7, %v2190_v3 }
 0x361   : > { %2302 = vst.msk [vmem:[#allocation3 + $0x9e] sm:$0xfc] %vm2269_vm5, %v2186_v43 }
 0x364   : > { %2004 = vrot.lane.b32.xlu2 %v3880_v14, %s3296_s14  ;;  %1631 = vrot.lane.b32.xlu0 %v3142_v24, %s3295_s26 }
 0x365   : > { %1627 = vrot.lane.b32.xlu1 %v3839_v53, %s3295_s26 }
 0x366   : > { %v1945_v52 = vpop.permute.xlu2 %1944  ;;  %v1811_v5 = vpop.permute.xlu0 %1810 }
 0x367   : > { %v1620_v10 = vpop.permute.xlu1 %1619  ;;  %v2341_v7 = vld [vmem:[#allocation3 + $0xa8] sm:$0xff] }
 0x368   : > { %1758 = vst.msk [vmem:[#allocation3 + $0x2e] sm:$0x3] %vm1751_vm15, %v1620_v10  ;;  %v2340_v9 = vld [vmem:[#allocation3 + $0xa0] sm:$0xff]  ;;  %v2373_v19 = vpack.c.bf16 %v2341_v7, %v2341_v7 }
 0x369   : > { %1902 = vst.msk [vmem:[#allocation3 + $0x28] sm:$0xff] %vm1896_vm2, %v1811_v5  ;;  %v2372_v63 = vpack.c.bf16 %v2340_v9, %v2340_v9 }
 0x36a   : > { %2084 = vst.msk [vmem:[#allocation3 + $0x27] sm:$0xff] %vm2076_vm6, %v1945_v52  ;;  %v2446_v12 = vunpack.c.l.b16 %v2373_v19  ;;  %v4634_v52 = vld [vmem:[#allocation2 + $0xb8] sm:$0x3] }
 0x36b   : > { %v2445_v20 = vunpack.c.l.b16 %v2372_v63 }
 0x36c   : > { %2199 = vrot.lane.b32.xlu2 %v3880_v14, %s3298_s19  ;;  %1954 = vrot.lane.b32.xlu0 %v3905_v32, %s3296_s14 }
 0x36d   : > { %1816 = vrot.lane.b32.xlu1 %v3905_v32, %s3297_s0  ;;  %v2467_v53 = vpack.c.b16 %v2446_v12, %v2445_v20 }
 0x36e   : > { %v2140_v49 = vpop.permute.xlu2 %2139  ;;  %v1947_v17 = vpop.permute.xlu0 %1946 }
 0x36f   : > { %3019 = vmatmul.msk.bf16.vlgmr.msra.gmra.mxu2 %vm2488_vm9, %v2467_v53  ;;  %2085 = vst.msk [vmem:[#allocation3 + $0x2f] sm:$0x1] %vm2078_vm3, %v1947_v17  ;;  %v1943_v30 = vpop.permute.xlu1 %1942 }
 0x370   : > { %2083 = vst.msk [vmem:[#allocation3 + $0x1f] sm:$0xfe] %vm2074_vm4, %v1943_v30 }
 0x371   : > { %2279 = vst.msk [vmem:[#allocation3 + $0x26] sm:$0xff] %vm2271_vm8, %v2140_v49  ;;  %v4660_v49 = vld [vmem:[%s5026_s5] ss:$0 sm:$0xff] }
 0x374   : > { %1629 = vrot.lane.b32.xlu2 %v3847_v58, %s3295_s26  ;;  %2149 = vrot.lane.b32.xlu0 %v3905_v32, %s3298_s19 }
 0x375   : > { %1956 = vrot.lane.b32.xlu1 %v3913_v40, %s3296_s14 }
 0x376   : > { %v1672_v23 = vpop.permute.xlu2 %1671  ;;  %v2142_v29 = vpop.permute.xlu0 %2141 }
 0x377   : > { %1784 = vst.msk [vmem:[#allocation3 + $0xb6] sm:$0xff] %vm1749_vm14, %v1672_v23  ;;  %v2138_v18 = vpop.permute.xlu1 %2137 }
 0x378   : > { %2280 = vst.msk [vmem:[#allocation3 + $0x2e] sm:$0x3] %vm2273_vm7, %v2142_v29 }
 0x379   : > { %2278 = vst.msk [vmem:[#allocation3 + $0x1e] sm:$0xfc] %vm2269_vm5, %v2138_v18 }
 0x37c   : > { %1818 = vrot.lane.b32.xlu2 %v3913_v40, %s3297_s0  ;;  %1681 = vrot.lane.b32.xlu0 %v3873_v11, %s3295_s26 }
 0x37d   : > { %2151 = vrot.lane.b32.xlu1 %v3913_v40, %s3298_s19 }
 0x37e   : > { %v1847_v58 = vpop.permute.xlu2 %1846  ;;  %v1674_v22 = vpop.permute.xlu0 %1673 }
 0x37f   : > { %1785 = vst.msk [vmem:[#allocation3 + $0xbe] sm:$0x3] %vm1751_vm15, %v1674_v22  ;;  %v1670_v62 = vpop.permute.xlu1 %1669  ;;  %v2325_v34 = vld [vmem:[#allocation3 + $0x28] sm:$0xff] }
 0x380   : > { %1920 = vst.msk [vmem:[#allocation3 + $0xb8] sm:$0xff] %vm1896_vm2, %v1847_v58  ;;  %v2324_v6 = vld [vmem:[#allocation3 + $0x20] sm:$0xff]  ;;  %v2357_v25 = vpack.c.bf16 %v2325_v34, %v2325_v34 }
 0x381   : > { %1783 = vst.msk [vmem:[#allocation3 + $0xae] sm:$0xfc] %vm1747_vm13, %v1670_v62  ;;  %v2356_v24 = vpack.c.bf16 %v2324_v6, %v2324_v6  ;;  %v4668_v62 = vld [vmem:[#allocation2 + $0x180] sm:$0xff] }
 0x382   : > { %v2430_v28 = vunpack.c.l.b16 %v2357_v25 }
 0x383   : > { %v2429_v4 = vunpack.c.l.b16 %v2356_v24 }
 0x384   : > { %1958 = vrot.lane.b32.xlu2 %v3144_v35, %s3296_s14  ;;  %1852 = vrot.lane.b32.xlu0 %v3935_v59, %s3297_s0 }
 0x385   : > { %1683 = vrot.lane.b32.xlu1 %v3880_v14, %s3295_s26  ;;  %v2459_v11 = vpack.c.b16 %v2430_v28, %v2429_v4 }
 0x386   : > { %v2001_v36 = vpop.permute.xlu2 %2000  ;;  %v1997_v39 = vpop.permute.xlu0 %1996 }
 0x387   : > { %3011 = vmatmul.msk.bf16.gmra.mxu1 %vm2488_vm9, %v2459_v11  ;;  %2112 = vst.msk [vmem:[#allocation3 + $0xbf] sm:$0x1] %vm2078_vm3, %v2001_v36  ;;  %v1845_v0 = vpop.permute.xlu1 %1844  ;;  %v3148_v36 = vld [vmem:[#allocation2 + $0x188] sm:$0xff] }
 0x388   : > { %1919 = vst.msk [vmem:[#allocation3 + $0xb0] sm:$0xff] %vm1896_vm2, %v1845_v0 }
 0x389   : > { %2110 = vst.msk [vmem:[#allocation3 + $0xaf] sm:$0xfe] %vm2074_vm4, %v1997_v39 }
 0x38c   : > { %2153 = vrot.lane.b32.xlu2 %v3144_v35, %s3298_s19  ;;  %2010 = vrot.lane.b32.xlu0 %v3943_v1, %s3296_s14 }
 0x38d   : > { %1854 = vrot.lane.b32.xlu1 %v3943_v1, %s3297_s0 }
 0x38e   : > { %v2196_v14 = vpop.permute.xlu2 %2195  ;;  %v2192_v31 = vpop.permute.xlu0 %2191 }
 0x38f   : > { %2305 = vst.msk [vmem:[#allocation3 + $0xae] sm:$0xfc] %vm2269_vm5, %v2192_v31  ;;  %v1999_v42 = vpop.permute.xlu1 %1998 }
 0x390   : > { %2111 = vst.msk [vmem:[#allocation3 + $0xb7] sm:$0xff] %vm2076_vm6, %v1999_v42 }
 0x391   : > { %2307 = vst.msk [vmem:[#allocation3 + $0xbe] sm:$0x3] %vm2273_vm7, %v2196_v14 }
 0x394   : > { %1685 = vrot.lane.b32.xlu2 %v4535_v60, %s3295_s26  ;;  %2205 = vrot.lane.b32.xlu0 %v3943_v1, %s3298_s19 }
 0x395   : > { %2012 = vrot.lane.b32.xlu1 %v3145_v38, %s3296_s14 }
 0x396   : > { %v1626_v54 = vpop.permute.xlu2 %1625  ;;  %v1622_v45 = vpop.permute.xlu0 %1621 }
 0x397   : > { %1761 = vst.msk [vmem:[#allocation3 + $0x3e] sm:$0x3] %vm1751_vm15, %v1626_v54  ;;  %v2194_v26 = vpop.permute.xlu1 %2193 }
 0x398   : > { %1759 = vst.msk [vmem:[#allocation3 + $0x2e] sm:$0xfc] %vm1747_vm13, %v1622_v45 }
 0x399   : > { %2306 = vst.msk [vmem:[#allocation3 + $0xb6] sm:$0xff] %vm2271_vm8, %v2194_v26 }
 0x39c   : > { %2008 = vrot.lane.b32.xlu2 %v3935_v59, %s3296_s14  ;;  %1635 = vrot.lane.b32.xlu0 %v3913_v40, %s3295_s26 }
 0x39d   : > { %2207 = vrot.lane.b32.xlu1 %v3145_v38, %s3298_s19 }
 0x39e   : > { %v1949_v55 = vpop.permute.xlu2 %1948  ;;  %v1813_v57 = vpop.permute.xlu0 %1812 }
 0x39f   : > { %v1624_v61 = vpop.permute.xlu1 %1623 }
 0x3a0   : > { %1760 = vst.msk [vmem:[#allocation3 + $0x36] sm:$0xff] %vm1749_vm14, %v1624_v61  ;;  %v2342_v15 = vld [vmem:[#allocation3 + $0xb0] sm:$0xff]  ;;  %v2343_v60 = vld [vmem:[#allocation3 + $0xb8] sm:$0xff] }
 0x3a1   : > { %1903 = vst.msk [vmem:[#allocation3 + $0x30] sm:$0xff] %vm1896_vm2, %v1813_v57  ;;  %v2374_v44 = vpack.c.bf16 %v2342_v15, %v2342_v15  ;;  %v2375_v2 = vpack.c.bf16 %v2343_v60, %v2343_v60 }
 0x3a2   : > { %2086 = vst.msk [vmem:[#allocation3 + $0x2f] sm:$0xfe] %vm2074_vm4, %v1949_v55 }
 0x3a3   : > { %v2447_v8 = vunpack.c.l.b16 %v2374_v44  ;;  %v2448_v46 = vunpack.c.l.b16 %v2375_v2 }
 0x3a4   : > { %2203 = vrot.lane.b32.xlu2 %v3935_v59, %s3298_s19  ;;  %1822 = vrot.lane.b32.xlu0 %v3975_v27, %s3297_s0 }
 0x3a5   : > { %1637 = vrot.lane.b32.xlu1 %v3144_v35, %s3295_s26  ;;  %v2468_v40 = vpack.c.b16 %v2448_v46, %v2447_v8 }
 0x3a6   : > { %v2144_v37 = vpop.permute.xlu2 %2143  ;;  %v1951_v3 = vpop.permute.xlu0 %1950 }
 0x3a7   : > { %3020 = vmatmul.msk.bf16.gmra.mxu2 %vm2488_vm9, %v2468_v40  ;;  %2281 = vst.msk [vmem:[#allocation3 + $0x2e] sm:$0xfc] %vm2269_vm5, %v2144_v37  ;;  %v1815_v43 = vpop.permute.xlu1 %1814 }
 0x3a8   : > { %1904 = vst.msk [vmem:[#allocation3 + $0x38] sm:$0xff] %vm1896_vm2, %v1815_v43 }
 0x3a9   : > { %2087 = vst.msk [vmem:[#allocation3 + $0x37] sm:$0xff] %vm2076_vm6, %v1951_v3 }
 0x3ac   : > { %1633 = vrot.lane.b32.xlu2 %v3905_v32, %s3295_s26  ;;  %1964 = vrot.lane.b32.xlu0 %v4634_v52, %s3296_s14 }
 0x3ad   : > { %1960 = vrot.lane.b32.xlu1 %v3967_v21, %s3296_s14 }
 0x3ae   : > { %v1676_v5 = vpop.permute.xlu2 %1675  ;;  %v2146_v10 = vpop.permute.xlu0 %2145 }
 0x3af   : > { %1786 = vst.msk [vmem:[#allocation3 + $0xbe] sm:$0xfc] %vm1747_vm13, %v1676_v5  ;;  %v1953_v7 = vpop.permute.xlu1 %1952 }
 0x3b0   : > { %2282 = vst.msk [vmem:[#allocation3 + $0x36] sm:$0xff] %vm2271_vm8, %v2146_v10 }
 0x3b1   : > { %2088 = vst.msk [vmem:[#allocation3 + $0x3f] sm:$0x1] %vm2078_vm3, %v1953_v7 }
 0x3b4   : > { %1820 = vrot.lane.b32.xlu2 %v3967_v21, %s3297_s0  ;;  %2159 = vrot.lane.b32.xlu0 %v4634_v52, %s3298_s19 }
 0x3b5   : > { %2155 = vrot.lane.b32.xlu1 %v3967_v21, %s3298_s19 }
 0x3b6   : > { %v1849_v32 = vpop.permute.xlu2 %1848  ;;  %v1678_v9 = vpop.permute.xlu0 %1677 }
 0x3b7   : > { %1787 = vst.msk [vmem:[#allocation3 + $0xc6] sm:$0xff] %vm1749_vm14, %v1678_v9  ;;  %v2148_v19 = vpop.permute.xlu1 %2147  ;;  %v2326_v12 = vld [vmem:[#allocation3 + $0x30] sm:$0xff] }
 0x3b8   : > { %1921 = vst.msk [vmem:[#allocation3 + $0xc0] sm:$0xff] %vm1896_vm2, %v1849_v32  ;;  %v2358_v30 = vpack.c.bf16 %v2326_v12, %v2326_v12 }
 0x3b9   : > { %2283 = vst.msk [vmem:[#allocation3 + $0x3e] sm:$0x3] %vm2273_vm7, %v2148_v19 }
 0x3bc   : > { %v2550_v63 = vpop.f32.mrf.mxu1  ;;  %1962 = vrot.lane.b32.xlu2 %v3975_v27, %s3296_s14  ;;  %1691 = vrot.lane.b32.xlu0 %v3145_v38, %s3295_s26 }
 0x3bd   : > { %1687 = vrot.lane.b32.xlu1 %v3935_v59, %s3295_s26  ;;  %v2551_v18 = vadd.f32 %v4660_v49, %v2550_v63  ;;  %v2431_v59 = vunpack.c.l.b16 %v2358_v30 }
 0x3be   : > { %v2005_v20 = vpop.permute.xlu2 %2004  ;;  %v1851_v53 = vpop.permute.xlu0 %1850 }
 0x3bf   : > { %v1680_v17 = vpop.permute.xlu1 %1679  ;;  %v2630_v28 = vmax.f32 %v2551_v18, 0.0 }
 0x3c0   : > { %1788 = vst.msk [vmem:[#allocation3 + $0xce] sm:$0x3] %vm1751_vm15, %v1680_v17  ;;  %v2327_v23 = vld [vmem:[#allocation3 + $0x38] sm:$0xff]  ;;  %v4738_v17 = vld [vmem:[#allocation2 + $0x1a0] sm:$0xff] }
 0x3c1   : > { %1922 = vst.msk [vmem:[#allocation3 + $0xc8] sm:$0xff] %vm1896_vm2, %v1851_v53  ;;  %v2359_v29 = vpack.c.bf16 %v2327_v23, %v2327_v23 }
 0x3c2   : > { %2114 = vst.msk [vmem:[#allocation3 + $0xc7] sm:$0xff] %vm2076_vm6, %v2005_v20 }
 0x3c3   : > { %v2432_v58 = vunpack.c.l.b16 %v2359_v29 }
 0x3c4   : > { %v2552_v22 = vpop.f32.mrf.mxu1  ;;  %2157 = vrot.lane.b32.xlu2 %v3975_v27, %s3298_s19  ;;  %2014 = vrot.lane.b32.xlu0 %v4668_v62, %s3296_s14 }
 0x3c5   : > { %v2553_v34 = vadd.f32 %v4660_v49, %v2552_v22  ;;  %1856 = vrot.lane.b32.xlu1 %v4668_v62, %s3297_s0  ;;  %v2460_v6 = vpack.c.b16 %v2432_v58, %v2431_v59 }
 0x3c6   : > { %v2200_v25 = vpop.permute.xlu2 %2199  ;;  %v2007_v24 = vpop.permute.xlu0 %2006 }
 0x3c7   : > { %v2631_v4 = vmax.f32 %v2553_v34, 0.0  ;;  %3012 = vmatmul.msk.bf16.gmra.mxu1 %vm2488_vm9, %v2460_v6  ;;  %2115 = vst.msk [vmem:[#allocation3 + $0xcf] sm:$0x1] %vm2078_vm3, %v2007_v24  ;;  %v2003_v35 = vpop.permute.xlu1 %2002  ;;  %v3150_v6 = vld [vmem:[#allocation2 + $0x190] sm:$0x3] }
 0x3c8   : > { %2113 = vst.msk [vmem:[#allocation3 + $0xbf] sm:$0xfe] %vm2074_vm4, %v2003_v35 }
 0x3c9   : > { %2309 = vst.msk [vmem:[#allocation3 + $0xc6] sm:$0xff] %vm2271_vm8, %v2200_v25  ;;  %v4679_v11 = vpack.c.bf16 %v2631_v4, %v2630_v28 }
 0x3cc   : > { %1689 = vrot.lane.b32.xlu2 %v3943_v1, %s3295_s26  ;;  %2209 = vrot.lane.b32.xlu0 %v4668_v62, %s3298_s19 }
 0x3cd   : > { %2016 = vrot.lane.b32.xlu1 %v3148_v36, %s3296_s14 }
 0x3ce   : > { %v1630_v39 = vpop.permute.xlu2 %1629  ;;  %v2202_v0 = vpop.permute.xlu0 %2201 }
 0x3cf   : > { %1763 = vst.msk [vmem:[#allocation3 + $0x46] sm:$0xff] %vm1749_vm14, %v1630_v39  ;;  %v2198_v14 = vpop.permute.xlu1 %2197  ;;  %v803_v39 = vld [vmem:[#allocation2 + $0x198] sm:$0xff] }
 0x3d0   : > { %2310 = vst.msk [vmem:[#allocation3 + $0xce] sm:$0x3] %vm2273_vm7, %v2202_v0 }
 0x3d1   : > { %2308 = vst.msk [vmem:[#allocation3 + $0xbe] sm:$0xfc] %vm2269_vm5, %v2198_v14 }
 0x3d4   : > { %v2555_v31 = vpop.f32.mrf.mxu1  ;;  %1858 = vrot.lane.b32.xlu2 %v3148_v36, %s3297_s0  ;;  %1639 = vrot.lane.b32.xlu0 %v3967_v21, %s3295_s26 }
 0x3d5   : > { %2211 = vrot.lane.b32.xlu1 %v3148_v36, %s3298_s19  ;;  %v2556_v61 = vadd.f32 %v4660_v49, %v2555_v31 }
 0x3d6   : > { %v1819_v1 = vpop.permute.xlu2 %1818  ;;  %v1632_v42 = vpop.permute.xlu0 %1631 }
 0x3d7   : > { %1764 = vst.msk [vmem:[#allocation3 + $0x4e] sm:$0x3] %vm1751_vm15, %v1632_v42  ;;  %v1628_v38 = vpop.permute.xlu1 %1627  ;;  %v2345_v54 = vld [vmem:[#allocation3 + $0xc8] sm:$0xff]  ;;  %v2632_v46 = vmax.f32 %v2556_v61, 0.0 }
 0x3d8   : > { %1906 = vst.msk [vmem:[#allocation3 + $0x48] sm:$0xff] %vm1896_vm2, %v1819_v1  ;;  %v2344_v45 = vld [vmem:[#allocation3 + $0xc0] sm:$0xff]  ;;  %v2377_v26 = vpack.c.bf16 %v2345_v54, %v2345_v54 }
 0x3d9   : > { %1762 = vst.msk [vmem:[#allocation3 + $0x3e] sm:$0xfc] %vm1747_vm13, %v1628_v38  ;;  %v2376_v55 = vpack.c.bf16 %v2344_v45, %v2344_v45 }
 0x3da   : > { %v2450_v57 = vunpack.c.l.b16 %v2377_v26 }
 0x3db   : > { %v2449_v15 = vunpack.c.l.b16 %v2376_v55 }
 0x3dc   : > { %v2557_v21 = vpop.f32.mrf.mxu1  ;;  %2018 = vrot.lane.b32.xlu2 %v4323_v51, %s3296_s14  ;;  %1824 = vrot.lane.b32.xlu0 %v3997_v47, %s3297_s0 }
 0x3dd   : > { %v2558_v60 = vadd.f32 %v4660_v49, %v2557_v21  ;;  %1641 = vrot.lane.b32.xlu1 %v3975_v27, %s3295_s26  ;;  %v2469_v44 = vpack.c.b16 %v2450_v57, %v2449_v15 }
 0x3de   : > { %v1959_v2 = vpop.permute.xlu2 %1958  ;;  %v1955_v8 = vpop.permute.xlu0 %1954 }
 0x3df   : > { %v2633_v40 = vmax.f32 %v2558_v60, 0.0  ;;  %3021 = vmatmul.msk.bf16.gmra.mxu2 %vm2488_vm9, %v2469_v44  ;;  %2091 = vst.msk [vmem:[#allocation3 + $0x4f] sm:$0x1] %vm2078_vm3, %v1959_v2  ;;  %v1817_v37 = vpop.permute.xlu1 %1816 }
 0x3e0   : > { %1905 = vst.msk [vmem:[#allocation3 + $0x40] sm:$0xff] %vm1896_vm2, %v1817_v37 }
 0x3e1   : > { %2089 = vst.msk [vmem:[#allocation3 + $0x3f] sm:$0xfe] %vm2074_vm4, %v1955_v8  ;;  %v4708_v3 = vpack.c.bf16 %v2633_v40, %v2632_v46 }
 0x3e4   : > { %2213 = vrot.lane.b32.xlu2 %v4323_v51, %s3298_s19  ;;  %1968 = vrot.lane.b32.xlu0 %v4003_v48, %s3296_s14  ;;  %v4723_v51 = vld [vmem:[#allocation2 + $0xd0] sm:$0x3] }
 0x3e5   : > { %1826 = vrot.lane.b32.xlu1 %v4003_v48, %s3297_s0 }
 0x3e6   : > { %v2154_v27 = vpop.permute.xlu2 %2153  ;;  %v2150_v43 = vpop.permute.xlu0 %2149 }
 0x3e7   : > { %2284 = vst.msk [vmem:[#allocation3 + $0x3e] sm:$0xfc] %vm2269_vm5, %v2150_v43  ;;  %v1957_v5 = vpop.permute.xlu1 %1956 }
 0x3e8   : > { %2090 = vst.msk [vmem:[#allocation3 + $0x47] sm:$0xff] %vm2076_vm6, %v1957_v5 }
 0x3e9   : > { %2286 = vst.msk [vmem:[#allocation3 + $0x4e] sm:$0x3] %vm2273_vm7, %v2154_v27 }
 0x3ec   : > { %1643 = vrot.lane.b32.xlu2 %v4634_v52, %s3295_s26  ;;  %2163 = vrot.lane.b32.xlu0 %v4003_v48, %s3298_s19 }
 0x3ed   : > { %1970 = vrot.lane.b32.xlu1 %v4723_v51, %s3296_s14 }
 0x3ee   : > { %v1686_v10 = vpop.permute.xlu2 %1685  ;;  %v1682_v7 = vpop.permute.xlu0 %1681 }
 0x3ef   : > { %1791 = vst.msk [vmem:[#allocation3 + $0xde] sm:$0x3] %vm1751_vm15, %v1686_v10  ;;  %v2152_v32 = vpop.permute.xlu1 %2151 }
 0x3f0   : > { %1789 = vst.msk [vmem:[#allocation3 + $0xce] sm:$0xfc] %vm1747_vm13, %v1682_v7 }
 0x3f1   : > { %2285 = vst.msk [vmem:[#allocation3 + $0x46] sm:$0xff] %vm2271_vm8, %v2152_v32 }
 0x3f2   : > { %v2600_v9 = vpop.f32.mrf.mxu2 }
 0x3f3   : > { %v2601_v53 = vadd.f32 %v4660_v49, %v2600_v9 }
 0x3f4   : > { %1966 = vrot.lane.b32.xlu2 %v3997_v47, %s3296_s14  ;;  %1695 = vrot.lane.b32.xlu0 %v3148_v36, %s3295_s26  ;;  %v805_v36 = vld [vmem:[#allocation2 + $0x1a8] sm:$0x3] }
 0x3f5   : > { %2165 = vrot.lane.b32.xlu1 %v4723_v51, %s3298_s19  ;;  %v2650_v22 = vmax.f32 %v2601_v53, 0.0 }
 0x3f6   : > { %v2009_v52 = vpop.permute.xlu2 %2008  ;;  %v1853_v19 = vpop.permute.xlu0 %1852 }
 0x3f7   : > { %v1684_v63 = vpop.permute.xlu1 %1683 }
 0x3f8   : > { %1790 = vst.msk [vmem:[#allocation3 + $0xd6] sm:$0xff] %vm1749_vm14, %v1684_v63  ;;  %v2328_v12 = vld [vmem:[#allocation3 + $0x40] sm:$0xff]  ;;  %v2329_v20 = vld [vmem:[#allocation3 + $0x48] sm:$0xff] }
 0x3f9   : > { %1923 = vst.msk [vmem:[#allocation3 + $0xd0] sm:$0xff] %vm1896_vm2, %v1853_v19  ;;  %v2360_v30 = vpack.c.bf16 %v2328_v12, %v2328_v12  ;;  %v2361_v23 = vpack.c.bf16 %v2329_v20, %v2329_v20 }
 0x3fa   : > { %v2602_v29 = vpop.f32.mrf.mxu2  ;;  %2116 = vst.msk [vmem:[#allocation3 + $0xcf] sm:$0xfe] %vm2074_vm4, %v2009_v52 }
 0x3fb   : > { %v2603_v18 = vadd.f32 %v4660_v49, %v2602_v29  ;;  %v2433_v59 = vunpack.c.l.b16 %v2360_v30  ;;  %v2434_v58 = vunpack.c.l.b16 %v2361_v23  ;;  %v3151_v29 = vld [vmem:[#allocation2 + $0xe8] sm:$0x3] }
 0x3fc   : > { %2161 = vrot.lane.b32.xlu2 %v3997_v47, %s3298_s19  ;;  %1862 = vrot.lane.b32.xlu0 %v4738_v17, %s3297_s0 }
 0x3fd   : > { %v2651_v34 = vmax.f32 %v2603_v18, 0.0  ;;  %1697 = vrot.lane.b32.xlu1 %v3150_v6, %s3295_s26  ;;  %v2461_v25 = vpack.c.b16 %v2434_v58, %v2433_v59 }
 0x3fe   : > { %v2204_v24 = vpop.permute.xlu2 %2203  ;;  %v2011_v28 = vpop.permute.xlu0 %2010 }
 0x3ff   : > { %3013 = vmatmul.msk.bf16.gmra.mxu1 %vm2488_vm9, %v2461_v25  ;;  %2311 = vst.msk [vmem:[#allocation3 + $0xce] sm:$0xfc] %vm2269_vm5, %v2204_v24  ;;  %v1855_v4 = vpop.permute.xlu1 %1854  ;;  %v4749_v35 = vpack.c.bf16 %v2651_v34, %v2650_v22 }
 0x400   : > { %1924 = vst.msk [vmem:[#allocation3 + $0xd8] sm:$0xff] %vm1896_vm2, %v1855_v4 }
 0x401   : > { %2117 = vst.msk [vmem:[#allocation3 + $0xd7] sm:$0xff] %vm2076_vm6, %v2011_v28 }
 0x404   : > { %v2560_v0 = vpop.f32.mrf.mxu1  ;;  %1693 = vrot.lane.b32.xlu2 %v4668_v62, %s3295_s26  ;;  %2024 = vrot.lane.b32.xlu0 %v805_v36, %s3296_s14 }
 0x405   : > { %2020 = vrot.lane.b32.xlu1 %v803_v39, %s3296_s14  ;;  %v2561_v42 = vadd.f32 %v4660_v49, %v2560_v0 }
 0x406   : > { %v1634_v14 = vpop.permute.xlu2 %1633  ;;  %v2206_v31 = vpop.permute.xlu0 %2205 }
 0x407   : > { %1765 = vst.msk [vmem:[#allocation3 + $0x4e] sm:$0xfc] %vm1747_vm13, %v1634_v14  ;;  %v2013_v1 = vpop.permute.xlu1 %2012  ;;  %v2634_v26 = vmax.f32 %v2561_v42, 0.0 }
 0x408   : > { %2312 = vst.msk [vmem:[#allocation3 + $0xd6] sm:$0xff] %vm2271_vm8, %v2206_v31 }
 0x409   : > { %2118 = vst.msk [vmem:[#allocation3 + $0xdf] sm:$0x1] %vm2078_vm3, %v2013_v1 }
 0x40c   : > { %v2562_v38 = vpop.f32.mrf.mxu1  ;;  %1860 = vrot.lane.b32.xlu2 %v803_v39, %s3297_s0  ;;  %2219 = vrot.lane.b32.xlu0 %v805_v36, %s3298_s19  ;;  %v3152_v36 = vld [vmem:[#allocation2 + $0x100] sm:$0x3] }
 0x40d   : > { %v2563_v62 = vadd.f32 %v4660_v49, %v2562_v38  ;;  %2215 = vrot.lane.b32.xlu1 %v803_v39, %s3298_s19 }
 0x40e   : > { %v1821_v54 = vpop.permute.xlu2 %1820  ;;  %v1636_v45 = vpop.permute.xlu0 %1635 }
 0x40f   : > { %v2635_v55 = vmax.f32 %v2563_v62, 0.0  ;;  %1766 = vst.msk [vmem:[#allocation3 + $0x56] sm:$0xff] %vm1749_vm14, %v1636_v45  ;;  %v2208_v57 = vpop.permute.xlu1 %2207  ;;  %v2346_v15 = vld [vmem:[#allocation3 + $0xd0] sm:$0xff] }
 0x410   : > { %1907 = vst.msk [vmem:[#allocation3 + $0x50] sm:$0xff] %vm1896_vm2, %v1821_v54  ;;  %v2378_v2 = vpack.c.bf16 %v2346_v15, %v2346_v15 }
 0x411   : > { %2313 = vst.msk [vmem:[#allocation3 + $0xde] sm:$0x3] %vm2273_vm7, %v2208_v57  ;;  %v4768_v61 = vpack.c.bf16 %v2635_v55, %v2634_v26 }
 0x412   : > { %v2451_v40 = vunpack.c.l.b16 %v2378_v2 }
 0x414   : > { %2022 = vrot.lane.b32.xlu2 %v4738_v17, %s3296_s14  ;;  %1649 = vrot.lane.b32.xlu0 %v4723_v51, %s3295_s26 }
 0x415   : > { %1645 = vrot.lane.b32.xlu1 %v3997_v47, %s3295_s26 }
 0x416   : > { %v1963_v21 = vpop.permute.xlu2 %1962  ;;  %v1823_v60 = vpop.permute.xlu0 %1822 }
 0x417   : > { %v1638_v44 = vpop.permute.xlu1 %1637 }
 0x418   : > { %1767 = vst.msk [vmem:[#allocation3 + $0x5e] sm:$0x3] %vm1751_vm15, %v1638_v44  ;;  %v2347_v8 = vld [vmem:[#allocation3 + $0xd8] sm:$0xff] }
 0x419   : > { %1908 = vst.msk [vmem:[#allocation3 + $0x58] sm:$0xff] %vm1896_vm2, %v1823_v60  ;;  %v2379_v46 = vpack.c.bf16 %v2347_v8, %v2347_v8 }
 0x41a   : > { %2093 = vst.msk [vmem:[#allocation3 + $0x57] sm:$0xff] %vm2076_vm6, %v1963_v21 }
 0x41b   : > { %v2452_v37 = vunpack.c.l.b16 %v2379_v46 }
 0x41c   : > { %2217 = vrot.lane.b32.xlu2 %v4738_v17, %s3298_s19  ;;  %1972 = vrot.lane.b32.xlu0 %v4030_v13, %s3296_s14 }
 0x41d   : > { %1828 = vrot.lane.b32.xlu1 %v4030_v13, %s3297_s0  ;;  %v2470_v47 = vpack.c.b16 %v2452_v37, %v2451_v40  ;;  %v3153_v37 = vld [vmem:[#allocation2 + $0x118] sm:$0x3] }
 0x41e   : > { %v2158_v27 = vpop.permute.xlu2 %2157  ;;  %v1965_v43 = vpop.permute.xlu0 %1964 }
 0x41f   : > { %3022 = vmatmul.msk.bf16.gmra.mxu2 %vm2488_vm9, %v2470_v47  ;;  %2094 = vst.msk [vmem:[#allocation3 + $0x5f] sm:$0x1] %vm2078_vm3, %v1965_v43  ;;  %v1961_v5 = vpop.permute.xlu1 %1960 }
 0x420   : > { %2092 = vst.msk [vmem:[#allocation3 + $0x4f] sm:$0xfe] %vm2074_vm4, %v1961_v5 }
 0x421   : > { %2288 = vst.msk [vmem:[#allocation3 + $0x56] sm:$0xff] %vm2271_vm8, %v2158_v27 }
 0x424   : > { %1647 = vrot.lane.b32.xlu2 %v4003_v48, %s3295_s26  ;;  %2167 = vrot.lane.b32.xlu0 %v4030_v13, %s3298_s19 }
 0x425   : > { %1974 = vrot.lane.b32.xlu1 %v4036_v16, %s3296_s14 }
 0x426   : > { %v1690_v51 = vpop.permute.xlu2 %1689  ;;  %v2160_v10 = vpop.permute.xlu0 %2159 }
 0x427   : > { %1793 = vst.msk [vmem:[#allocation3 + $0xe6] sm:$0xff] %vm1749_vm14, %v1690_v51  ;;  %v2156_v7 = vpop.permute.xlu1 %2155 }
 0x428   : > { %2289 = vst.msk [vmem:[#allocation3 + $0x5e] sm:$0x3] %vm2273_vm7, %v2160_v10 }
 0x429   : > { %2287 = vst.msk [vmem:[#allocation3 + $0x4e] sm:$0xfc] %vm2269_vm5, %v2156_v7 }
 0x42a   : > { %v2605_v32 = vpop.f32.mrf.mxu2 }
 0x42b   : > { %v2606_v20 = vadd.f32 %v4660_v49, %v2605_v32 }
 0x42c   : > { %1830 = vrot.lane.b32.xlu2 %v4036_v16, %s3297_s0  ;;  %1651 = vrot.lane.b32.xlu0 %v4030_v13, %s3295_s26 }
 0x42d   : > { %2169 = vrot.lane.b32.xlu1 %v4036_v16, %s3298_s19  ;;  %v2652_v18 = vmax.f32 %v2606_v20, 0.0 }
 0x42e   : > { %v1859_v48 = vpop.permute.xlu2 %1858  ;;  %v1692_v9 = vpop.permute.xlu0 %1691 }
 0x42f   : > { %1794 = vst.msk [vmem:[#allocation3 + $0xee] sm:$0x3] %vm1751_vm15, %v1692_v9  ;;  %v1688_v52 = vpop.permute.xlu1 %1687  ;;  %v2331_v19 = vld [vmem:[#allocation3 + $0x58] sm:$0xff] }
 0x430   : > { %1926 = vst.msk [vmem:[#allocation3 + $0xe8] sm:$0xff] %vm1896_vm2, %v1859_v48  ;;  %v2330_v63 = vld [vmem:[#allocation3 + $0x50] sm:$0xff]  ;;  %v2363_v12 = vpack.c.bf16 %v2331_v19, %v2331_v19 }
 0x431   : > { %1792 = vst.msk [vmem:[#allocation3 + $0xde] sm:$0xfc] %vm1747_vm13, %v1688_v52  ;;  %v2362_v53 = vpack.c.bf16 %v2330_v63, %v2330_v63 }
 0x432   : > { %v2607_v17 = vpop.f32.mrf.mxu2  ;;  %v2436_v13 = vunpack.c.l.b16 %v2363_v12 }
 0x433   : > { %v2608_v30 = vadd.f32 %v4660_v49, %v2607_v17  ;;  %v2435_v23 = vunpack.c.l.b16 %v2362_v53 }
 0x434   : > { %1976 = vrot.lane.b32.xlu2 %v3151_v29, %s3296_s14  ;;  %1832 = vrot.lane.b32.xlu0 %v3646_v33, %s3297_s0 }
 0x435   : > { %v2653_v59 = vmax.f32 %v2608_v30, 0.0  ;;  %1653 = vrot.lane.b32.xlu1 %v4036_v16, %s3295_s26  ;;  %v2462_v58 = vpack.c.b16 %v2436_v13, %v2435_v23 }
 0x436   : > { %v2019_v22 = vpop.permute.xlu2 %2018  ;;  %v2015_v34 = vpop.permute.xlu0 %2014 }
 0x437   : > { %3014 = vmatmul.msk.bf16.gmra.mxu1 %vm2488_vm9, %v2462_v58  ;;  %2121 = vst.msk [vmem:[#allocation3 + $0xef] sm:$0x1] %vm2078_vm3, %v2019_v22  ;;  %v1857_v6 = vpop.permute.xlu1 %1856  ;;  %v4816_v25 = vpack.c.bf16 %v2653_v59, %v2652_v18 }
 0x438   : > { %1925 = vst.msk [vmem:[#allocation3 + $0xe0] sm:$0xff] %vm1896_vm2, %v1857_v6 }
 0x439   : > { %2119 = vst.msk [vmem:[#allocation3 + $0xdf] sm:$0xfe] %vm2074_vm4, %v2015_v34 }
 0x43c   : > { %2171 = vrot.lane.b32.xlu2 %v3151_v29, %s3298_s19  ;;  %1980 = vrot.lane.b32.xlu0 %v3664_v41, %s3296_s14 }
 0x43d   : > { %1834 = vrot.lane.b32.xlu1 %v3664_v41, %s3297_s0 }
 0x43e   : > { %v2214_v16 = vpop.permute.xlu2 %2213  ;;  %v2210_v24 = vpop.permute.xlu0 %2209 }
 0x43f   : > { %2314 = vst.msk [vmem:[#allocation3 + $0xde] sm:$0xfc] %vm2269_vm5, %v2210_v24  ;;  %v2017_v28 = vpop.permute.xlu1 %2016 }
 0x440   : > { %2120 = vst.msk [vmem:[#allocation3 + $0xe7] sm:$0xff] %vm2076_vm6, %v2017_v28 }
 0x441   : > { %2316 = vst.msk [vmem:[#allocation3 + $0xee] sm:$0x3] %vm2273_vm7, %v2214_v16 }
 0x444   : > { %v2565_v4 = vpop.f32.mrf.mxu1  ;;  %1655 = vrot.lane.b32.xlu2 %v3151_v29, %s3295_s26  ;;  %2175 = vrot.lane.b32.xlu0 %v3664_v41, %s3298_s19 }
 0x445   : > { %1982 = vrot.lane.b32.xlu1 %v3152_v36, %s3296_s14  ;;  %v2566_v31 = vadd.f32 %v4660_v49, %v2565_v4 }
 0x446   : > { %v1644_v39 = vpop.permute.xlu2 %1643  ;;  %v1640_v0 = vpop.permute.xlu0 %1639 }
 0x447   : > { %1770 = vst.msk [vmem:[#allocation3 + $0x6e] sm:$0x3] %vm1751_vm15, %v1644_v39  ;;  %v2212_v14 = vpop.permute.xlu1 %2211  ;;  %v2636_v54 = vmax.f32 %v2566_v31, 0.0 }
 0x448   : > { %1768 = vst.msk [vmem:[#allocation3 + $0x5e] sm:$0xfc] %vm1747_vm13, %v1640_v0 }
 0x449   : > { %2315 = vst.msk [vmem:[#allocation3 + $0xe6] sm:$0xff] %vm2271_vm8, %v2212_v14 }
 0x44c   : > { %v2567_v1 = vpop.f32.mrf.mxu1  ;;  %1978 = vrot.lane.b32.xlu2 %v3646_v33, %s3296_s14  ;;  %1659 = vrot.lane.b32.xlu0 %v3664_v41, %s3295_s26 }
 0x44d   : > { %v2568_v42 = vadd.f32 %v4660_v49, %v2567_v1  ;;  %2177 = vrot.lane.b32.xlu1 %v3152_v36, %s3298_s19 }
 0x44e   : > { %v1967_v38 = vpop.permute.xlu2 %1966  ;;  %v1825_v62 = vpop.permute.xlu0 %1824 }
 0x44f   : > { %v2637_v45 = vmax.f32 %v2568_v42, 0.0  ;;  %v1642_v26 = vpop.permute.xlu1 %1641 }
 0x450   : > { %1769 = vst.msk [vmem:[#allocation3 + $0x66] sm:$0xff] %vm1749_vm14, %v1642_v26  ;;  %v2348_v55 = vld [vmem:[#allocation3 + $0xe0] sm:$0xff]  ;;  %v2349_v57 = vld [vmem:[#allocation3 + $0xe8] sm:$0xff] }
 0x451   : > { %1909 = vst.msk [vmem:[#allocation3 + $0x60] sm:$0xff] %vm1896_vm2, %v1825_v62  ;;  %v2380_v15 = vpack.c.bf16 %v2348_v55, %v2348_v55  ;;  %v2381_v21 = vpack.c.bf16 %v2349_v57, %v2349_v57  ;;  %v4844_v60 = vpack.c.bf16 %v2637_v45, %v2636_v54 }
 0x452   : > { %2095 = vst.msk [vmem:[#allocation3 + $0x5f] sm:$0xfe] %vm2074_vm4, %v1967_v38 }
 0x453   : > { %v2453_v41 = vunpack.c.l.b16 %v2380_v15  ;;  %v2454_v44 = vunpack.c.l.b16 %v2381_v21 }
 0x454   : > { %2173 = vrot.lane.b32.xlu2 %v3646_v33, %s3298_s19  ;;  %1838 = vrot.lane.b32.xlu0 %v3703_v56, %s3297_s0 }
 0x455   : > { %1661 = vrot.lane.b32.xlu1 %v3152_v36, %s3295_s26  ;;  %v2471_v2 = vpack.c.b16 %v2454_v44, %v2453_v41 }
 0x456   : > { %v2162_v8 = vpop.permute.xlu2 %2161  ;;  %v1969_v46 = vpop.permute.xlu0 %1968 }
 0x457   : > { %3023 = vmatmul.msk.bf16.gmra.mxu2 %vm2488_vm9, %v2471_v2  ;;  %2290 = vst.msk [vmem:[#allocation3 + $0x5e] sm:$0xfc] %vm2269_vm5, %v2162_v8  ;;  %v1827_v40 = vpop.permute.xlu1 %1826 }
 0x458   : > { %1910 = vst.msk [vmem:[#allocation3 + $0x68] sm:$0xff] %vm1896_vm2, %v1827_v40 }
 0x459   : > { %2096 = vst.msk [vmem:[#allocation3 + $0x67] sm:$0xff] %vm2076_vm6, %v1969_v46 }
 0x45c   : > { %1657 = vrot.lane.b32.xlu2 %v3646_v33, %s3295_s26  ;;  %1988 = vrot.lane.b32.xlu0 %v3153_v37, %s3296_s14 }
 0x45d   : > { %1984 = vrot.lane.b32.xlu1 %v3685_v50, %s3296_s14 }
 0x45e   : > { %v1694_v47 = vpop.permute.xlu2 %1693  ;;  %v2164_v27 = vpop.permute.xlu0 %2163 }
 0x45f   : > { %1795 = vst.msk [vmem:[#allocation3 + $0xee] sm:$0xfc] %vm1747_vm13, %v1694_v47  ;;  %v1971_v43 = vpop.permute.xlu1 %1970 }
 0x460   : > { %2291 = vst.msk [vmem:[#allocation3 + $0x66] sm:$0xff] %vm2271_vm8, %v2164_v27 }
 0x461   : > { %2097 = vst.msk [vmem:[#allocation3 + $0x6f] sm:$0x1] %vm2078_vm3, %v1971_v43 }
 0x462   : > { %v2610_v5 = vpop.f32.mrf.mxu2 }
 0x463   : > { %v2611_v7 = vadd.f32 %v4660_v49, %v2610_v5 }
 0x464   : > { %1836 = vrot.lane.b32.xlu2 %v3685_v50, %s3297_s0  ;;  %2183 = vrot.lane.b32.xlu0 %v3153_v37, %s3298_s19 }
 0x465   : > { %2179 = vrot.lane.b32.xlu1 %v3685_v50, %s3298_s19  ;;  %v2654_v52 = vmax.f32 %v2611_v7, 0.0 }
 0x466   : > { %v1861_v33 = vpop.permute.xlu2 %1860  ;;  %v1696_v51 = vpop.permute.xlu0 %1695 }
 0x467   : > { %1796 = vst.msk [vmem:[#allocation3 + $0xf6] sm:$0xff] %vm1749_vm14, %v1696_v51  ;;  %v2166_v10 = vpop.permute.xlu1 %2165  ;;  %v2332_v9 = vld [vmem:[#allocation3 + $0x60] sm:$0xff] }
 0x468   : > { %1927 = vst.msk [vmem:[#allocation3 + $0xf0] sm:$0xff] %vm1896_vm2, %v1861_v33  ;;  %v2364_v20 = vpack.c.bf16 %v2332_v9, %v2332_v9 }
 0x469   : > { %2292 = vst.msk [vmem:[#allocation3 + $0x6e] sm:$0x3] %vm2273_vm7, %v2166_v10 }
 0x46a   : > { %v2612_v32 = vpop.f32.mrf.mxu2  ;;  %v2437_v30 = vunpack.c.l.b16 %v2364_v20 }
 0x46b   : > { %v2613_v48 = vadd.f32 %v4660_v49, %v2612_v32 }
 0x46c   : > { %1986 = vrot.lane.b32.xlu2 %v3703_v56, %s3296_s14 }
 0x46d   : > { %v2655_v50 = vmax.f32 %v2613_v48, 0.0 }
 0x46e   : > { %v2023_v19 = vpop.permute.xlu2 %2022  ;;  %v1863_v63 = vpop.permute.xlu0 %1862 }
 0x46f   : > { %v1698_v12 = vpop.permute.xlu1 %1697  ;;  %v4876_v53 = vpack.c.bf16 %v2655_v50, %v2654_v52 }
 0x470   : > { %1797 = vst.msk [vmem:[#allocation3 + $0xfe] sm:$0x3] %vm1751_vm15, %v1698_v12  ;;  %v2333_v17 = vld [vmem:[#allocation3 + $0x68] sm:$0xff] }
 0x471   : > { %1928 = vst.msk [vmem:[#allocation3 + $0xf8] sm:$0xff] %vm1896_vm2, %v1863_v63  ;;  %v2365_v13 = vpack.c.bf16 %v2333_v17, %v2333_v17 }
 0x472   : > { %2123 = vst.msk [vmem:[#allocation3 + $0xf7] sm:$0xff] %vm2076_vm6, %v2023_v19 }
 0x473   : > { %v2438_v23 = vunpack.c.l.b16 %v2365_v13 }
 0x474   : > { %2181 = vrot.lane.b32.xlu2 %v3703_v56, %s3298_s19  ;;  %s367_s19 = scalar_lea.vmem [#allocation9], %s2915_s11 }
 0x475   : > { %v2463_v29 = vpack.c.b16 %v2438_v23, %v2437_v30  ;;  %s2805_s11 = sshll.u32 %s367_s19, 4  ;;  %s2806_s11 = int_to_ptr.vmem [resolvable:$true] %s2805_s11 }
 0x476   : > { %v2218_v18 = vpop.permute.xlu2 %2217  ;;  %v2025_v59 = vpop.permute.xlu0 %2024 }
 0x477   : > { %3015 = vmatmul.msk.bf16.gmra.mxu1 %vm2488_vm9, %v2463_v29  ;;  %2124 = vst.msk [vmem:[#allocation3 + $0xff] sm:$0x1] %vm2078_vm3, %v2025_v59  ;;  %v2021_v58 = vpop.permute.xlu1 %2020 }
 0x478   : > { %2122 = vst.msk [vmem:[#allocation3 + $0xef] sm:$0xfe] %vm2074_vm4, %v2021_v58 }
 0x479   : > { %2318 = vst.msk [vmem:[#allocation3 + $0xf6] sm:$0xff] %vm2271_vm8, %v2218_v18 }
 0x47c   : > { %v2570_v22 = vpop.f32.mrf.mxu1 }
 0x47d   : > { %v2571_v56 = vadd.f32 %v4660_v49, %v2570_v22 }
 0x47e   : > { %v1648_v34 = vpop.permute.xlu2 %1647  ;;  %v2220_v6 = vpop.permute.xlu0 %2219 }
 0x47f   : > { %1772 = vst.msk [vmem:[#allocation3 + $0x76] sm:$0xff] %vm1749_vm14, %v1648_v34  ;;  %v2216_v16 = vpop.permute.xlu1 %2215  ;;  %v2638_v39 = vmax.f32 %v2571_v56, 0.0 }
 0x480   : > { %2319 = vst.msk [vmem:[#allocation3 + $0xfe] sm:$0x3] %vm2273_vm7, %v2220_v6 }
 0x481   : > { %2317 = vst.msk [vmem:[#allocation3 + $0xee] sm:$0xfc] %vm2269_vm5, %v2216_v16 }
 0x484   : > { %v2572_v24 = vpop.f32.mrf.mxu1 }
 0x485   : > { %v2573_v28 = vadd.f32 %v4660_v49, %v2572_v24 }
 0x486   : > { %v1831_v4 = vpop.permute.xlu2 %1830  ;;  %v1650_v36 = vpop.permute.xlu0 %1649 }
 0x487   : > { %v2639_v0 = vmax.f32 %v2573_v28, 0.0  ;;  %1773 = vst.msk [vmem:[#allocation3 + $0x7e] sm:$0x3] %vm1751_vm15, %v1650_v36  ;;  %v1646_v14 = vpop.permute.xlu1 %1645  ;;  %v2351_v31 = vld [vmem:[#allocation3 + $0xf8] sm:$0xff] }
 0x488   : > { %1912 = vst.msk [vmem:[#allocation3 + $0x78] sm:$0xff] %vm1896_vm2, %v1831_v4  ;;  %v2350_v1 = vld [vmem:[#allocation3 + $0xf0] sm:$0xff]  ;;  %v2383_v42 = vpack.c.bf16 %v2351_v31, %v2351_v31 }
 0x489   : > { %1771 = vst.msk [vmem:[#allocation3 + $0x6e] sm:$0xfc] %vm1747_vm13, %v1646_v14  ;;  %v2382_v38 = vpack.c.bf16 %v2350_v1, %v2350_v1  ;;  %v4895_v62 = vpack.c.bf16 %v2639_v0, %v2638_v39 }
 0x48a   : > { %v2456_v54 = vunpack.c.l.b16 %v2383_v42 }
 0x48b   : > { %v2455_v45 = vunpack.c.l.b16 %v2382_v38 }
 0x48d   : > { %v2472_v26 = vpack.c.b16 %v2456_v54, %v2455_v45 }
 0x48e   : > { %v1977_v55 = vpop.permute.xlu2 %1976  ;;  %v1973_v57 = vpop.permute.xlu0 %1972 }
 0x48f   : > { %3024 = vmatmul.msk.bf16.gmra.mxu2 %vm2488_vm9, %v2472_v26  ;;  %2100 = vst.msk [vmem:[#allocation3 + $0x7f] sm:$0x1] %vm2078_vm3, %v1977_v55  ;;  %v1829_v15 = vpop.permute.xlu1 %1828 }
 0x490   : > { %1911 = vst.msk [vmem:[#allocation3 + $0x70] sm:$0xff] %vm1896_vm2, %v1829_v15 }
 0x491   : > { %2098 = vst.msk [vmem:[#allocation3 + $0x6f] sm:$0xfe] %vm2074_vm4, %v1973_v57 }
 0x496   : > { %v2172_v21 = vpop.permute.xlu2 %2171  ;;  %v2168_v41 = vpop.permute.xlu0 %2167 }
 0x497   : > { %2293 = vst.msk [vmem:[#allocation3 + $0x6e] sm:$0xfc] %vm2269_vm5, %v2168_v41  ;;  %v1975_v44 = vpop.permute.xlu1 %1974 }
 0x498   : > { %2099 = vst.msk [vmem:[#allocation3 + $0x77] sm:$0xff] %vm2076_vm6, %v1975_v44 }
 0x499   : > { %2295 = vst.msk [vmem:[#allocation3 + $0x7e] sm:$0x3] %vm2273_vm7, %v2172_v21 }
 0x49e   : > { %v1656_v2 = vpop.permute.xlu2 %1655  ;;  %v1652_v8 = vpop.permute.xlu0 %1651 }
 0x49f   : > { %1776 = vst.msk [vmem:[#allocation3 + $0x8e] sm:$0x3] %vm1751_vm15, %v1656_v2  ;;  %v2170_v46 = vpop.permute.xlu1 %2169 }
 0x4a0   : > { %1774 = vst.msk [vmem:[#allocation3 + $0x7e] sm:$0xfc] %vm1747_vm13, %v1652_v8 }
 0x4a1   : > { %2294 = vst.msk [vmem:[#allocation3 + $0x76] sm:$0xff] %vm2271_vm8, %v2170_v46 }
 0x4a2   : > { %v2615_v42 = vpop.f32.mrf.mxu2 }
 0x4a6   : > { %v1979_v40 = vpop.permute.xlu2 %1978  ;;  %v1833_v37 = vpop.permute.xlu0 %1832 }
 0x4a7   : > { %v1654_v47 = vpop.permute.xlu1 %1653 }
 0x4a8   : > { %1775 = vst.msk [vmem:[#allocation3 + $0x86] sm:$0xff] %vm1749_vm14, %v1654_v47  ;;  %v2334_v27 = vld [vmem:[#allocation3 + $0x70] sm:$0xff]  ;;  %v2335_v43 = vld [vmem:[#allocation3 + $0x78] sm:$0xff] }
 0x4a9   : > { %1913 = vst.msk [vmem:[#allocation3 + $0x80] sm:$0xff] %vm1896_vm2, %v1833_v37  ;;  %v2366_v5 = vpack.c.bf16 %v2334_v27, %v2334_v27  ;;  %v2367_v33 = vpack.c.bf16 %v2335_v43, %v2335_v43 }
 0x4aa   : > { %2101 = vst.msk [vmem:[#allocation3 + $0x7f] sm:$0xfe] %vm2074_vm4, %v1979_v40  ;;  %v2617_v38 = vpop.f32.mrf.mxu2 }
 0x4ab   : > { %v2439_v51 = vunpack.c.l.b16 %v2366_v5  ;;  %v2440_v10 = vunpack.c.l.b16 %v2367_v33  ;;  %v2618_v33 = vadd.f32 %v4660_v49, %v2617_v38  ;;  %v3299_v38 = vmov 0  }
 0x4ac   : > { %3129 = vset.pattern.permute.xlu1 %v3299_v38  ;;  %3130 = vset.pattern.permute.xlu2 %v3299_v38 }
 0x4ad   : > { %v2464_v7 = vpack.c.b16 %v2440_v10, %v2439_v51  ;;  %v2616_v10 = vadd.f32 %v4660_v49, %v2615_v42  ;;  %v2707_v42 = vsel %vm663_vm1, %v4768_v61, 0  ;;  %3131 = vset.pattern.permute.xlu0 %v3299_v38 }
 0x4ae   : > { %v2174_v32 = vpop.permute.xlu2 %2173  ;;  %v1981_v48 = vpop.permute.xlu0 %1980 }
 0x4af   : > { %3016 = vmatmul.msk.bf16.gmra.mxu1 %vm2488_vm9, %v2464_v7  ;;  %2296 = vst.msk [vmem:[#allocation3 + $0x7e] sm:$0xfc] %vm2269_vm5, %v2174_v32  ;;  %v1835_v9 = vpop.permute.xlu1 %1834  ;;  %v2657_v7 = vmax.f32 %v2618_v33, 0.0  ;;  %v2777_v33 = vld [vmem:[%s3476_s12 + $0x8] sm:$0xff] }
 0x4b0   : > { %1914 = vst.msk [vmem:[#allocation3 + $0x88] sm:$0xff] %vm1896_vm2, %v1835_v9 }
 0x4b1   : > { %2102 = vst.msk [vmem:[#allocation3 + $0x87] sm:$0xff] %vm2076_vm6, %v1981_v48  ;;  %v2656_v48 = vmax.f32 %v2616_v10, 0.0 }
 0x4b4   : > { %v2575_v45 = vpop.f32.mrf.mxu1 }
 0x4b6   : > { %v1658_v52 = vpop.permute.xlu2 %1657  ;;  %v2176_v50 = vpop.permute.xlu0 %2175 }
 0x4b7   : > { %1777 = vst.msk [vmem:[#allocation3 + $0x8e] sm:$0xfc] %vm1747_vm13, %v1658_v52  ;;  %v1983_v19 = vpop.permute.xlu1 %1982  ;;  %v2675_v52 = vpack.c.bf16 %v2657_v7, %v2656_v48  ;;  %v2778_v7 = vld [vmem:[%s3476_s12 + $0x10] sm:$0xff] }
 0x4b8   : > { %2297 = vst.msk [vmem:[#allocation3 + $0x86] sm:$0xff] %vm2271_vm8, %v2176_v50 }
 0x4b9   : > { %2103 = vst.msk [vmem:[#allocation3 + $0x8f] sm:$0x1] %vm2078_vm3, %v1983_v19  ;;  %v2740_v50 = vsel %vm663_vm1, %v2675_v52, 0 }
 0x4bc   : > { %v2577_v55 = vpop.f32.mrf.mxu1 }
 0x4be   : > { %v1837_v63 = vpop.permute.xlu2 %1836  ;;  %v1660_v12 = vpop.permute.xlu0 %1659 }
 0x4bf   : > { %1778 = vst.msk [vmem:[#allocation3 + $0x96] sm:$0xff] %vm1749_vm14, %v1660_v12  ;;  %v2178_v20 = vpop.permute.xlu1 %2177  ;;  %v2336_v17 = vld [vmem:[#allocation3 + $0x80] sm:$0xff] }
 0x4c0   : > { %1915 = vst.msk [vmem:[#allocation3 + $0x90] sm:$0xff] %vm1896_vm2, %v1837_v63  ;;  %v2368_v29 = vpack.c.bf16 %v2336_v17, %v2336_v17 }
 0x4c1   : > { %2298 = vst.msk [vmem:[#allocation3 + $0x8e] sm:$0x3] %vm2273_vm7, %v2178_v20 }
 0x4c2   : > { %v2441_v58 = vunpack.c.l.b16 %v2368_v29 }
 0x4c6   : > { %v1987_v13 = vpop.permute.xlu2 %1986  ;;  %v1839_v30 = vpop.permute.xlu0 %1838 }
 0x4c7   : > { %v1662_v23 = vpop.permute.xlu1 %1661 }
 0x4c8   : > { %1779 = vst.msk [vmem:[#allocation3 + $0x9e] sm:$0x3] %vm1751_vm15, %v1662_v23  ;;  %v2337_v18 = vld [vmem:[#allocation3 + $0x88] sm:$0xff]  ;;  %v2737_v23 = vsel %vm663_vm1, %v4876_v53, 0 }
 0x4c9   : > { %1916 = vst.msk [vmem:[#allocation3 + $0x98] sm:$0xff] %vm1896_vm2, %v1839_v30  ;;  %v2369_v59 = vpack.c.bf16 %v2337_v18, %v2337_v18 }
 0x4ca   : > { %2105 = vst.msk [vmem:[#allocation3 + $0x97] sm:$0xff] %vm2076_vm6, %v1987_v13 }
 0x4cb   : > { %v2442_v22 = vunpack.c.l.b16 %v2369_v59 }
 0x4cd   : > { %v2465_v34 = vpack.c.b16 %v2442_v22, %v2441_v58  ;;  %v2578_v22 = vadd.f32 %v4660_v49, %v2577_v55 }
 0x4ce   : > { %v2182_v6 = vpop.permute.xlu2 %2181  ;;  %v1989_v16 = vpop.permute.xlu0 %1988 }
 0x4cf   : > { %3017 = vmatmul.msk.bf16.gmra.mxu1 %vm2488_vm9, %v2465_v34  ;;  %2106 = vst.msk [vmem:[#allocation3 + $0x9f] sm:$0x1] %vm2078_vm3, %v1989_v16  ;;  %v1985_v56 = vpop.permute.xlu1 %1984  ;;  %v2734_v16 = vsel %vm663_vm1, %v4816_v25, 0 }
 0x4d0   : > { %2104 = vst.msk [vmem:[#allocation3 + $0x8f] sm:$0xfe] %vm2074_vm4, %v1985_v56  ;;  %v2641_v56 = vmax.f32 %v2578_v22, 0.0 }
 0x4d1   : > { %2300 = vst.msk [vmem:[#allocation3 + $0x96] sm:$0xff] %vm2271_vm8, %v2182_v6  ;;  %v2576_v6 = vadd.f32 %v4660_v49, %v2575_v45 }
 0x4d3   : > { %v2640_v53 = vmax.f32 %v2576_v6, 0.0 }
 0x4d6   : > { %v2184_v24 = vpop.permute.xlu0 %2183 }
 0x4d7   : > { %2301 = vst.msk [vmem:[#allocation3 + $0x9e] sm:$0x3] %vm2273_vm7, %v2184_v24  ;;  %v2180_v28 = vpop.permute.xlu1 %2179 }
 0x4d8   : > { %2299 = vst.msk [vmem:[#allocation3 + $0x8e] sm:$0xfc] %vm2269_vm5, %v2180_v28  ;;  %v2667_v28 = vpack.c.bf16 %v2641_v56, %v2640_v53 }
 0x4da   : > { %v2620_v54 = vpop.f32.mrf.mxu2 }
 0x4db   : > { %v2621_v40 = vadd.f32 %v4660_v49, %v2620_v54  ;;  %v2704_v54 = vsel %vm663_vm1, %v4708_v3, 0 }
 0x4dd   : > { %v2658_v43 = vmax.f32 %v2621_v40, 0.0  ;;  %v2776_v40 = vld [vmem:[%s3476_s12] sm:$0xff] }
 0x4de   : > { %v2339_v4 = vld [vmem:[#allocation3 + $0x98] sm:$0xff] }
 0x4df   : > { %v2338_v36 = vld [vmem:[#allocation3 + $0x90] sm:$0xff]  ;;  %v2371_v39 = vpack.c.bf16 %v2339_v4, %v2339_v4  ;;  %v2731_v4 = vsel %vm663_vm1, %v4749_v35, 0  ;;  %v2681_v35 = vld [vmem:[%s5028_s7 + $0x8] sm:$0xff] }
 0x4e0   : > { %v2370_v0 = vpack.c.bf16 %v2338_v36, %v2338_v36  ;;  %v2716_v36 = vsel %vm663_vm1, %v2667_v28, 0  ;;  %2689 = vperm.xlu2 %3130, %v2681_v35  }
 0x4e1   : > { %v2444_v14 = vunpack.c.l.b16 %v2371_v39 }
 0x4e2   : > { %v2443_v31 = vunpack.c.l.b16 %v2370_v0  ;;  %v2622_v26 = vpop.f32.mrf.mxu2  ;;  %v2713_v0 = vsel %vm663_vm1, %v4895_v62, 0 }
 0x4e3   : > { %v2623_v2 = vadd.f32 %v4660_v49, %v2622_v26 }
 0x4e4   : > { %v2466_v1 = vpack.c.b16 %v2444_v14, %v2443_v31  ;;  %v2710_v14 = vsel %vm663_vm1, %v4844_v60, 0  ;;  %v2680_v31 = vld [vmem:[%s5028_s7] sm:$0xff] }
 0x4e5   : > { %v2659_v47 = vmax.f32 %v2623_v2, 0.0  ;;  %2684 = vperm.xlu1 %3129, %v2680_v31  }
 0x4e6   : > { %3018 = vmatmul.msk.bf16.gmra.mxu1 %vm2488_vm9, %v2466_v1 }
 0x4e7   : > { %v2676_v51 = vpack.c.bf16 %v2659_v47, %v2658_v43 }
 0x4e9   : > { %v2743_v32 = vsel %vm663_vm1, %v2676_v51, 0 }
 0x4f4   : > { %v2580_v21 = vpop.f32.mrf.mxu1 }
 0x4f5   : > { %v2581_v30 = vadd.f32 %v4660_v49, %v2580_v21 }
 0x4f7   : > { %v2642_v58 = vmax.f32 %v2581_v30, 0.0 }
 0x4fc   : > { %v2582_v5 = vpop.f32.mrf.mxu1 }
 0x4fd   : > { %v2583_v20 = vadd.f32 %v4660_v49, %v2582_v5 }
 0x4ff   : > { %v2643_v18 = vmax.f32 %v2583_v20, 0.0 }
 0x501   : > { %v2668_v34 = vpack.c.bf16 %v2643_v18, %v2642_v58 }
 0x503   : > { %v2719_v24 = vsel %vm663_vm1, %v2668_v34, 0 }
 0x512   : > { %v2625_v57 = vpop.f32.mrf.mxu2 }
 0x513   : > { %v2626_v15 = vadd.f32 %v4660_v49, %v2625_v57 }
 0x515   : > { %v2660_v8 = vmax.f32 %v2626_v15, 0.0 }
 0x51a   : > { %v2627_v41 = vpop.f32.mrf.mxu2 }
 0x51b   : > { %v2628_v44 = vadd.f32 %v4660_v49, %v2627_v41 }
 0x51d   : > { %v2661_v46 = vmax.f32 %v2628_v44, 0.0  ;;  %v2701_v44 = vsel %vm663_vm1, %v4679_v11, 0 }
 0x51f   : > { %v2677_v37 = vpack.c.bf16 %v2661_v46, %v2660_v8  ;;  %v3057_v8 = vld [vmem:[%s5027_s6] sm:$0xff] }
 0x521   : > { %v2746_v27 = vsel %vm663_vm1, %v2677_v37, 0 }
 0x522   : > { %2762 = vmatpush.bf16.xpose.msrb.mxu3 %v2746_v27 }
 0x52a   : > { %2763 = vmatpush.bf16.xpose.msrb.mxu3 %v2743_v32 }
 0x52c   : > { %v2585_v9 = vpop.f32.mrf.mxu1 }
 0x52d   : > { %v2586_v19 = vadd.f32 %v4660_v49, %v2585_v9 }
 0x52f   : > { %v2644_v17 = vmax.f32 %v2586_v19, 0.0 }
 0x532   : > { %2764 = vmatpush.bf16.xpose.msrb.mxu3 %v2740_v50 }
 0x534   : > { %v2587_v63 = vpop.f32.mrf.mxu1 }
 0x535   : > { %v2588_v12 = vadd.f32 %v4660_v49, %v2587_v63  ;;  %v2779_v63 = vld [vmem:[%s3476_s12 + $0x18] sm:$0xff]  ;;  %s3234_s12 = scalar_lea.hbm %s5029_s8, 64 }
 0x536   : > { %p3236_p2 = scmp.lt.s32.totalorder %s3234_s12, %s3230_s16 }
 0x537   : > { %v2645_v13 = vmax.f32 %v2588_v12, 0.0 }
 0x538   : > { %p3237_p9 = por %p3236_p2, %p3235_p10 }
 0x539   : > { %v2669_v29 = vpack.c.bf16 %v2645_v13, %v2644_v17 }
 0x53a   : > { %2765 = vmatpush.bf16.xpose.msrb.mxu3 %v2737_v23  ;;  %v2690_v43 = vpop.permute.xlu2 %2689  ;;  %p3238_p0 = pnand %p3237_p9, %p3233_p3 }
 0x53b   : > { %v2722_v59 = vsel %vm663_vm1, %v2669_v29, 0 }
 0x53c   : > { %2748 = vmatpush.bf16.xpose.msrb.mxu2 %v2722_v59 }
 0x542   : > { %2766 = vmatpush.bf16.xpose.msrb.mxu3 %v2734_v16 }
 0x544   : > { %2749 = vmatpush.bf16.xpose.msrb.mxu2 %v2719_v24 }
 0x54a   : > { %2767 = vmatpush.bf16.xpose.msrb.mxu3 %v2731_v4 }
 0x54c   : > { %2750 = vmatpush.bf16.xpose.msrb.mxu2 %v2716_v36  ;;  %v2590_v39 = vpop.f32.mrf.mxu1 }
 0x54d   : > { %v2591_v57 = vadd.f32 %v4660_v49, %v2590_v39 }
 0x54f   : > { %v2646_v2 = vmax.f32 %v2591_v57, 0.0 }
 0x554   : > { %2751 = vmatpush.bf16.xpose.msrb.mxu2 %v2713_v0  ;;  %v2592_v25 = vpop.f32.mrf.mxu1 }
 0x555   : > { %v2593_v26 = vadd.f32 %v4660_v49, %v2592_v25 }
 0x557   : > { %v2647_v21 = vmax.f32 %v2593_v26, 0.0  ;;  %v2685_v46 = vpop.permute.xlu1 %2684 }
 0x559   : > { %v2670_v3 = vpack.c.bf16 %v2647_v21, %v2646_v2 }
 0x55c   : > { %2752 = vmatpush.bf16.xpose.msrb.mxu2 %v2710_v14 }
 0x563   : > { %v2595_v1 = vpop.f32.mrf.mxu1 }
 0x564   : > { %2753 = vmatpush.bf16.xpose.msrb.mxu2 %v2707_v42  ;;  %v2596_v60 = vadd.f32 %v4660_v49, %v2595_v1 }
 0x566   : > { %v2648_v55 = vmax.f32 %v2596_v60, 0.0 }
 0x56b   : > { %v2597_v62 = vpop.f32.mrf.mxu1 }
 0x56c   : > { %v2598_v45 = vadd.f32 %v4660_v49, %v2597_v62  ;;  %2754 = vmatpush.bf16.xpose.msrb.mxu2 %v2704_v54  ;;  %v2725_v49 = vsel %vm663_vm1, %v2670_v3, 0 }
 0x56e   : > { %v2649_v61 = vmax.f32 %v2598_v45, 0.0 }
 0x570   : > { %v2671_v15 = vpack.c.bf16 %v2649_v61, %v2648_v55 }
 0x572   : > { %v2728_v41 = vsel %vm663_vm1, %v2671_v15, 0 }
 0x573   : > { %2768 = vmatpush.bf16.xpose.msrb.mxu3 %v2728_v41 }
 0x574   : > { %2755 = vmatpush.bf16.xpose.msrb.mxu2 %v2701_v44 }
 0x57b   : > { %2769 = vmatpush.bf16.xpose.msrb.mxu3 %v2725_v49  ;;  %3029 = vmatmul.msk.bf16.vlgmr.msrb.gmra.mxu2 %vm663_vm1, %v3057_v8 }
 0x582   : > { %3030 = vmatmul.msk.bf16.vlgmr.msrb.gmra.mxu3 %vm663_vm1, %v3057_v8 }
 0x5fe   : > { %v2757_v11 = vpop.f32.mrf.mxu2 }
 0x5ff   : > { %v2758_v37 = vadd.f32 %v2757_v11, %v2685_v46 }
 0x601   : > { %v2780_v47 = vadd.f32 %v2776_v40, %v2758_v37 }
 0x603   : > { %v2784_v27 = vmax.f32 %v2780_v47, 0.0 }
 0x605   : > { %v2771_v5 = vpop.f32.mrf.mxu3  ;;  %2788 = vst [vmem:[%s367_s19] sm:$0xff] %v2784_v27 }
 0x606   : > { %v2772_v51 = vadd.f32 %v2771_v5, %v2685_v46  ;;  %v2759_v10 = vpop.f32.mrf.mxu2 }
 0x607   : > { %v2760_v32 = vadd.f32 %v2759_v10, %v2690_v43 }
 0x608   : > { %v2781_v48 = vadd.f32 %v2777_v33, %v2772_v51 }
 0x609   : > { %v2782_v9 = vadd.f32 %v2778_v7, %v2760_v32 }
 0x60a   : > { %v2785_v52 = vmax.f32 %v2781_v48, 0.0 }
 0x60b   : > { %v2786_v50 = vmax.f32 %v2782_v9, 0.0 }
 0x60c   : > { %2789 = vst [vmem:[%s367_s19 + $0x8] sm:$0xff] %v2785_v52 }
 0x60d   : > { %2790 = vst [vmem:[%s367_s19 + $0x10] sm:$0xff] %v2786_v50  ;;  %v2773_v19 = vpop.f32.mrf.mxu3 }
 0x60e   : > { %v2774_v12 = vadd.f32 %v2773_v19, %v2690_v43 }
 0x610   : > { %v2783_v20 = vadd.f32 %v2779_v63, %v2774_v12 }
 0x612   : > { %v2787_v17 = vmax.f32 %v2783_v20, 0.0 }
 0x614   : > { %2791 = vst [vmem:[%s367_s19 + $0x18] sm:$0xff] %v2787_v17 }
 0x615   : > { %3241 = shalt.err (!%p3238_p0)
}
 0x616   : > { %s3300_s29 = smov 256  }
 0x617   : > { %3067 = dma.vmem_to_hbm [thread:$0]  (%p3396_p11), %s2806_s11, 512, %s2808_s15, %s2793_s9, %s3300_s29, %s3300_s29, %s3294_s24  }
 0x618 PF: > { %s5048_s26 = sld [smem:[#allocation13_spill]]  ;;  %p5050_p1 = scmp.ge.s32.totalorder %s3284_s30, 2 }
 0x61a   : > { %p3077_p4 = pnand %p5050_p1, %p3400_p12 }
 0x61c   : > { %p3078_p7 = pneg %p3077_p4 }
 0x61e   : > { %s2822_s0 = sand.u32 1, %s5048_s26  }
 0x61f   : > { %s2823_s19 = scalar_lea.sflag [#allocation6], %s2822_s0 }
 0x620   : > { %3267 = dma.done.wait (%p3078_p7), %s2823_s19, 512  }
 0x621   : > { %3269 = vsyncadd (%p3078_p7), %s2823_s19, 4294966784  ;;  %s5051_s30 = sld [smem:[#allocation15_spill]]  ;;  %s5054_s27 = smov %s3276_s28 }
 0x622   : > { %s5052_s20 = sld [smem:[#allocation14_spill]] }
 0x623   : > { %s5053_s29 = sld [smem:[#allocation16_spill]] }
 0x627   : > { %p24_p5 = scmp.ge.s32.totalorder %s5051_s30, 4  }
 0x628   : > { %s5055_s28 = smov %s5052_s20 }
 0x629   :  { %26 = sbr.rel (!%p24_p5) target bundleno = 9 (0x9), region = 111 }
 0x62e   :  { %2829 = vsyncpa [#allocation5], 1 }
 0x62f   :  { %2831 = vsyncpa [#allocation5 + $0x1], 1 }
 0x630   :  { %2832 = vsyncpa [#allocation8], 1 }
 0x631   :  { %2834 = vsyncpa [#allocation8 + $0x1], 1 }
 0x632   :  { %2835 = vsyncpa [#allocation6], 1 }
 0x633   :  { %2837 = vsyncpa [#allocation6 + $0x1], 1 }

</bundles_post_ra>
